<compile_context>
chip_gen: v7x
topology: tpu7x:2x2x1
jax: 0.10.0
libtpu: 0.0.40
codegen_flags: <defaults>
</compile_context>

<pallas_src>
import functools

import jax
import jax.numpy as jnp
from jax.experimental import pallas as pl
from jax.experimental.pallas import tpu as pltpu


# ----------------------------- helpers -------------------------------------
def _matT(x, w_bf16):
    """x @ w.T with bf16 MXU operands and f32 accumulation.

    x: (rows, in), w_bf16: (out, in) bfloat16 (PyTorch weight layout).
    """
    return jax.lax.dot_general(
        x.astype(jnp.bfloat16), w_bf16,
        (((1,), (1,)), ((), ())),
        preferred_element_type=jnp.float32)


def _mat(x, w_bf16):
    """x @ w with bf16 MXU operands and f32 accumulation (canonical (1,)x(0,))."""
    return jax.lax.dot_general(
        x.astype(jnp.bfloat16), w_bf16,
        (((1,), (0,)), ((), ())),
        preferred_element_type=jnp.float32)


def _weight_spec(shape):
    # Full-array block with a constant index map -> weight stays resident in
    # VMEM across grid steps (Pallas skips the re-fetch for an unchanged block).
    nd = len(shape)
    return pl.BlockSpec(shape, lambda b, _nd=nd: (0,) * _nd)


def _pick_tq(S, target_bytes=2 << 20):
    """Largest divisor of S such that a (tq, S) f32 score tile stays small."""
    max_tq = max(8, target_bytes // (4 * S))
    if S <= max_tq:
        return S
    best = 1
    for t in range(1, int(min(S, max_tq)) + 1):
        if S % t == 0:
            best = t
    return best


def _vmem_limit_bytes(args, S, E, tq):
    """Explicit scoped-VMEM budget: resident weights + activations + headroom."""
    weight_bytes = sum(int(a.size) * a.dtype.itemsize for a in args[1:])
    x = args[0]
    io_bytes = 2 * (S * x.shape[-1] * x.dtype.itemsize) + 2 * (S * E * 4)
    act_bytes = 6 * S * E * 4          # p scratch + f32 temporaries
    act_bytes += 4 * S * E * 2         # per-head K/V (bf16), with slack
    act_bytes += 4 * tq * S * 4        # live score / exp tiles
    act_bytes += 4 * tq * E * 4        # per-chunk accumulators
    est = 2 * weight_bytes + io_bytes + act_bytes   # weights double-buffered
    cap = 128 << 20
    try:
        cap = int(pltpu.get_tpu_info().vmem_capacity_bytes)
    except Exception:
        pass
    return int(min(max(est * 2, 32 << 20), int(0.9 * cap)))


# ---------------------- fused TransformerBlock kernel ----------------------
def fused_transformer_block_kernel(*refs, num_heads, num_layers, has_conv,
                                   tq, n_chunks):
    if has_conv:
        (x_ref, cw_ref, cb_ref, lw_ref, lb_ref,
         wq_ref, wk_ref, wv_ref, bq_ref, bk_ref, bv_ref,
         wo_ref, bo_ref, w21_ref, o_ref, p_s) = refs
    else:
        (x_ref, lw_ref, lb_ref,
         wq_ref, wk_ref, wv_ref, bq_ref, bk_ref, bv_ref,
         wo_ref, bo_ref, w21_ref, o_ref, p_s) = refs

    H = num_heads
    x = x_ref[0]                                   # (S, Cin), one batch element

    # ---- Conv(1x1) + folded BN + SiLU ----
    if has_conv:
        y = _matT(x, cw_ref[...]) + cb_ref[...]                     # (S, E) f32
        # SiLU: y * sigmoid(y); reciprocal on the EUP slot (essentially free).
        p0 = y * pl.reciprocal(1.0 + jnp.exp(-y), approx=True)
    else:
        p0 = x.astype(jnp.float32)

    # ---- p + Linear(p), stored into the VMEM activation scratch ----
    p_s[...] = p0 + (_matT(p0, lw_ref[...]) + lb_ref[...])          # (S, E)

    # ---- transformer layers (static unroll, weights resident in VMEM) ----
    for l in range(num_layers):
        p_bf = p_s[...].astype(jnp.bfloat16)       # single bf16 cast per layer

        # Per-head K / V for the full sequence (resident, bf16).  Weights are
        # pre-split per head wrapper-side, so no lane-boundary slices here.
        k_heads, v_heads = [], []
        for h in range(H):
            k_heads.append(
                (_matT(p_bf, wk_ref[l, h]) + bk_ref[l, h]).astype(jnp.bfloat16))
            v_heads.append(
                (_matT(p_bf, wv_ref[l, h]) + bv_ref[l, h]).astype(jnp.bfloat16))

        # Q-tiled attention: the live score tile is (tq, S) per head instead of
        # (H, S, S).  Chunks touch disjoint rows of p_s, so the residual update
        # can be done in place; K/V were computed from the pre-attention p.
        @pl.loop(0, n_chunks)
        def _attn_chunk(ci, _l=l, _k=tuple(k_heads), _v=tuple(v_heads)):
            start = pl.multiple_of(ci * tq, tq)
            rows = p_s[pl.ds(start, tq), :]                         # (tq, E) f32
            rows_bf = rows.astype(jnp.bfloat16)
            acc = rows + bo_ref[_l]            # residual + out_proj bias folded
            for h in range(H):
                # Q projection (1/sqrt(D) already folded into weight + bias)
                q_h = (_matT(rows_bf, wq_ref[_l, h])
                       + bq_ref[_l, h]).astype(jnp.bfloat16)        # (tq, D)
                # scores: contract the minor dim of both operands ('qd,kd->qk')
                s = jax.lax.dot_general(
                    q_h, _k[h], (((1,), (1,)), ((), ())),
                    preferred_element_type=jnp.float32)             # (tq, S)
                s = s - jnp.max(s, axis=-1, keepdims=True)
                e_ = jnp.exp(s)
                pr = (e_ / jnp.sum(e_, axis=-1, keepdims=True)
                      ).astype(jnp.bfloat16)                        # exact softmax
                o_h = _mat(pr, _v[h])                               # (tq, D)
                # head-merge fused into the per-head out-projection weight
                acc = acc + _mat(o_h, wo_ref[_l, h])                # (tq, E)
            p_s[pl.ds(start, tq), :] = acc

        # fc2(fc1(p)) + p with pre-composed W21 = w2 @ w1
        p2 = p_s[...]
        p_s[...] = p2 + _matT(p2, w21_ref[l])

    o_ref[0] = p_s[...]


# ------------------------- weight pre-composition ---------------------------
def _fold_params(params, c2, num_heads):
    bf16, f32 = jnp.bfloat16, jnp.float32
    E = c2
    H = num_heads
    D = E // H
    scl = 1.0 / (D ** 0.5)

    folded = {}
    if params["conv_w"] is not None:
        eps = 1e-5
        scale = params["bn_gamma"] / jnp.sqrt(params["bn_var"] + eps)
        folded["cw"] = (params["conv_w"] * scale[:, None]).astype(bf16)
        folded["cb"] = (params["bn_beta"] -
                        params["bn_mean"] * scale).reshape(1, E).astype(f32)

    folded["lw"] = params["lin_w"].astype(bf16)
    folded["lb"] = params["lin_b"].reshape(1, E).astype(f32)

    wq, wk, wv, bq, bk, bv, wo, bo, w21 = ([] for _ in range(9))
    for lp in params["layers"]:
        wi, bi = lp["wi"], lp["bi"]
        wq_c = (wi[:E] @ lp["wq"]) * scl          # fold 1/sqrt(D) into Q
        wk_c = wi[E:2 * E] @ lp["wk"]
        wv_c = wi[2 * E:] @ lp["wv"]
        wq.append(wq_c.reshape(H, D, E))
        wk.append(wk_c.reshape(H, D, E))
        wv.append(wv_c.reshape(H, D, E))
        bq.append((bi[:E] * scl).reshape(H, 1, D))
        bk.append(bi[E:2 * E].reshape(H, 1, D))
        bv.append(bi[2 * E:].reshape(H, 1, D))
        wo.append(lp["wo"].T.reshape(H, D, E))    # head-merge folded into weight
        bo.append(lp["bo"].reshape(1, E))
        w21.append(lp["w2"] @ lp["w1"])           # fc2 ∘ fc1

    folded["wq"] = jnp.stack(wq).astype(bf16)     # (L, H, D, E)
    folded["wk"] = jnp.stack(wk).astype(bf16)
    folded["wv"] = jnp.stack(wv).astype(bf16)
    folded["bq"] = jnp.stack(bq).astype(f32)      # (L, H, 1, D)
    folded["bk"] = jnp.stack(bk).astype(f32)
    folded["bv"] = jnp.stack(bv).astype(f32)
    folded["wo"] = jnp.stack(wo).astype(bf16)     # (L, H, D, E)
    folded["bo"] = jnp.stack(bo).astype(f32)      # (L, 1, E)
    folded["w21"] = jnp.stack(w21).astype(bf16)   # (L, E, E)
    return folded


# ----------------------------- module forward -------------------------------
def transformer_block_forward(x, params, *, c2, num_heads):
    B, C1, Wd, Hd = x.shape
    S = Wd * Hd
    E = c2
    assert E % num_heads == 0
    has_conv = params["conv_w"] is not None
    cin = C1

    # wrapper-side layout plumbing: NCHW -> (B, S, Cin) token rows.
    # Input is fed bf16 when the conv exists (it is only an MXU operand there).
    x_rows = jnp.transpose(x, (0, 2, 3, 1)).reshape(B, S, cin)
    x_rows = x_rows.astype(jnp.bfloat16 if has_conv else jnp.float32)

    # exact f32 weight composition (only the kernel uses bf16 operands)
    with jax.default_matmul_precision("highest"):
        fp = _fold_params(params, c2, num_heads)

    num_layers = len(params["layers"])
    tq = _pick_tq(S)
    n_chunks = S // tq
    assert tq * n_chunks == S

    args = [x_rows]
    if has_conv:
        args += [fp["cw"], fp["cb"]]
    args += [fp["lw"], fp["lb"],
             fp["wq"], fp["wk"], fp["wv"],
             fp["bq"], fp["bk"], fp["bv"],
             fp["wo"], fp["bo"], fp["w21"]]

    in_specs = [pl.BlockSpec((1, S, cin), lambda b: (b, 0, 0))]
    in_specs += [_weight_spec(a.shape) for a in args[1:]]

    kernel = functools.partial(
        fused_transformer_block_kernel,
        num_heads=num_heads, num_layers=num_layers, has_conv=has_conv,
        tq=tq, n_chunks=n_chunks)

    out = pl.pallas_call(
        kernel,
        out_shape=jax.ShapeDtypeStruct((B, S, E), jnp.float32),
        grid=(B,),
        in_specs=in_specs,
        out_specs=pl.BlockSpec((1, S, E), lambda b: (b, 0, 0)),
        scratch_shapes=[pltpu.VMEM((S, E), jnp.float32)],
        compiler_params=pltpu.CompilerParams(
            dimension_semantics=("parallel",),
            vmem_limit_bytes=_vmem_limit_bytes(args, S, E, tq)),
    )(*args)

    # (B, S, E) -> NCHW
    return out.reshape(B, Wd, Hd, E).transpose(0, 3, 1, 2)


# ----------------------------- reference (pure JAX) --------------------------
def ref_forward(x, params, num_heads):
    B, C1, Wd, Hd = x.shape
    if params["conv_w"] is not None:
        y = jnp.einsum("oc,bcij->boij", params["conv_w"], x)
        eps = 1e-5
        y = (y - params["bn_mean"][None, :, None, None]) / \
            jnp.sqrt(params["bn_var"] + eps)[None, :, None, None]
        y = y * params["bn_gamma"][None, :, None, None] + \
            params["bn_beta"][None, :, None, None]
        x = y * jax.nn.sigmoid(y)
    E = x.shape[1]
    H, D = num_heads, x.shape[1] // num_heads
    p = jnp.transpose(x.reshape(B, E, Wd * Hd), (2, 0, 1))       # (S, B, E)
    p = p + (p @ params["lin_w"].T + params["lin_b"])
    for lp in params["layers"]:
        q_in = p @ lp["wq"].T
        k_in = p @ lp["wk"].T
        v_in = p @ lp["wv"].T
        q = q_in @ lp["wi"][:E].T + lp["bi"][:E]
        k = k_in @ lp["wi"][E:2 * E].T + lp["bi"][E:2 * E]
        v = v_in @ lp["wi"][2 * E:].T + lp["bi"][2 * E:]
        S_ = q.shape[0]
        qh = q.reshape(S_, B, H, D)
        kh = k.reshape(S_, B, H, D)
        vh = v.reshape(S_, B, H, D)
        sc = jnp.einsum("sbhd,tbhd->bhst", qh, kh) / jnp.sqrt(jnp.float32(D))
        a = jax.nn.softmax(sc, axis=-1)
        o = jnp.einsum("bhst,tbhd->sbhd", a, vh).reshape(S_, B, E)
        o = o @ lp["wo"].T + lp["bo"]
        p = o + p
        p = (p @ lp["w1"].T) @ lp["w2"].T + p
    return jnp.transpose(p, (1, 2, 0)).reshape(B, E, Wd, Hd)


# ----------------------------- params ---------------------------------------
def init_params(key, c1, c2, num_layers):
    keys = jax.random.split(key, 4 + num_layers)

    def nrm(k, shape, s=0.1):
        return jax.random.normal(k, shape, jnp.float32) * s

    params = {}
    if c1 != c2:
        params["conv_w"] = nrm(keys[0], (c2, c1), 0.3)
        params["bn_gamma"] = jnp.ones((c2,), jnp.float32)
        params["bn_beta"] = jnp.zeros((c2,), jnp.float32)
        params["bn_mean"] = jnp.zeros((c2,), jnp.float32)
        params["bn_var"] = jnp.ones((c2,), jnp.float32)
    else:
        params["conv_w"] = None
    params["lin_w"] = nrm(keys[1], (c2, c2))
    params["lin_b"] = nrm(keys[2], (c2,))
    layers = []
    for l in range(num_layers):
        lk = jax.random.split(keys[4 + l], 9)
        layers.append(dict(
            wq=nrm(lk[0], (c2, c2)), wk=nrm(lk[1], (c2, c2)),
            wv=nrm(lk[2], (c2, c2)),
            wi=nrm(lk[3], (3 * c2, c2)), bi=nrm(lk[4], (3 * c2,)),
            wo=nrm(lk[5], (c2, c2)), bo=nrm(lk[6], (c2,)),
            w1=nrm(lk[7], (c2, c2)), w2=nrm(lk[8], (c2, c2))))
    params["layers"] = layers
    return params


# ------------------------------ main -----------------------------------------
if __name__ == "__main__":
    B, C1, W, Hh = 2, 4, 8, 8
    C2, NUM_HEADS, NUM_LAYERS = 32, 4, 2

    key = jax.random.PRNGKey(0)
    kx, kp = jax.random.split(key)
    x = jax.random.normal(kx, (B, C1, W, Hh), jnp.float32)
    params = init_params(kp, C1, C2, NUM_LAYERS)

    out = transformer_block_forward(x, params, c2=C2, num_heads=NUM_HEADS)
    out = jax.block_until_ready(out)

    assert out.shape == (B, C2, W, Hh)
    assert bool(jnp.all(jnp.isfinite(out)))

    # exact-f32 reference; kernel uses bf16 MXU operands (+ approx EUP recip for
    # SiLU only), so allow a slightly looser (still tight) tolerance.
    with jax.default_matmul_precision("highest"):
        ref = ref_forward(x, params, NUM_HEADS)
    ref = jax.block_until_ready(ref)
    err = float(jnp.max(jnp.abs(out - ref)))
    assert err < 2e-2, f"max abs err {err}"

    print("KERNEL_OK")
</pallas_src>

<mosaic_0001>
module attributes {stable_mosaic.version = 11 : i64} {
  func.func @fused_transformer_block_kernel(%arg0: i32, %arg1: memref<1x64x4xbf16, #tpu.memory_space<vmem>>, %arg2: memref<32x4xbf16, #tpu.memory_space<vmem>>, %arg3: memref<1x32xf32, #tpu.memory_space<vmem>>, %arg4: memref<32x32xbf16, #tpu.memory_space<vmem>>, %arg5: memref<1x32xf32, #tpu.memory_space<vmem>>, %arg6: memref<2x4x8x32xbf16, #tpu.memory_space<vmem>>, %arg7: memref<2x4x8x32xbf16, #tpu.memory_space<vmem>>, %arg8: memref<2x4x8x32xbf16, #tpu.memory_space<vmem>>, %arg9: memref<2x4x1x8xf32, #tpu.memory_space<vmem>>, %arg10: memref<2x4x1x8xf32, #tpu.memory_space<vmem>>, %arg11: memref<2x4x1x8xf32, #tpu.memory_space<vmem>>, %arg12: memref<2x4x8x32xbf16, #tpu.memory_space<vmem>>, %arg13: memref<2x1x32xf32, #tpu.memory_space<vmem>>, %arg14: memref<2x32x32xbf16, #tpu.memory_space<vmem>>, %arg15: memref<1x64x32xf32, #tpu.memory_space<vmem>>, %arg16: memref<64x32xf32, #tpu.memory_space<vmem>>) attributes {dimension_semantics = [#tpu.dimension_semantics<parallel>], iteration_bounds = array<i64: 2>, scalar_prefetch = 0 : i64, scratch_operands = 1 : i64, tpu.core_type = #tpu.core_type<tc>, window_params = [{transform_indices = @transform_0, window_bounds = array<i64: 1, 64, 4>}, {pipeline_mode = #tpu.pipeline_mode<synchronous>, transform_indices = @transform_1, window_bounds = array<i64: 32, 4>}, {pipeline_mode = #tpu.pipeline_mode<synchronous>, transform_indices = @transform_2, window_bounds = array<i64: 1, 32>}, {pipeline_mode = #tpu.pipeline_mode<synchronous>, transform_indices = @transform_3, window_bounds = array<i64: 32, 32>}, {pipeline_mode = #tpu.pipeline_mode<synchronous>, transform_indices = @transform_4, window_bounds = array<i64: 1, 32>}, {pipeline_mode = #tpu.pipeline_mode<synchronous>, transform_indices = @transform_5, window_bounds = array<i64: 2, 4, 8, 32>}, {pipeline_mode = #tpu.pipeline_mode<synchronous>, transform_indices = @transform_6, window_bounds = array<i64: 2, 4, 8, 32>}, {pipeline_mode = #tpu.pipeline_mode<synchronous>, transform_indices = @transform_7, window_bounds = array<i64: 2, 4, 8, 32>}, {pipeline_mode = #tpu.pipeline_mode<synchronous>, transform_indices = @transform_8, window_bounds = array<i64: 2, 4, 1, 8>}, {pipeline_mode = #tpu.pipeline_mode<synchronous>, transform_indices = @transform_9, window_bounds = array<i64: 2, 4, 1, 8>}, {pipeline_mode = #tpu.pipeline_mode<synchronous>, transform_indices = @transform_10, window_bounds = array<i64: 2, 4, 1, 8>}, {pipeline_mode = #tpu.pipeline_mode<synchronous>, transform_indices = @transform_11, window_bounds = array<i64: 2, 4, 8, 32>}, {pipeline_mode = #tpu.pipeline_mode<synchronous>, transform_indices = @transform_12, window_bounds = array<i64: 2, 1, 32>}, {pipeline_mode = #tpu.pipeline_mode<synchronous>, transform_indices = @transform_13, window_bounds = array<i64: 2, 32, 32>}, {transform_indices = @transform_14, window_bounds = array<i64: 1, 64, 32>}]} {
    %c0 = arith.constant 0 : index
    %c0_0 = arith.constant 0 : index
    %c0_1 = arith.constant 0 : index
    %0 = vector.load %arg1[%c0, %c0_0, %c0_1] : memref<1x64x4xbf16, #tpu.memory_space<vmem>>, vector<1x64x4xbf16>
    %1 = vector.shape_cast %0 : vector<1x64x4xbf16> to vector<64x4xbf16>
    %c0_2 = arith.constant 0 : index
    %c0_3 = arith.constant 0 : index
    %2 = vector.load %arg2[%c0_2, %c0_3] : memref<32x4xbf16, #tpu.memory_space<vmem>>, vector<32x4xbf16>
    %cst = arith.constant dense<0.000000e+00> : vector<64x32xf32>
    %3 = tpu.matmul %1, %2, %cst {dimension_numbers = #tpu.dot_dimension_numbers<[1], [1], [0], [0], [0, 0, 1, 0], [], []>} : vector<64x4xbf16>, vector<32x4xbf16>, vector<64x32xf32> -> vector<64x32xf32>
    %c0_4 = arith.constant 0 : index
    %c0_5 = arith.constant 0 : index
    %4 = vector.load %arg3[%c0_4, %c0_5] : memref<1x32xf32, #tpu.memory_space<vmem>>, vector<1x32xf32>
    %5 = vector.broadcast %4 : vector<1x32xf32> to vector<64x32xf32>
    %6 = arith.addf %3, %5 : vector<64x32xf32>
    %cst_6 = arith.constant 0.000000e+00 : f32
    %7 = vector.broadcast %cst_6 : f32 to vector<64x32xf32>
    %8 = arith.subf %7, %6 : vector<64x32xf32>
    %9 = math.exp %8 : vector<64x32xf32>
    %cst_7 = arith.constant 1.000000e+00 : f32
    %10 = vector.broadcast %cst_7 : f32 to vector<64x32xf32>
    %11 = arith.addf %10, %9 : vector<64x32xf32>
    %12 = tpu.reciprocal %11 {approx = true} : vector<64x32xf32> -> vector<64x32xf32>
    %13 = arith.mulf %6, %12 : vector<64x32xf32>
    %c0_8 = arith.constant 0 : index
    %c0_9 = arith.constant 0 : index
    %14 = vector.load %arg4[%c0_8, %c0_9] : memref<32x32xbf16, #tpu.memory_space<vmem>>, vector<32x32xbf16>
    %15 = arith.truncf %13 : vector<64x32xf32> to vector<64x32xbf16>
    %cst_10 = arith.constant dense<0.000000e+00> : vector<64x32xf32>
    %16 = tpu.matmul %15, %14, %cst_10 {dimension_numbers = #tpu.dot_dimension_numbers<[1], [1], [0], [0], [0, 0, 1, 0], [], []>} : vector<64x32xbf16>, vector<32x32xbf16>, vector<64x32xf32> -> vector<64x32xf32>
    %c0_11 = arith.constant 0 : index
    %c0_12 = arith.constant 0 : index
    %17 = vector.load %arg5[%c0_11, %c0_12] : memref<1x32xf32, #tpu.memory_space<vmem>>, vector<1x32xf32>
    %18 = vector.broadcast %17 : vector<1x32xf32> to vector<64x32xf32>
    %19 = arith.addf %16, %18 : vector<64x32xf32>
    %20 = arith.addf %13, %19 : vector<64x32xf32>
    %c0_13 = arith.constant 0 : index
    %c0_14 = arith.constant 0 : index
    %21 = vector.load %arg16[%c0_13, %c0_14] : memref<64x32xf32, #tpu.memory_space<vmem>>, vector<64x32xf32>
    tpu.vector_store %arg16[%c0_13, %c0_14], %20 {strides = array<i32>} : memref<64x32xf32, #tpu.memory_space<vmem>>, vector<64x32xf32>,
    %c0_15 = arith.constant 0 : index
    %c0_16 = arith.constant 0 : index
    %22 = vector.load %arg16[%c0_15, %c0_16] : memref<64x32xf32, #tpu.memory_space<vmem>>, vector<64x32xf32>
    %23 = arith.truncf %22 : vector<64x32xf32> to vector<64x32xbf16>
    %c0_17 = arith.constant 0 : index
    %c0_18 = arith.constant 0 : index
    %c0_19 = arith.constant 0 : index
    %c0_20 = arith.constant 0 : index
    %24 = vector.load %arg7[%c0_17, %c0_18, %c0_19, %c0_20] : memref<2x4x8x32xbf16, #tpu.memory_space<vmem>>, vector<1x1x8x32xbf16>
    %25 = vector.shape_cast %24 : vector<1x1x8x32xbf16> to vector<8x32xbf16>
    %cst_21 = arith.constant dense<0.000000e+00> : vector<64x8xf32>
    %26 = tpu.matmul %23, %25, %cst_21 {dimension_numbers = #tpu.dot_dimension_numbers<[1], [1], [0], [0], [0, 0, 1, 0], [], []>} : vector<64x32xbf16>, vector<8x32xbf16>, vector<64x8xf32> -> vector<64x8xf32>
    %c0_22 = arith.constant 0 : index
    %c0_23 = arith.constant 0 : index
    %c0_24 = arith.constant 0 : index
    %c0_25 = arith.constant 0 : index
    %27 = vector.load %arg10[%c0_22, %c0_23, %c0_24, %c0_25] : memref<2x4x1x8xf32, #tpu.memory_space<vmem>>, vector<1x1x1x8xf32>
    %28 = vector.shape_cast %27 : vector<1x1x1x8xf32> to vector<1x8xf32>
    %29 = vector.broadcast %28 : vector<1x8xf32> to vector<64x8xf32>
    %30 = arith.addf %26, %29 : vector<64x8xf32>
    %31 = arith.truncf %30 : vector<64x8xf32> to vector<64x8xbf16>
    %c0_26 = arith.constant 0 : index
    %c0_27 = arith.constant 0 : index
    %c0_28 = arith.constant 0 : index
    %c0_29 = arith.constant 0 : index
    %32 = vector.load %arg8[%c0_26, %c0_27, %c0_28, %c0_29] : memref<2x4x8x32xbf16, #tpu.memory_space<vmem>>, vector<1x1x8x32xbf16>
    %33 = vector.shape_cast %32 : vector<1x1x8x32xbf16> to vector<8x32xbf16>
    %cst_30 = arith.constant dense<0.000000e+00> : vector<64x8xf32>
    %34 = tpu.matmul %23, %33, %cst_30 {dimension_numbers = #tpu.dot_dimension_numbers<[1], [1], [0], [0], [0, 0, 1, 0], [], []>} : vector<64x32xbf16>, vector<8x32xbf16>, vector<64x8xf32> -> vector<64x8xf32>
    %c0_31 = arith.constant 0 : index
    %c0_32 = arith.constant 0 : index
    %c0_33 = arith.constant 0 : index
    %c0_34 = arith.constant 0 : index
    %35 = vector.load %arg11[%c0_31, %c0_32, %c0_33, %c0_34] : memref<2x4x1x8xf32, #tpu.memory_space<vmem>>, vector<1x1x1x8xf32>
    %36 = vector.shape_cast %35 : vector<1x1x1x8xf32> to vector<1x8xf32>
    %37 = vector.broadcast %36 : vector<1x8xf32> to vector<64x8xf32>
    %38 = arith.addf %34, %37 : vector<64x8xf32>
    %39 = arith.truncf %38 : vector<64x8xf32> to vector<64x8xbf16>
    %c0_35 = arith.constant 0 : index
    %c1 = arith.constant 1 : index
    %c0_36 = arith.constant 0 : index
    %c0_37 = arith.constant 0 : index
    %40 = vector.load %arg7[%c0_35, %c1, %c0_36, %c0_37] : memref<2x4x8x32xbf16, #tpu.memory_space<vmem>>, vector<1x1x8x32xbf16>
    %41 = vector.shape_cast %40 : vector<1x1x8x32xbf16> to vector<8x32xbf16>
    %cst_38 = arith.constant dense<0.000000e+00> : vector<64x8xf32>
    %42 = tpu.matmul %23, %41, %cst_38 {dimension_numbers = #tpu.dot_dimension_numbers<[1], [1], [0], [0], [0, 0, 1, 0], [], []>} : vector<64x32xbf16>, vector<8x32xbf16>, vector<64x8xf32> -> vector<64x8xf32>
    %c0_39 = arith.constant 0 : index
    %c1_40 = arith.constant 1 : index
    %c0_41 = arith.constant 0 : index
    %c0_42 = arith.constant 0 : index
    %43 = vector.load %arg10[%c0_39, %c1_40, %c0_41, %c0_42] : memref<2x4x1x8xf32, #tpu.memory_space<vmem>>, vector<1x1x1x8xf32>
    %44 = vector.shape_cast %43 : vector<1x1x1x8xf32> to vector<1x8xf32>
    %45 = vector.broadcast %44 : vector<1x8xf32> to vector<64x8xf32>
    %46 = arith.addf %42, %45 : vector<64x8xf32>
    %47 = arith.truncf %46 : vector<64x8xf32> to vector<64x8xbf16>
    %c0_43 = arith.constant 0 : index
    %c1_44 = arith.constant 1 : index
    %c0_45 = arith.constant 0 : index
    %c0_46 = arith.constant 0 : index
    %48 = vector.load %arg8[%c0_43, %c1_44, %c0_45, %c0_46] : memref<2x4x8x32xbf16, #tpu.memory_space<vmem>>, vector<1x1x8x32xbf16>
    %49 = vector.shape_cast %48 : vector<1x1x8x32xbf16> to vector<8x32xbf16>
    %cst_47 = arith.constant dense<0.000000e+00> : vector<64x8xf32>
    %50 = tpu.matmul %23, %49, %cst_47 {dimension_numbers = #tpu.dot_dimension_numbers<[1], [1], [0], [0], [0, 0, 1, 0], [], []>} : vector<64x32xbf16>, vector<8x32xbf16>, vector<64x8xf32> -> vector<64x8xf32>
    %c0_48 = arith.constant 0 : index
    %c1_49 = arith.constant 1 : index
    %c0_50 = arith.constant 0 : index
    %c0_51 = arith.constant 0 : index
    %51 = vector.load %arg11[%c0_48, %c1_49, %c0_50, %c0_51] : memref<2x4x1x8xf32, #tpu.memory_space<vmem>>, vector<1x1x1x8xf32>
    %52 = vector.shape_cast %51 : vector<1x1x1x8xf32> to vector<1x8xf32>
    %53 = vector.broadcast %52 : vector<1x8xf32> to vector<64x8xf32>
    %54 = arith.addf %50, %53 : vector<64x8xf32>
    %55 = arith.truncf %54 : vector<64x8xf32> to vector<64x8xbf16>
    %c0_52 = arith.constant 0 : index
    %c2 = arith.constant 2 : index
    %c0_53 = arith.constant 0 : index
    %c0_54 = arith.constant 0 : index
    %56 = vector.load %arg7[%c0_52, %c2, %c0_53, %c0_54] : memref<2x4x8x32xbf16, #tpu.memory_space<vmem>>, vector<1x1x8x32xbf16>
    %57 = vector.shape_cast %56 : vector<1x1x8x32xbf16> to vector<8x32xbf16>
    %cst_55 = arith.constant dense<0.000000e+00> : vector<64x8xf32>
    %58 = tpu.matmul %23, %57, %cst_55 {dimension_numbers = #tpu.dot_dimension_numbers<[1], [1], [0], [0], [0, 0, 1, 0], [], []>} : vector<64x32xbf16>, vector<8x32xbf16>, vector<64x8xf32> -> vector<64x8xf32>
    %c0_56 = arith.constant 0 : index
    %c2_57 = arith.constant 2 : index
    %c0_58 = arith.constant 0 : index
    %c0_59 = arith.constant 0 : index
    %59 = vector.load %arg10[%c0_56, %c2_57, %c0_58, %c0_59] : memref<2x4x1x8xf32, #tpu.memory_space<vmem>>, vector<1x1x1x8xf32>
    %60 = vector.shape_cast %59 : vector<1x1x1x8xf32> to vector<1x8xf32>
    %61 = vector.broadcast %60 : vector<1x8xf32> to vector<64x8xf32>
    %62 = arith.addf %58, %61 : vector<64x8xf32>
    %63 = arith.truncf %62 : vector<64x8xf32> to vector<64x8xbf16>
    %c0_60 = arith.constant 0 : index
    %c2_61 = arith.constant 2 : index
    %c0_62 = arith.constant 0 : index
    %c0_63 = arith.constant 0 : index
    %64 = vector.load %arg8[%c0_60, %c2_61, %c0_62, %c0_63] : memref<2x4x8x32xbf16, #tpu.memory_space<vmem>>, vector<1x1x8x32xbf16>
    %65 = vector.shape_cast %64 : vector<1x1x8x32xbf16> to vector<8x32xbf16>
    %cst_64 = arith.constant dense<0.000000e+00> : vector<64x8xf32>
    %66 = tpu.matmul %23, %65, %cst_64 {dimension_numbers = #tpu.dot_dimension_numbers<[1], [1], [0], [0], [0, 0, 1, 0], [], []>} : vector<64x32xbf16>, vector<8x32xbf16>, vector<64x8xf32> -> vector<64x8xf32>
    %c0_65 = arith.constant 0 : index
    %c2_66 = arith.constant 2 : index
    %c0_67 = arith.constant 0 : index
    %c0_68 = arith.constant 0 : index
    %67 = vector.load %arg11[%c0_65, %c2_66, %c0_67, %c0_68] : memref<2x4x1x8xf32, #tpu.memory_space<vmem>>, vector<1x1x1x8xf32>
    %68 = vector.shape_cast %67 : vector<1x1x1x8xf32> to vector<1x8xf32>
    %69 = vector.broadcast %68 : vector<1x8xf32> to vector<64x8xf32>
    %70 = arith.addf %66, %69 : vector<64x8xf32>
    %71 = arith.truncf %70 : vector<64x8xf32> to vector<64x8xbf16>
    %c0_69 = arith.constant 0 : index
    %c3 = arith.constant 3 : index
    %c0_70 = arith.constant 0 : index
    %c0_71 = arith.constant 0 : index
    %72 = vector.load %arg7[%c0_69, %c3, %c0_70, %c0_71] : memref<2x4x8x32xbf16, #tpu.memory_space<vmem>>, vector<1x1x8x32xbf16>
    %73 = vector.shape_cast %72 : vector<1x1x8x32xbf16> to vector<8x32xbf16>
    %cst_72 = arith.constant dense<0.000000e+00> : vector<64x8xf32>
    %74 = tpu.matmul %23, %73, %cst_72 {dimension_numbers = #tpu.dot_dimension_numbers<[1], [1], [0], [0], [0, 0, 1, 0], [], []>} : vector<64x32xbf16>, vector<8x32xbf16>, vector<64x8xf32> -> vector<64x8xf32>
    %c0_73 = arith.constant 0 : index
    %c3_74 = arith.constant 3 : index
    %c0_75 = arith.constant 0 : index
    %c0_76 = arith.constant 0 : index
    %75 = vector.load %arg10[%c0_73, %c3_74, %c0_75, %c0_76] : memref<2x4x1x8xf32, #tpu.memory_space<vmem>>, vector<1x1x1x8xf32>
    %76 = vector.shape_cast %75 : vector<1x1x1x8xf32> to vector<1x8xf32>
    %77 = vector.broadcast %76 : vector<1x8xf32> to vector<64x8xf32>
    %78 = arith.addf %74, %77 : vector<64x8xf32>
    %79 = arith.truncf %78 : vector<64x8xf32> to vector<64x8xbf16>
    %c0_77 = arith.constant 0 : index
    %c3_78 = arith.constant 3 : index
    %c0_79 = arith.constant 0 : index
    %c0_80 = arith.constant 0 : index
    %80 = vector.load %arg8[%c0_77, %c3_78, %c0_79, %c0_80] : memref<2x4x8x32xbf16, #tpu.memory_space<vmem>>, vector<1x1x8x32xbf16>
    %81 = vector.shape_cast %80 : vector<1x1x8x32xbf16> to vector<8x32xbf16>
    %cst_81 = arith.constant dense<0.000000e+00> : vector<64x8xf32>
    %82 = tpu.matmul %23, %81, %cst_81 {dimension_numbers = #tpu.dot_dimension_numbers<[1], [1], [0], [0], [0, 0, 1, 0], [], []>} : vector<64x32xbf16>, vector<8x32xbf16>, vector<64x8xf32> -> vector<64x8xf32>
    %c0_82 = arith.constant 0 : index
    %c3_83 = arith.constant 3 : index
    %c0_84 = arith.constant 0 : index
    %c0_85 = arith.constant 0 : index
    %83 = vector.load %arg11[%c0_82, %c3_83, %c0_84, %c0_85] : memref<2x4x1x8xf32, #tpu.memory_space<vmem>>, vector<1x1x1x8xf32>
    %84 = vector.shape_cast %83 : vector<1x1x1x8xf32> to vector<1x8xf32>
    %85 = vector.broadcast %84 : vector<1x8xf32> to vector<64x8xf32>
    %86 = arith.addf %82, %85 : vector<64x8xf32>
    %87 = arith.truncf %86 : vector<64x8xf32> to vector<64x8xbf16>
    %c0_i32 = arith.constant 0 : i32
    %c1_i32 = arith.constant 1 : i32
    %88 = arith.muli %c0_i32, %c1_i32 : i32
    %c0_i32_86 = arith.constant 0 : i32
    %89 = arith.addi %c0_i32_86, %88 : i32
    %c64_i32 = arith.constant 64 : i32
    %90 = arith.muli %89, %c64_i32 : i32
    %91 = tpu.assume_multiple %90, 64 : i32
    %92 = arith.index_cast %91 : i32 to index
    %c0_87 = arith.constant 0 : index
    %93 = vector.load %arg16[%92, %c0_87] : memref<64x32xf32, #tpu.memory_space<vmem>>, vector<64x32xf32>
    %94 = arith.truncf %93 : vector<64x32xf32> to vector<64x32xbf16>
    %c0_88 = arith.constant 0 : index
    %c0_89 = arith.constant 0 : index
    %c0_90 = arith.constant 0 : index
    %95 = vector.load %arg13[%c0_88, %c0_89, %c0_90] : memref<2x1x32xf32, #tpu.memory_space<vmem>>, vector<1x1x32xf32>
    %96 = vector.shape_cast %95 : vector<1x1x32xf32> to vector<1x32xf32>
    %97 = vector.broadcast %96 : vector<1x32xf32> to vector<64x32xf32>
    %98 = arith.addf %93, %97 : vector<64x32xf32>
    %c0_91 = arith.constant 0 : index
    %c0_92 = arith.constant 0 : index
    %c0_93 = arith.constant 0 : index
    %c0_94 = arith.constant 0 : index
    %99 = vector.load %arg6[%c0_91, %c0_92, %c0_93, %c0_94] : memref<2x4x8x32xbf16, #tpu.memory_space<vmem>>, vector<1x1x8x32xbf16>
    %100 = vector.shape_cast %99 : vector<1x1x8x32xbf16> to vector<8x32xbf16>
    %cst_95 = arith.constant dense<0.000000e+00> : vector<64x8xf32>
    %101 = tpu.matmul %94, %100, %cst_95 {dimension_numbers = #tpu.dot_dimension_numbers<[1], [1], [0], [0], [0, 0, 1, 0], [], []>} : vector<64x32xbf16>, vector<8x32xbf16>, vector<64x8xf32> -> vector<64x8xf32>
    %c0_96 = arith.constant 0 : index
    %c0_97 = arith.constant 0 : index
    %c0_98 = arith.constant 0 : index
    %c0_99 = arith.constant 0 : index
    %102 = vector.load %arg9[%c0_96, %c0_97, %c0_98, %c0_99] : memref<2x4x1x8xf32, #tpu.memory_space<vmem>>, vector<1x1x1x8xf32>
    %103 = vector.shape_cast %102 : vector<1x1x1x8xf32> to vector<1x8xf32>
    %104 = vector.broadcast %103 : vector<1x8xf32> to vector<64x8xf32>
    %105 = arith.addf %101, %104 : vector<64x8xf32>
    %106 = arith.truncf %105 : vector<64x8xf32> to vector<64x8xbf16>
    %cst_100 = arith.constant dense<0.000000e+00> : vector<64x64xf32>
    %107 = tpu.matmul %106, %31, %cst_100 {dimension_numbers = #tpu.dot_dimension_numbers<[1], [1], [0], [0], [0, 0, 1, 0], [], []>} : vector<64x8xbf16>, vector<64x8xbf16>, vector<64x64xf32> -> vector<64x64xf32>
    %cst_101 = arith.constant dense<0xFF800000> : vector<64xf32>
    %108 = vector.multi_reduction <maximumf>, %107, %cst_101 [1] : vector<64x64xf32> to vector<64xf32>
    %109 = vector.shape_cast %108 : vector<64xf32> to vector<64x1xf32>
    %110 = vector.broadcast %109 : vector<64x1xf32> to vector<64x64xf32>
    %111 = arith.subf %107, %110 : vector<64x64xf32>
    %112 = math.exp %111 : vector<64x64xf32>
    %cst_102 = arith.constant dense<0.000000e+00> : vector<64xf32>
    %113 = vector.multi_reduction <add>, %112, %cst_102 [1] : vector<64x64xf32> to vector<64xf32>
    %114 = vector.shape_cast %113 : vector<64xf32> to vector<64x1xf32>
    %115 = vector.broadcast %114 : vector<64x1xf32> to vector<64x64xf32>
    %116 = arith.divf %112, %115 : vector<64x64xf32>
    %117 = arith.truncf %116 : vector<64x64xf32> to vector<64x64xbf16>
    %cst_103 = arith.constant dense<0.000000e+00> : vector<64x8xf32>
    %118 = tpu.matmul %117, %39, %cst_103 {dimension_numbers = #tpu.dot_dimension_numbers<[1], [0], [0], [1], [0, 0, 1, 1], [], []>} : vector<64x64xbf16>, vector<64x8xbf16>, vector<64x8xf32> -> vector<64x8xf32>
    %c0_104 = arith.constant 0 : index
    %c0_105 = arith.constant 0 : index
    %c0_106 = arith.constant 0 : index
    %c0_107 = arith.constant 0 : index
    %119 = vector.load %arg12[%c0_104, %c0_105, %c0_106, %c0_107] : memref<2x4x8x32xbf16, #tpu.memory_space<vmem>>, vector<1x1x8x32xbf16>
    %120 = vector.shape_cast %119 : vector<1x1x8x32xbf16> to vector<8x32xbf16>
    %121 = arith.truncf %118 : vector<64x8xf32> to vector<64x8xbf16>
    %cst_108 = arith.constant dense<0.000000e+00> : vector<64x32xf32>
    %122 = tpu.matmul %121, %120, %cst_108 {dimension_numbers = #tpu.dot_dimension_numbers<[1], [0], [0], [1], [0, 0, 1, 1], [], []>} : vector<64x8xbf16>, vector<8x32xbf16>, vector<64x32xf32> -> vector<64x32xf32>
    %123 = arith.addf %98, %122 : vector<64x32xf32>
    %c0_109 = arith.constant 0 : index
    %c1_110 = arith.constant 1 : index
    %c0_111 = arith.constant 0 : index
    %c0_112 = arith.constant 0 : index
    %124 = vector.load %arg6[%c0_109, %c1_110, %c0_111, %c0_112] : memref<2x4x8x32xbf16, #tpu.memory_space<vmem>>, vector<1x1x8x32xbf16>
    %125 = vector.shape_cast %124 : vector<1x1x8x32xbf16> to vector<8x32xbf16>
    %cst_113 = arith.constant dense<0.000000e+00> : vector<64x8xf32>
    %126 = tpu.matmul %94, %125, %cst_113 {dimension_numbers = #tpu.dot_dimension_numbers<[1], [1], [0], [0], [0, 0, 1, 0], [], []>} : vector<64x32xbf16>, vector<8x32xbf16>, vector<64x8xf32> -> vector<64x8xf32>
    %c0_114 = arith.constant 0 : index
    %c1_115 = arith.constant 1 : index
    %c0_116 = arith.constant 0 : index
    %c0_117 = arith.constant 0 : index
    %127 = vector.load %arg9[%c0_114, %c1_115, %c0_116, %c0_117] : memref<2x4x1x8xf32, #tpu.memory_space<vmem>>, vector<1x1x1x8xf32>
    %128 = vector.shape_cast %127 : vector<1x1x1x8xf32> to vector<1x8xf32>
    %129 = vector.broadcast %128 : vector<1x8xf32> to vector<64x8xf32>
    %130 = arith.addf %126, %129 : vector<64x8xf32>
    %131 = arith.truncf %130 : vector<64x8xf32> to vector<64x8xbf16>
    %cst_118 = arith.constant dense<0.000000e+00> : vector<64x64xf32>
    %132 = tpu.matmul %131, %47, %cst_118 {dimension_numbers = #tpu.dot_dimension_numbers<[1], [1], [0], [0], [0, 0, 1, 0], [], []>} : vector<64x8xbf16>, vector<64x8xbf16>, vector<64x64xf32> -> vector<64x64xf32>
    %cst_119 = arith.constant dense<0xFF800000> : vector<64xf32>
    %133 = vector.multi_reduction <maximumf>, %132, %cst_119 [1] : vector<64x64xf32> to vector<64xf32>
    %134 = vector.shape_cast %133 : vector<64xf32> to vector<64x1xf32>
    %135 = vector.broadcast %134 : vector<64x1xf32> to vector<64x64xf32>
    %136 = arith.subf %132, %135 : vector<64x64xf32>
    %137 = math.exp %136 : vector<64x64xf32>
    %cst_120 = arith.constant dense<0.000000e+00> : vector<64xf32>
    %138 = vector.multi_reduction <add>, %137, %cst_120 [1] : vector<64x64xf32> to vector<64xf32>
    %139 = vector.shape_cast %138 : vector<64xf32> to vector<64x1xf32>
    %140 = vector.broadcast %139 : vector<64x1xf32> to vector<64x64xf32>
    %141 = arith.divf %137, %140 : vector<64x64xf32>
    %142 = arith.truncf %141 : vector<64x64xf32> to vector<64x64xbf16>
    %cst_121 = arith.constant dense<0.000000e+00> : vector<64x8xf32>
    %143 = tpu.matmul %142, %55, %cst_121 {dimension_numbers = #tpu.dot_dimension_numbers<[1], [0], [0], [1], [0, 0, 1, 1], [], []>} : vector<64x64xbf16>, vector<64x8xbf16>, vector<64x8xf32> -> vector<64x8xf32>
    %c0_122 = arith.constant 0 : index
    %c1_123 = arith.constant 1 : index
    %c0_124 = arith.constant 0 : index
    %c0_125 = arith.constant 0 : index
    %144 = vector.load %arg12[%c0_122, %c1_123, %c0_124, %c0_125] : memref<2x4x8x32xbf16, #tpu.memory_space<vmem>>, vector<1x1x8x32xbf16>
    %145 = vector.shape_cast %144 : vector<1x1x8x32xbf16> to vector<8x32xbf16>
    %146 = arith.truncf %143 : vector<64x8xf32> to vector<64x8xbf16>
    %cst_126 = arith.constant dense<0.000000e+00> : vector<64x32xf32>
    %147 = tpu.matmul %146, %145, %cst_126 {dimension_numbers = #tpu.dot_dimension_numbers<[1], [0], [0], [1], [0, 0, 1, 1], [], []>} : vector<64x8xbf16>, vector<8x32xbf16>, vector<64x32xf32> -> vector<64x32xf32>
    %148 = arith.addf %123, %147 : vector<64x32xf32>
    %c0_127 = arith.constant 0 : index
    %c2_128 = arith.constant 2 : index
    %c0_129 = arith.constant 0 : index
    %c0_130 = arith.constant 0 : index
    %149 = vector.load %arg6[%c0_127, %c2_128, %c0_129, %c0_130] : memref<2x4x8x32xbf16, #tpu.memory_space<vmem>>, vector<1x1x8x32xbf16>
    %150 = vector.shape_cast %149 : vector<1x1x8x32xbf16> to vector<8x32xbf16>
    %cst_131 = arith.constant dense<0.000000e+00> : vector<64x8xf32>
    %151 = tpu.matmul %94, %150, %cst_131 {dimension_numbers = #tpu.dot_dimension_numbers<[1], [1], [0], [0], [0, 0, 1, 0], [], []>} : vector<64x32xbf16>, vector<8x32xbf16>, vector<64x8xf32> -> vector<64x8xf32>
    %c0_132 = arith.constant 0 : index
    %c2_133 = arith.constant 2 : index
    %c0_134 = arith.constant 0 : index
    %c0_135 = arith.constant 0 : index
    %152 = vector.load %arg9[%c0_132, %c2_133, %c0_134, %c0_135] : memref<2x4x1x8xf32, #tpu.memory_space<vmem>>, vector<1x1x1x8xf32>
    %153 = vector.shape_cast %152 : vector<1x1x1x8xf32> to vector<1x8xf32>
    %154 = vector.broadcast %153 : vector<1x8xf32> to vector<64x8xf32>
    %155 = arith.addf %151, %154 : vector<64x8xf32>
    %156 = arith.truncf %155 : vector<64x8xf32> to vector<64x8xbf16>
    %cst_136 = arith.constant dense<0.000000e+00> : vector<64x64xf32>
    %157 = tpu.matmul %156, %63, %cst_136 {dimension_numbers = #tpu.dot_dimension_numbers<[1], [1], [0], [0], [0, 0, 1, 0], [], []>} : vector<64x8xbf16>, vector<64x8xbf16>, vector<64x64xf32> -> vector<64x64xf32>
    %cst_137 = arith.constant dense<0xFF800000> : vector<64xf32>
    %158 = vector.multi_reduction <maximumf>, %157, %cst_137 [1] : vector<64x64xf32> to vector<64xf32>
    %159 = vector.shape_cast %158 : vector<64xf32> to vector<64x1xf32>
    %160 = vector.broadcast %159 : vector<64x1xf32> to vector<64x64xf32>
    %161 = arith.subf %157, %160 : vector<64x64xf32>
    %162 = math.exp %161 : vector<64x64xf32>
    %cst_138 = arith.constant dense<0.000000e+00> : vector<64xf32>
    %163 = vector.multi_reduction <add>, %162, %cst_138 [1] : vector<64x64xf32> to vector<64xf32>
    %164 = vector.shape_cast %163 : vector<64xf32> to vector<64x1xf32>
    %165 = vector.broadcast %164 : vector<64x1xf32> to vector<64x64xf32>
    %166 = arith.divf %162, %165 : vector<64x64xf32>
    %167 = arith.truncf %166 : vector<64x64xf32> to vector<64x64xbf16>
    %cst_139 = arith.constant dense<0.000000e+00> : vector<64x8xf32>
    %168 = tpu.matmul %167, %71, %cst_139 {dimension_numbers = #tpu.dot_dimension_numbers<[1], [0], [0], [1], [0, 0, 1, 1], [], []>} : vector<64x64xbf16>, vector<64x8xbf16>, vector<64x8xf32> -> vector<64x8xf32>
    %c0_140 = arith.constant 0 : index
    %c2_141 = arith.constant 2 : index
    %c0_142 = arith.constant 0 : index
    %c0_143 = arith.constant 0 : index
    %169 = vector.load %arg12[%c0_140, %c2_141, %c0_142, %c0_143] : memref<2x4x8x32xbf16, #tpu.memory_space<vmem>>, vector<1x1x8x32xbf16>
    %170 = vector.shape_cast %169 : vector<1x1x8x32xbf16> to vector<8x32xbf16>
    %171 = arith.truncf %168 : vector<64x8xf32> to vector<64x8xbf16>
    %cst_144 = arith.constant dense<0.000000e+00> : vector<64x32xf32>
    %172 = tpu.matmul %171, %170, %cst_144 {dimension_numbers = #tpu.dot_dimension_numbers<[1], [0], [0], [1], [0, 0, 1, 1], [], []>} : vector<64x8xbf16>, vector<8x32xbf16>, vector<64x32xf32> -> vector<64x32xf32>
    %173 = arith.addf %148, %172 : vector<64x32xf32>
    %c0_145 = arith.constant 0 : index
    %c3_146 = arith.constant 3 : index
    %c0_147 = arith.constant 0 : index
    %c0_148 = arith.constant 0 : index
    %174 = vector.load %arg6[%c0_145, %c3_146, %c0_147, %c0_148] : memref<2x4x8x32xbf16, #tpu.memory_space<vmem>>, vector<1x1x8x32xbf16>
    %175 = vector.shape_cast %174 : vector<1x1x8x32xbf16> to vector<8x32xbf16>
    %cst_149 = arith.constant dense<0.000000e+00> : vector<64x8xf32>
    %176 = tpu.matmul %94, %175, %cst_149 {dimension_numbers = #tpu.dot_dimension_numbers<[1], [1], [0], [0], [0, 0, 1, 0], [], []>} : vector<64x32xbf16>, vector<8x32xbf16>, vector<64x8xf32> -> vector<64x8xf32>
    %c0_150 = arith.constant 0 : index
    %c3_151 = arith.constant 3 : index
    %c0_152 = arith.constant 0 : index
    %c0_153 = arith.constant 0 : index
    %177 = vector.load %arg9[%c0_150, %c3_151, %c0_152, %c0_153] : memref<2x4x1x8xf32, #tpu.memory_space<vmem>>, vector<1x1x1x8xf32>
    %178 = vector.shape_cast %177 : vector<1x1x1x8xf32> to vector<1x8xf32>
    %179 = vector.broadcast %178 : vector<1x8xf32> to vector<64x8xf32>
    %180 = arith.addf %176, %179 : vector<64x8xf32>
    %181 = arith.truncf %180 : vector<64x8xf32> to vector<64x8xbf16>
    %cst_154 = arith.constant dense<0.000000e+00> : vector<64x64xf32>
    %182 = tpu.matmul %181, %79, %cst_154 {dimension_numbers = #tpu.dot_dimension_numbers<[1], [1], [0], [0], [0, 0, 1, 0], [], []>} : vector<64x8xbf16>, vector<64x8xbf16>, vector<64x64xf32> -> vector<64x64xf32>
    %cst_155 = arith.constant dense<0xFF800000> : vector<64xf32>
    %183 = vector.multi_reduction <maximumf>, %182, %cst_155 [1] : vector<64x64xf32> to vector<64xf32>
    %184 = vector.shape_cast %183 : vector<64xf32> to vector<64x1xf32>
    %185 = vector.broadcast %184 : vector<64x1xf32> to vector<64x64xf32>
    %186 = arith.subf %182, %185 : vector<64x64xf32>
    %187 = math.exp %186 : vector<64x64xf32>
    %cst_156 = arith.constant dense<0.000000e+00> : vector<64xf32>
    %188 = vector.multi_reduction <add>, %187, %cst_156 [1] : vector<64x64xf32> to vector<64xf32>
    %189 = vector.shape_cast %188 : vector<64xf32> to vector<64x1xf32>
    %190 = vector.broadcast %189 : vector<64x1xf32> to vector<64x64xf32>
    %191 = arith.divf %187, %190 : vector<64x64xf32>
    %192 = arith.truncf %191 : vector<64x64xf32> to vector<64x64xbf16>
    %cst_157 = arith.constant dense<0.000000e+00> : vector<64x8xf32>
    %193 = tpu.matmul %192, %87, %cst_157 {dimension_numbers = #tpu.dot_dimension_numbers<[1], [0], [0], [1], [0, 0, 1, 1], [], []>} : vector<64x64xbf16>, vector<64x8xbf16>, vector<64x8xf32> -> vector<64x8xf32>
    %c0_158 = arith.constant 0 : index
    %c3_159 = arith.constant 3 : index
    %c0_160 = arith.constant 0 : index
    %c0_161 = arith.constant 0 : index
    %194 = vector.load %arg12[%c0_158, %c3_159, %c0_160, %c0_161] : memref<2x4x8x32xbf16, #tpu.memory_space<vmem>>, vector<1x1x8x32xbf16>
    %195 = vector.shape_cast %194 : vector<1x1x8x32xbf16> to vector<8x32xbf16>
    %196 = arith.truncf %193 : vector<64x8xf32> to vector<64x8xbf16>
    %cst_162 = arith.constant dense<0.000000e+00> : vector<64x32xf32>
    %197 = tpu.matmul %196, %195, %cst_162 {dimension_numbers = #tpu.dot_dimension_numbers<[1], [0], [0], [1], [0, 0, 1, 1], [], []>} : vector<64x8xbf16>, vector<8x32xbf16>, vector<64x32xf32> -> vector<64x32xf32>
    %198 = arith.addf %173, %197 : vector<64x32xf32>
    %199 = arith.index_cast %91 : i32 to index
    %c0_163 = arith.constant 0 : index
    %200 = vector.load %arg16[%199, %c0_163] : memref<64x32xf32, #tpu.memory_space<vmem>>, vector<64x32xf32>
    tpu.vector_store %arg16[%199, %c0_163], %198 {strides = array<i32>} : memref<64x32xf32, #tpu.memory_space<vmem>>, vector<64x32xf32>,
    %c1_i32_164 = arith.constant 1 : i32
    %c0_165 = arith.constant 0 : index
    %c0_166 = arith.constant 0 : index
    %201 = vector.load %arg16[%c0_165, %c0_166] : memref<64x32xf32, #tpu.memory_space<vmem>>, vector<64x32xf32>
    %c0_167 = arith.constant 0 : index
    %c0_168 = arith.constant 0 : index
    %c0_169 = arith.constant 0 : index
    %202 = vector.load %arg14[%c0_167, %c0_168, %c0_169] : memref<2x32x32xbf16, #tpu.memory_space<vmem>>, vector<1x32x32xbf16>
    %203 = vector.shape_cast %202 : vector<1x32x32xbf16> to vector<32x32xbf16>
    %204 = arith.truncf %201 : vector<64x32xf32> to vector<64x32xbf16>
    %cst_170 = arith.constant dense<0.000000e+00> : vector<64x32xf32>
    %205 = tpu.matmul %204, %203, %cst_170 {dimension_numbers = #tpu.dot_dimension_numbers<[1], [1], [0], [0], [0, 0, 1, 0], [], []>} : vector<64x32xbf16>, vector<32x32xbf16>, vector<64x32xf32> -> vector<64x32xf32>
    %206 = arith.addf %201, %205 : vector<64x32xf32>
    %c0_171 = arith.constant 0 : index
    %c0_172 = arith.constant 0 : index
    %207 = vector.load %arg16[%c0_171, %c0_172] : memref<64x32xf32, #tpu.memory_space<vmem>>, vector<64x32xf32>
    tpu.vector_store %arg16[%c0_171, %c0_172], %206 {strides = array<i32>} : memref<64x32xf32, #tpu.memory_space<vmem>>, vector<64x32xf32>,
    %c0_173 = arith.constant 0 : index
    %c0_174 = arith.constant 0 : index
    %208 = vector.load %arg16[%c0_173, %c0_174] : memref<64x32xf32, #tpu.memory_space<vmem>>, vector<64x32xf32>
    %209 = arith.truncf %208 : vector<64x32xf32> to vector<64x32xbf16>
    %c1_175 = arith.constant 1 : index
    %c0_176 = arith.constant 0 : index
    %c0_177 = arith.constant 0 : index
    %c0_178 = arith.constant 0 : index
    %210 = vector.load %arg7[%c1_175, %c0_176, %c0_177, %c0_178] : memref<2x4x8x32xbf16, #tpu.memory_space<vmem>>, vector<1x1x8x32xbf16>
    %211 = vector.shape_cast %210 : vector<1x1x8x32xbf16> to vector<8x32xbf16>
    %cst_179 = arith.constant dense<0.000000e+00> : vector<64x8xf32>
    %212 = tpu.matmul %209, %211, %cst_179 {dimension_numbers = #tpu.dot_dimension_numbers<[1], [1], [0], [0], [0, 0, 1, 0], [], []>} : vector<64x32xbf16>, vector<8x32xbf16>, vector<64x8xf32> -> vector<64x8xf32>
    %c1_180 = arith.constant 1 : index
    %c0_181 = arith.constant 0 : index
    %c0_182 = arith.constant 0 : index
    %c0_183 = arith.constant 0 : index
    %213 = vector.load %arg10[%c1_180, %c0_181, %c0_182, %c0_183] : memref<2x4x1x8xf32, #tpu.memory_space<vmem>>, vector<1x1x1x8xf32>
    %214 = vector.shape_cast %213 : vector<1x1x1x8xf32> to vector<1x8xf32>
    %215 = vector.broadcast %214 : vector<1x8xf32> to vector<64x8xf32>
    %216 = arith.addf %212, %215 : vector<64x8xf32>
    %217 = arith.truncf %216 : vector<64x8xf32> to vector<64x8xbf16>
    %c1_184 = arith.constant 1 : index
    %c0_185 = arith.constant 0 : index
    %c0_186 = arith.constant 0 : index
    %c0_187 = arith.constant 0 : index
    %218 = vector.load %arg8[%c1_184, %c0_185, %c0_186, %c0_187] : memref<2x4x8x32xbf16, #tpu.memory_space<vmem>>, vector<1x1x8x32xbf16>
    %219 = vector.shape_cast %218 : vector<1x1x8x32xbf16> to vector<8x32xbf16>
    %cst_188 = arith.constant dense<0.000000e+00> : vector<64x8xf32>
    %220 = tpu.matmul %209, %219, %cst_188 {dimension_numbers = #tpu.dot_dimension_numbers<[1], [1], [0], [0], [0, 0, 1, 0], [], []>} : vector<64x32xbf16>, vector<8x32xbf16>, vector<64x8xf32> -> vector<64x8xf32>
    %c1_189 = arith.constant 1 : index
    %c0_190 = arith.constant 0 : index
    %c0_191 = arith.constant 0 : index
    %c0_192 = arith.constant 0 : index
    %221 = vector.load %arg11[%c1_189, %c0_190, %c0_191, %c0_192] : memref<2x4x1x8xf32, #tpu.memory_space<vmem>>, vector<1x1x1x8xf32>
    %222 = vector.shape_cast %221 : vector<1x1x1x8xf32> to vector<1x8xf32>
    %223 = vector.broadcast %222 : vector<1x8xf32> to vector<64x8xf32>
    %224 = arith.addf %220, %223 : vector<64x8xf32>
    %225 = arith.truncf %224 : vector<64x8xf32> to vector<64x8xbf16>
    %c1_193 = arith.constant 1 : index
    %c1_194 = arith.constant 1 : index
    %c0_195 = arith.constant 0 : index
    %c0_196 = arith.constant 0 : index
    %226 = vector.load %arg7[%c1_193, %c1_194, %c0_195, %c0_196] : memref<2x4x8x32xbf16, #tpu.memory_space<vmem>>, vector<1x1x8x32xbf16>
    %227 = vector.shape_cast %226 : vector<1x1x8x32xbf16> to vector<8x32xbf16>
    %cst_197 = arith.constant dense<0.000000e+00> : vector<64x8xf32>
    %228 = tpu.matmul %209, %227, %cst_197 {dimension_numbers = #tpu.dot_dimension_numbers<[1], [1], [0], [0], [0, 0, 1, 0], [], []>} : vector<64x32xbf16>, vector<8x32xbf16>, vector<64x8xf32> -> vector<64x8xf32>
    %c1_198 = arith.constant 1 : index
    %c1_199 = arith.constant 1 : index
    %c0_200 = arith.constant 0 : index
    %c0_201 = arith.constant 0 : index
    %229 = vector.load %arg10[%c1_198, %c1_199, %c0_200, %c0_201] : memref<2x4x1x8xf32, #tpu.memory_space<vmem>>, vector<1x1x1x8xf32>
    %230 = vector.shape_cast %229 : vector<1x1x1x8xf32> to vector<1x8xf32>
    %231 = vector.broadcast %230 : vector<1x8xf32> to vector<64x8xf32>
    %232 = arith.addf %228, %231 : vector<64x8xf32>
    %233 = arith.truncf %232 : vector<64x8xf32> to vector<64x8xbf16>
    %c1_202 = arith.constant 1 : index
    %c1_203 = arith.constant 1 : index
    %c0_204 = arith.constant 0 : index
    %c0_205 = arith.constant 0 : index
    %234 = vector.load %arg8[%c1_202, %c1_203, %c0_204, %c0_205] : memref<2x4x8x32xbf16, #tpu.memory_space<vmem>>, vector<1x1x8x32xbf16>
    %235 = vector.shape_cast %234 : vector<1x1x8x32xbf16> to vector<8x32xbf16>
    %cst_206 = arith.constant dense<0.000000e+00> : vector<64x8xf32>
    %236 = tpu.matmul %209, %235, %cst_206 {dimension_numbers = #tpu.dot_dimension_numbers<[1], [1], [0], [0], [0, 0, 1, 0], [], []>} : vector<64x32xbf16>, vector<8x32xbf16>, vector<64x8xf32> -> vector<64x8xf32>
    %c1_207 = arith.constant 1 : index
    %c1_208 = arith.constant 1 : index
    %c0_209 = arith.constant 0 : index
    %c0_210 = arith.constant 0 : index
    %237 = vector.load %arg11[%c1_207, %c1_208, %c0_209, %c0_210] : memref<2x4x1x8xf32, #tpu.memory_space<vmem>>, vector<1x1x1x8xf32>
    %238 = vector.shape_cast %237 : vector<1x1x1x8xf32> to vector<1x8xf32>
    %239 = vector.broadcast %238 : vector<1x8xf32> to vector<64x8xf32>
    %240 = arith.addf %236, %239 : vector<64x8xf32>
    %241 = arith.truncf %240 : vector<64x8xf32> to vector<64x8xbf16>
    %c1_211 = arith.constant 1 : index
    %c2_212 = arith.constant 2 : index
    %c0_213 = arith.constant 0 : index
    %c0_214 = arith.constant 0 : index
    %242 = vector.load %arg7[%c1_211, %c2_212, %c0_213, %c0_214] : memref<2x4x8x32xbf16, #tpu.memory_space<vmem>>, vector<1x1x8x32xbf16>
    %243 = vector.shape_cast %242 : vector<1x1x8x32xbf16> to vector<8x32xbf16>
    %cst_215 = arith.constant dense<0.000000e+00> : vector<64x8xf32>
    %244 = tpu.matmul %209, %243, %cst_215 {dimension_numbers = #tpu.dot_dimension_numbers<[1], [1], [0], [0], [0, 0, 1, 0], [], []>} : vector<64x32xbf16>, vector<8x32xbf16>, vector<64x8xf32> -> vector<64x8xf32>
    %c1_216 = arith.constant 1 : index
    %c2_217 = arith.constant 2 : index
    %c0_218 = arith.constant 0 : index
    %c0_219 = arith.constant 0 : index
    %245 = vector.load %arg10[%c1_216, %c2_217, %c0_218, %c0_219] : memref<2x4x1x8xf32, #tpu.memory_space<vmem>>, vector<1x1x1x8xf32>
    %246 = vector.shape_cast %245 : vector<1x1x1x8xf32> to vector<1x8xf32>
    %247 = vector.broadcast %246 : vector<1x8xf32> to vector<64x8xf32>
    %248 = arith.addf %244, %247 : vector<64x8xf32>
    %249 = arith.truncf %248 : vector<64x8xf32> to vector<64x8xbf16>
    %c1_220 = arith.constant 1 : index
    %c2_221 = arith.constant 2 : index
    %c0_222 = arith.constant 0 : index
    %c0_223 = arith.constant 0 : index
    %250 = vector.load %arg8[%c1_220, %c2_221, %c0_222, %c0_223] : memref<2x4x8x32xbf16, #tpu.memory_space<vmem>>, vector<1x1x8x32xbf16>
    %251 = vector.shape_cast %250 : vector<1x1x8x32xbf16> to vector<8x32xbf16>
    %cst_224 = arith.constant dense<0.000000e+00> : vector<64x8xf32>
    %252 = tpu.matmul %209, %251, %cst_224 {dimension_numbers = #tpu.dot_dimension_numbers<[1], [1], [0], [0], [0, 0, 1, 0], [], []>} : vector<64x32xbf16>, vector<8x32xbf16>, vector<64x8xf32> -> vector<64x8xf32>
    %c1_225 = arith.constant 1 : index
    %c2_226 = arith.constant 2 : index
    %c0_227 = arith.constant 0 : index
    %c0_228 = arith.constant 0 : index
    %253 = vector.load %arg11[%c1_225, %c2_226, %c0_227, %c0_228] : memref<2x4x1x8xf32, #tpu.memory_space<vmem>>, vector<1x1x1x8xf32>
    %254 = vector.shape_cast %253 : vector<1x1x1x8xf32> to vector<1x8xf32>
    %255 = vector.broadcast %254 : vector<1x8xf32> to vector<64x8xf32>
    %256 = arith.addf %252, %255 : vector<64x8xf32>
    %257 = arith.truncf %256 : vector<64x8xf32> to vector<64x8xbf16>
    %c1_229 = arith.constant 1 : index
    %c3_230 = arith.constant 3 : index
    %c0_231 = arith.constant 0 : index
    %c0_232 = arith.constant 0 : index
    %258 = vector.load %arg7[%c1_229, %c3_230, %c0_231, %c0_232] : memref<2x4x8x32xbf16, #tpu.memory_space<vmem>>, vector<1x1x8x32xbf16>
    %259 = vector.shape_cast %258 : vector<1x1x8x32xbf16> to vector<8x32xbf16>
    %cst_233 = arith.constant dense<0.000000e+00> : vector<64x8xf32>
    %260 = tpu.matmul %209, %259, %cst_233 {dimension_numbers = #tpu.dot_dimension_numbers<[1], [1], [0], [0], [0, 0, 1, 0], [], []>} : vector<64x32xbf16>, vector<8x32xbf16>, vector<64x8xf32> -> vector<64x8xf32>
    %c1_234 = arith.constant 1 : index
    %c3_235 = arith.constant 3 : index
    %c0_236 = arith.constant 0 : index
    %c0_237 = arith.constant 0 : index
    %261 = vector.load %arg10[%c1_234, %c3_235, %c0_236, %c0_237] : memref<2x4x1x8xf32, #tpu.memory_space<vmem>>, vector<1x1x1x8xf32>
    %262 = vector.shape_cast %261 : vector<1x1x1x8xf32> to vector<1x8xf32>
    %263 = vector.broadcast %262 : vector<1x8xf32> to vector<64x8xf32>
    %264 = arith.addf %260, %263 : vector<64x8xf32>
    %265 = arith.truncf %264 : vector<64x8xf32> to vector<64x8xbf16>
    %c1_238 = arith.constant 1 : index
    %c3_239 = arith.constant 3 : index
    %c0_240 = arith.constant 0 : index
    %c0_241 = arith.constant 0 : index
    %266 = vector.load %arg8[%c1_238, %c3_239, %c0_240, %c0_241] : memref<2x4x8x32xbf16, #tpu.memory_space<vmem>>, vector<1x1x8x32xbf16>
    %267 = vector.shape_cast %266 : vector<1x1x8x32xbf16> to vector<8x32xbf16>
    %cst_242 = arith.constant dense<0.000000e+00> : vector<64x8xf32>
    %268 = tpu.matmul %209, %267, %cst_242 {dimension_numbers = #tpu.dot_dimension_numbers<[1], [1], [0], [0], [0, 0, 1, 0], [], []>} : vector<64x32xbf16>, vector<8x32xbf16>, vector<64x8xf32> -> vector<64x8xf32>
    %c1_243 = arith.constant 1 : index
    %c3_244 = arith.constant 3 : index
    %c0_245 = arith.constant 0 : index
    %c0_246 = arith.constant 0 : index
    %269 = vector.load %arg11[%c1_243, %c3_244, %c0_245, %c0_246] : memref<2x4x1x8xf32, #tpu.memory_space<vmem>>, vector<1x1x1x8xf32>
    %270 = vector.shape_cast %269 : vector<1x1x1x8xf32> to vector<1x8xf32>
    %271 = vector.broadcast %270 : vector<1x8xf32> to vector<64x8xf32>
    %272 = arith.addf %268, %271 : vector<64x8xf32>
    %273 = arith.truncf %272 : vector<64x8xf32> to vector<64x8xbf16>
    %c0_i32_247 = arith.constant 0 : i32
    %c1_i32_248 = arith.constant 1 : i32
    %274 = arith.muli %c0_i32_247, %c1_i32_248 : i32
    %c0_i32_249 = arith.constant 0 : i32
    %275 = arith.addi %c0_i32_249, %274 : i32
    %c64_i32_250 = arith.constant 64 : i32
    %276 = arith.muli %275, %c64_i32_250 : i32
    %277 = tpu.assume_multiple %276, 64 : i32
    %278 = arith.index_cast %277 : i32 to index
    %c0_251 = arith.constant 0 : index
    %279 = vector.load %arg16[%278, %c0_251] : memref<64x32xf32, #tpu.memory_space<vmem>>, vector<64x32xf32>
    %280 = arith.truncf %279 : vector<64x32xf32> to vector<64x32xbf16>
    %c1_252 = arith.constant 1 : index
    %c0_253 = arith.constant 0 : index
    %c0_254 = arith.constant 0 : index
    %281 = vector.load %arg13[%c1_252, %c0_253, %c0_254] : memref<2x1x32xf32, #tpu.memory_space<vmem>>, vector<1x1x32xf32>
    %282 = vector.shape_cast %281 : vector<1x1x32xf32> to vector<1x32xf32>
    %283 = vector.broadcast %282 : vector<1x32xf32> to vector<64x32xf32>
    %284 = arith.addf %279, %283 : vector<64x32xf32>
    %c1_255 = arith.constant 1 : index
    %c0_256 = arith.constant 0 : index
    %c0_257 = arith.constant 0 : index
    %c0_258 = arith.constant 0 : index
    %285 = vector.load %arg6[%c1_255, %c0_256, %c0_257, %c0_258] : memref<2x4x8x32xbf16, #tpu.memory_space<vmem>>, vector<1x1x8x32xbf16>
    %286 = vector.shape_cast %285 : vector<1x1x8x32xbf16> to vector<8x32xbf16>
    %cst_259 = arith.constant dense<0.000000e+00> : vector<64x8xf32>
    %287 = tpu.matmul %280, %286, %cst_259 {dimension_numbers = #tpu.dot_dimension_numbers<[1], [1], [0], [0], [0, 0, 1, 0], [], []>} : vector<64x32xbf16>, vector<8x32xbf16>, vector<64x8xf32> -> vector<64x8xf32>
    %c1_260 = arith.constant 1 : index
    %c0_261 = arith.constant 0 : index
    %c0_262 = arith.constant 0 : index
    %c0_263 = arith.constant 0 : index
    %288 = vector.load %arg9[%c1_260, %c0_261, %c0_262, %c0_263] : memref<2x4x1x8xf32, #tpu.memory_space<vmem>>, vector<1x1x1x8xf32>
    %289 = vector.shape_cast %288 : vector<1x1x1x8xf32> to vector<1x8xf32>
    %290 = vector.broadcast %289 : vector<1x8xf32> to vector<64x8xf32>
    %291 = arith.addf %287, %290 : vector<64x8xf32>
    %292 = arith.truncf %291 : vector<64x8xf32> to vector<64x8xbf16>
    %cst_264 = arith.constant dense<0.000000e+00> : vector<64x64xf32>
    %293 = tpu.matmul %292, %217, %cst_264 {dimension_numbers = #tpu.dot_dimension_numbers<[1], [1], [0], [0], [0, 0, 1, 0], [], []>} : vector<64x8xbf16>, vector<64x8xbf16>, vector<64x64xf32> -> vector<64x64xf32>
    %cst_265 = arith.constant dense<0xFF800000> : vector<64xf32>
    %294 = vector.multi_reduction <maximumf>, %293, %cst_265 [1] : vector<64x64xf32> to vector<64xf32>
    %295 = vector.shape_cast %294 : vector<64xf32> to vector<64x1xf32>
    %296 = vector.broadcast %295 : vector<64x1xf32> to vector<64x64xf32>
    %297 = arith.subf %293, %296 : vector<64x64xf32>
    %298 = math.exp %297 : vector<64x64xf32>
    %cst_266 = arith.constant dense<0.000000e+00> : vector<64xf32>
    %299 = vector.multi_reduction <add>, %298, %cst_266 [1] : vector<64x64xf32> to vector<64xf32>
    %300 = vector.shape_cast %299 : vector<64xf32> to vector<64x1xf32>
    %301 = vector.broadcast %300 : vector<64x1xf32> to vector<64x64xf32>
    %302 = arith.divf %298, %301 : vector<64x64xf32>
    %303 = arith.truncf %302 : vector<64x64xf32> to vector<64x64xbf16>
    %cst_267 = arith.constant dense<0.000000e+00> : vector<64x8xf32>
    %304 = tpu.matmul %303, %225, %cst_267 {dimension_numbers = #tpu.dot_dimension_numbers<[1], [0], [0], [1], [0, 0, 1, 1], [], []>} : vector<64x64xbf16>, vector<64x8xbf16>, vector<64x8xf32> -> vector<64x8xf32>
    %c1_268 = arith.constant 1 : index
    %c0_269 = arith.constant 0 : index
    %c0_270 = arith.constant 0 : index
    %c0_271 = arith.constant 0 : index
    %305 = vector.load %arg12[%c1_268, %c0_269, %c0_270, %c0_271] : memref<2x4x8x32xbf16, #tpu.memory_space<vmem>>, vector<1x1x8x32xbf16>
    %306 = vector.shape_cast %305 : vector<1x1x8x32xbf16> to vector<8x32xbf16>
    %307 = arith.truncf %304 : vector<64x8xf32> to vector<64x8xbf16>
    %cst_272 = arith.constant dense<0.000000e+00> : vector<64x32xf32>
    %308 = tpu.matmul %307, %306, %cst_272 {dimension_numbers = #tpu.dot_dimension_numbers<[1], [0], [0], [1], [0, 0, 1, 1], [], []>} : vector<64x8xbf16>, vector<8x32xbf16>, vector<64x32xf32> -> vector<64x32xf32>
    %309 = arith.addf %284, %308 : vector<64x32xf32>
    %c1_273 = arith.constant 1 : index
    %c1_274 = arith.constant 1 : index
    %c0_275 = arith.constant 0 : index
    %c0_276 = arith.constant 0 : index
    %310 = vector.load %arg6[%c1_273, %c1_274, %c0_275, %c0_276] : memref<2x4x8x32xbf16, #tpu.memory_space<vmem>>, vector<1x1x8x32xbf16>
    %311 = vector.shape_cast %310 : vector<1x1x8x32xbf16> to vector<8x32xbf16>
    %cst_277 = arith.constant dense<0.000000e+00> : vector<64x8xf32>
    %312 = tpu.matmul %280, %311, %cst_277 {dimension_numbers = #tpu.dot_dimension_numbers<[1], [1], [0], [0], [0, 0, 1, 0], [], []>} : vector<64x32xbf16>, vector<8x32xbf16>, vector<64x8xf32> -> vector<64x8xf32>
    %c1_278 = arith.constant 1 : index
    %c1_279 = arith.constant 1 : index
    %c0_280 = arith.constant 0 : index
    %c0_281 = arith.constant 0 : index
    %313 = vector.load %arg9[%c1_278, %c1_279, %c0_280, %c0_281] : memref<2x4x1x8xf32, #tpu.memory_space<vmem>>, vector<1x1x1x8xf32>
    %314 = vector.shape_cast %313 : vector<1x1x1x8xf32> to vector<1x8xf32>
    %315 = vector.broadcast %314 : vector<1x8xf32> to vector<64x8xf32>
    %316 = arith.addf %312, %315 : vector<64x8xf32>
    %317 = arith.truncf %316 : vector<64x8xf32> to vector<64x8xbf16>
    %cst_282 = arith.constant dense<0.000000e+00> : vector<64x64xf32>
    %318 = tpu.matmul %317, %233, %cst_282 {dimension_numbers = #tpu.dot_dimension_numbers<[1], [1], [0], [0], [0, 0, 1, 0], [], []>} : vector<64x8xbf16>, vector<64x8xbf16>, vector<64x64xf32> -> vector<64x64xf32>
    %cst_283 = arith.constant dense<0xFF800000> : vector<64xf32>
    %319 = vector.multi_reduction <maximumf>, %318, %cst_283 [1] : vector<64x64xf32> to vector<64xf32>
    %320 = vector.shape_cast %319 : vector<64xf32> to vector<64x1xf32>
    %321 = vector.broadcast %320 : vector<64x1xf32> to vector<64x64xf32>
    %322 = arith.subf %318, %321 : vector<64x64xf32>
    %323 = math.exp %322 : vector<64x64xf32>
    %cst_284 = arith.constant dense<0.000000e+00> : vector<64xf32>
    %324 = vector.multi_reduction <add>, %323, %cst_284 [1] : vector<64x64xf32> to vector<64xf32>
    %325 = vector.shape_cast %324 : vector<64xf32> to vector<64x1xf32>
    %326 = vector.broadcast %325 : vector<64x1xf32> to vector<64x64xf32>
    %327 = arith.divf %323, %326 : vector<64x64xf32>
    %328 = arith.truncf %327 : vector<64x64xf32> to vector<64x64xbf16>
    %cst_285 = arith.constant dense<0.000000e+00> : vector<64x8xf32>
    %329 = tpu.matmul %328, %241, %cst_285 {dimension_numbers = #tpu.dot_dimension_numbers<[1], [0], [0], [1], [0, 0, 1, 1], [], []>} : vector<64x64xbf16>, vector<64x8xbf16>, vector<64x8xf32> -> vector<64x8xf32>
    %c1_286 = arith.constant 1 : index
    %c1_287 = arith.constant 1 : index
    %c0_288 = arith.constant 0 : index
    %c0_289 = arith.constant 0 : index
    %330 = vector.load %arg12[%c1_286, %c1_287, %c0_288, %c0_289] : memref<2x4x8x32xbf16, #tpu.memory_space<vmem>>, vector<1x1x8x32xbf16>
    %331 = vector.shape_cast %330 : vector<1x1x8x32xbf16> to vector<8x32xbf16>
    %332 = arith.truncf %329 : vector<64x8xf32> to vector<64x8xbf16>
    %cst_290 = arith.constant dense<0.000000e+00> : vector<64x32xf32>
    %333 = tpu.matmul %332, %331, %cst_290 {dimension_numbers = #tpu.dot_dimension_numbers<[1], [0], [0], [1], [0, 0, 1, 1], [], []>} : vector<64x8xbf16>, vector<8x32xbf16>, vector<64x32xf32> -> vector<64x32xf32>
    %334 = arith.addf %309, %333 : vector<64x32xf32>
    %c1_291 = arith.constant 1 : index
    %c2_292 = arith.constant 2 : index
    %c0_293 = arith.constant 0 : index
    %c0_294 = arith.constant 0 : index
    %335 = vector.load %arg6[%c1_291, %c2_292, %c0_293, %c0_294] : memref<2x4x8x32xbf16, #tpu.memory_space<vmem>>, vector<1x1x8x32xbf16>
    %336 = vector.shape_cast %335 : vector<1x1x8x32xbf16> to vector<8x32xbf16>
    %cst_295 = arith.constant dense<0.000000e+00> : vector<64x8xf32>
    %337 = tpu.matmul %280, %336, %cst_295 {dimension_numbers = #tpu.dot_dimension_numbers<[1], [1], [0], [0], [0, 0, 1, 0], [], []>} : vector<64x32xbf16>, vector<8x32xbf16>, vector<64x8xf32> -> vector<64x8xf32>
    %c1_296 = arith.constant 1 : index
    %c2_297 = arith.constant 2 : index
    %c0_298 = arith.constant 0 : index
    %c0_299 = arith.constant 0 : index
    %338 = vector.load %arg9[%c1_296, %c2_297, %c0_298, %c0_299] : memref<2x4x1x8xf32, #tpu.memory_space<vmem>>, vector<1x1x1x8xf32>
    %339 = vector.shape_cast %338 : vector<1x1x1x8xf32> to vector<1x8xf32>
    %340 = vector.broadcast %339 : vector<1x8xf32> to vector<64x8xf32>
    %341 = arith.addf %337, %340 : vector<64x8xf32>
    %342 = arith.truncf %341 : vector<64x8xf32> to vector<64x8xbf16>
    %cst_300 = arith.constant dense<0.000000e+00> : vector<64x64xf32>
    %343 = tpu.matmul %342, %249, %cst_300 {dimension_numbers = #tpu.dot_dimension_numbers<[1], [1], [0], [0], [0, 0, 1, 0], [], []>} : vector<64x8xbf16>, vector<64x8xbf16>, vector<64x64xf32> -> vector<64x64xf32>
    %cst_301 = arith.constant dense<0xFF800000> : vector<64xf32>
    %344 = vector.multi_reduction <maximumf>, %343, %cst_301 [1] : vector<64x64xf32> to vector<64xf32>
    %345 = vector.shape_cast %344 : vector<64xf32> to vector<64x1xf32>
    %346 = vector.broadcast %345 : vector<64x1xf32> to vector<64x64xf32>
    %347 = arith.subf %343, %346 : vector<64x64xf32>
    %348 = math.exp %347 : vector<64x64xf32>
    %cst_302 = arith.constant dense<0.000000e+00> : vector<64xf32>
    %349 = vector.multi_reduction <add>, %348, %cst_302 [1] : vector<64x64xf32> to vector<64xf32>
    %350 = vector.shape_cast %349 : vector<64xf32> to vector<64x1xf32>
    %351 = vector.broadcast %350 : vector<64x1xf32> to vector<64x64xf32>
    %352 = arith.divf %348, %351 : vector<64x64xf32>
    %353 = arith.truncf %352 : vector<64x64xf32> to vector<64x64xbf16>
    %cst_303 = arith.constant dense<0.000000e+00> : vector<64x8xf32>
    %354 = tpu.matmul %353, %257, %cst_303 {dimension_numbers = #tpu.dot_dimension_numbers<[1], [0], [0], [1], [0, 0, 1, 1], [], []>} : vector<64x64xbf16>, vector<64x8xbf16>, vector<64x8xf32> -> vector<64x8xf32>
    %c1_304 = arith.constant 1 : index
    %c2_305 = arith.constant 2 : index
    %c0_306 = arith.constant 0 : index
    %c0_307 = arith.constant 0 : index
    %355 = vector.load %arg12[%c1_304, %c2_305, %c0_306, %c0_307] : memref<2x4x8x32xbf16, #tpu.memory_space<vmem>>, vector<1x1x8x32xbf16>
    %356 = vector.shape_cast %355 : vector<1x1x8x32xbf16> to vector<8x32xbf16>
    %357 = arith.truncf %354 : vector<64x8xf32> to vector<64x8xbf16>
    %cst_308 = arith.constant dense<0.000000e+00> : vector<64x32xf32>
    %358 = tpu.matmul %357, %356, %cst_308 {dimension_numbers = #tpu.dot_dimension_numbers<[1], [0], [0], [1], [0, 0, 1, 1], [], []>} : vector<64x8xbf16>, vector<8x32xbf16>, vector<64x32xf32> -> vector<64x32xf32>
    %359 = arith.addf %334, %358 : vector<64x32xf32>
    %c1_309 = arith.constant 1 : index
    %c3_310 = arith.constant 3 : index
    %c0_311 = arith.constant 0 : index
    %c0_312 = arith.constant 0 : index
    %360 = vector.load %arg6[%c1_309, %c3_310, %c0_311, %c0_312] : memref<2x4x8x32xbf16, #tpu.memory_space<vmem>>, vector<1x1x8x32xbf16>
    %361 = vector.shape_cast %360 : vector<1x1x8x32xbf16> to vector<8x32xbf16>
    %cst_313 = arith.constant dense<0.000000e+00> : vector<64x8xf32>
    %362 = tpu.matmul %280, %361, %cst_313 {dimension_numbers = #tpu.dot_dimension_numbers<[1], [1], [0], [0], [0, 0, 1, 0], [], []>} : vector<64x32xbf16>, vector<8x32xbf16>, vector<64x8xf32> -> vector<64x8xf32>
    %c1_314 = arith.constant 1 : index
    %c3_315 = arith.constant 3 : index
    %c0_316 = arith.constant 0 : index
    %c0_317 = arith.constant 0 : index
    %363 = vector.load %arg9[%c1_314, %c3_315, %c0_316, %c0_317] : memref<2x4x1x8xf32, #tpu.memory_space<vmem>>, vector<1x1x1x8xf32>
    %364 = vector.shape_cast %363 : vector<1x1x1x8xf32> to vector<1x8xf32>
    %365 = vector.broadcast %364 : vector<1x8xf32> to vector<64x8xf32>
    %366 = arith.addf %362, %365 : vector<64x8xf32>
    %367 = arith.truncf %366 : vector<64x8xf32> to vector<64x8xbf16>
    %cst_318 = arith.constant dense<0.000000e+00> : vector<64x64xf32>
    %368 = tpu.matmul %367, %265, %cst_318 {dimension_numbers = #tpu.dot_dimension_numbers<[1], [1], [0], [0], [0, 0, 1, 0], [], []>} : vector<64x8xbf16>, vector<64x8xbf16>, vector<64x64xf32> -> vector<64x64xf32>
    %cst_319 = arith.constant dense<0xFF800000> : vector<64xf32>
    %369 = vector.multi_reduction <maximumf>, %368, %cst_319 [1] : vector<64x64xf32> to vector<64xf32>
    %370 = vector.shape_cast %369 : vector<64xf32> to vector<64x1xf32>
    %371 = vector.broadcast %370 : vector<64x1xf32> to vector<64x64xf32>
    %372 = arith.subf %368, %371 : vector<64x64xf32>
    %373 = math.exp %372 : vector<64x64xf32>
    %cst_320 = arith.constant dense<0.000000e+00> : vector<64xf32>
    %374 = vector.multi_reduction <add>, %373, %cst_320 [1] : vector<64x64xf32> to vector<64xf32>
    %375 = vector.shape_cast %374 : vector<64xf32> to vector<64x1xf32>
    %376 = vector.broadcast %375 : vector<64x1xf32> to vector<64x64xf32>
    %377 = arith.divf %373, %376 : vector<64x64xf32>
    %378 = arith.truncf %377 : vector<64x64xf32> to vector<64x64xbf16>
    %cst_321 = arith.constant dense<0.000000e+00> : vector<64x8xf32>
    %379 = tpu.matmul %378, %273, %cst_321 {dimension_numbers = #tpu.dot_dimension_numbers<[1], [0], [0], [1], [0, 0, 1, 1], [], []>} : vector<64x64xbf16>, vector<64x8xbf16>, vector<64x8xf32> -> vector<64x8xf32>
    %c1_322 = arith.constant 1 : index
    %c3_323 = arith.constant 3 : index
    %c0_324 = arith.constant 0 : index
    %c0_325 = arith.constant 0 : index
    %380 = vector.load %arg12[%c1_322, %c3_323, %c0_324, %c0_325] : memref<2x4x8x32xbf16, #tpu.memory_space<vmem>>, vector<1x1x8x32xbf16>
    %381 = vector.shape_cast %380 : vector<1x1x8x32xbf16> to vector<8x32xbf16>
    %382 = arith.truncf %379 : vector<64x8xf32> to vector<64x8xbf16>
    %cst_326 = arith.constant dense<0.000000e+00> : vector<64x32xf32>
    %383 = tpu.matmul %382, %381, %cst_326 {dimension_numbers = #tpu.dot_dimension_numbers<[1], [0], [0], [1], [0, 0, 1, 1], [], []>} : vector<64x8xbf16>, vector<8x32xbf16>, vector<64x32xf32> -> vector<64x32xf32>
    %384 = arith.addf %359, %383 : vector<64x32xf32>
    %385 = arith.index_cast %277 : i32 to index
    %c0_327 = arith.constant 0 : index
    %386 = vector.load %arg16[%385, %c0_327] : memref<64x32xf32, #tpu.memory_space<vmem>>, vector<64x32xf32>
    tpu.vector_store %arg16[%385, %c0_327], %384 {strides = array<i32>} : memref<64x32xf32, #tpu.memory_space<vmem>>, vector<64x32xf32>,
    %c1_i32_328 = arith.constant 1 : i32
    %c0_329 = arith.constant 0 : index
    %c0_330 = arith.constant 0 : index
    %387 = vector.load %arg16[%c0_329, %c0_330] : memref<64x32xf32, #tpu.memory_space<vmem>>, vector<64x32xf32>
    %c1_331 = arith.constant 1 : index
    %c0_332 = arith.constant 0 : index
    %c0_333 = arith.constant 0 : index
    %388 = vector.load %arg14[%c1_331, %c0_332, %c0_333] : memref<2x32x32xbf16, #tpu.memory_space<vmem>>, vector<1x32x32xbf16>
    %389 = vector.shape_cast %388 : vector<1x32x32xbf16> to vector<32x32xbf16>
    %390 = arith.truncf %387 : vector<64x32xf32> to vector<64x32xbf16>
    %cst_334 = arith.constant dense<0.000000e+00> : vector<64x32xf32>
    %391 = tpu.matmul %390, %389, %cst_334 {dimension_numbers = #tpu.dot_dimension_numbers<[1], [1], [0], [0], [0, 0, 1, 0], [], []>} : vector<64x32xbf16>, vector<32x32xbf16>, vector<64x32xf32> -> vector<64x32xf32>
    %392 = arith.addf %387, %391 : vector<64x32xf32>
    %c0_335 = arith.constant 0 : index
    %c0_336 = arith.constant 0 : index
    %393 = vector.load %arg16[%c0_335, %c0_336] : memref<64x32xf32, #tpu.memory_space<vmem>>, vector<64x32xf32>
    tpu.vector_store %arg16[%c0_335, %c0_336], %392 {strides = array<i32>} : memref<64x32xf32, #tpu.memory_space<vmem>>, vector<64x32xf32>,
    %c0_337 = arith.constant 0 : index
    %c0_338 = arith.constant 0 : index
    %394 = vector.load %arg16[%c0_337, %c0_338] : memref<64x32xf32, #tpu.memory_space<vmem>>, vector<64x32xf32>
    %c0_339 = arith.constant 0 : index
    %c0_340 = arith.constant 0 : index
    %c0_341 = arith.constant 0 : index
    %395 = vector.load %arg15[%c0_339, %c0_340, %c0_341] : memref<1x64x32xf32, #tpu.memory_space<vmem>>, vector<1x64x32xf32>
    %396 = vector.shape_cast %395 : vector<1x64x32xf32> to vector<64x32xf32>
    %397 = vector.shape_cast %394 : vector<64x32xf32> to vector<1x64x32xf32>
    tpu.vector_store %arg15[%c0_339, %c0_340, %c0_341], %397 {strides = array<i32>} : memref<1x64x32xf32, #tpu.memory_space<vmem>>, vector<1x64x32xf32>,
    return
  }
  func.func @transform_0(%arg0: i32) -> (i32, i32, i32) {
    %c0_i32 = arith.constant 0 : i32
    %c0_i32_0 = arith.constant 0 : i32
    %c0_i32_1 = arith.constant 0 : i32
    return %arg0, %c0_i32, %c0_i32_0 : i32, i32, i32
  }
  func.func @transform_1(%arg0: i32) -> (i32, i32) {
    %c0_i32 = arith.constant 0 : i32
    %c0_i32_0 = arith.constant 0 : i32
    %c0_i32_1 = arith.constant 0 : i32
    return %c0_i32, %c0_i32_0 : i32, i32
  }
  func.func @transform_2(%arg0: i32) -> (i32, i32) {
    %c0_i32 = arith.constant 0 : i32
    %c0_i32_0 = arith.constant 0 : i32
    %c0_i32_1 = arith.constant 0 : i32
    return %c0_i32, %c0_i32_0 : i32, i32
  }
  func.func @transform_3(%arg0: i32) -> (i32, i32) {
    %c0_i32 = arith.constant 0 : i32
    %c0_i32_0 = arith.constant 0 : i32
    %c0_i32_1 = arith.constant 0 : i32
    return %c0_i32, %c0_i32_0 : i32, i32
  }
  func.func @transform_4(%arg0: i32) -> (i32, i32) {
    %c0_i32 = arith.constant 0 : i32
    %c0_i32_0 = arith.constant 0 : i32
    %c0_i32_1 = arith.constant 0 : i32
    return %c0_i32, %c0_i32_0 : i32, i32
  }
  func.func @transform_5(%arg0: i32) -> (i32, i32, i32, i32) {
    %c0_i32 = arith.constant 0 : i32
    %c0_i32_0 = arith.constant 0 : i32
    %c0_i32_1 = arith.constant 0 : i32
    %c0_i32_2 = arith.constant 0 : i32
    %c0_i32_3 = arith.constant 0 : i32
    return %c0_i32, %c0_i32_0, %c0_i32_1, %c0_i32_2 : i32, i32, i32, i32
  }
  func.func @transform_6(%arg0: i32) -> (i32, i32, i32, i32) {
    %c0_i32 = arith.constant 0 : i32
    %c0_i32_0 = arith.constant 0 : i32
    %c0_i32_1 = arith.constant 0 : i32
    %c0_i32_2 = arith.constant 0 : i32
    %c0_i32_3 = arith.constant 0 : i32
    return %c0_i32, %c0_i32_0, %c0_i32_1, %c0_i32_2 : i32, i32, i32, i32
  }
  func.func @transform_7(%arg0: i32) -> (i32, i32, i32, i32) {
    %c0_i32 = arith.constant 0 : i32
    %c0_i32_0 = arith.constant 0 : i32
    %c0_i32_1 = arith.constant 0 : i32
    %c0_i32_2 = arith.constant 0 : i32
    %c0_i32_3 = arith.constant 0 : i32
    return %c0_i32, %c0_i32_0, %c0_i32_1, %c0_i32_2 : i32, i32, i32, i32
  }
  func.func @transform_8(%arg0: i32) -> (i32, i32, i32, i32) {
    %c0_i32 = arith.constant 0 : i32
    %c0_i32_0 = arith.constant 0 : i32
    %c0_i32_1 = arith.constant 0 : i32
    %c0_i32_2 = arith.constant 0 : i32
    %c0_i32_3 = arith.constant 0 : i32
    return %c0_i32, %c0_i32_0, %c0_i32_1, %c0_i32_2 : i32, i32, i32, i32
  }
  func.func @transform_9(%arg0: i32) -> (i32, i32, i32, i32) {
    %c0_i32 = arith.constant 0 : i32
    %c0_i32_0 = arith.constant 0 : i32
    %c0_i32_1 = arith.constant 0 : i32
    %c0_i32_2 = arith.constant 0 : i32
    %c0_i32_3 = arith.constant 0 : i32
    return %c0_i32, %c0_i32_0, %c0_i32_1, %c0_i32_2 : i32, i32, i32, i32
  }
  func.func @transform_10(%arg0: i32) -> (i32, i32, i32, i32) {
    %c0_i32 = arith.constant 0 : i32
    %c0_i32_0 = arith.constant 0 : i32
    %c0_i32_1 = arith.constant 0 : i32
    %c0_i32_2 = arith.constant 0 : i32
    %c0_i32_3 = arith.constant 0 : i32
    return %c0_i32, %c0_i32_0, %c0_i32_1, %c0_i32_2 : i32, i32, i32, i32
  }
  func.func @transform_11(%arg0: i32) -> (i32, i32, i32, i32) {
    %c0_i32 = arith.constant 0 : i32
    %c0_i32_0 = arith.constant 0 : i32
    %c0_i32_1 = arith.constant 0 : i32
    %c0_i32_2 = arith.constant 0 : i32
    %c0_i32_3 = arith.constant 0 : i32
    return %c0_i32, %c0_i32_0, %c0_i32_1, %c0_i32_2 : i32, i32, i32, i32
  }
  func.func @transform_12(%arg0: i32) -> (i32, i32, i32) {
    %c0_i32 = arith.constant 0 : i32
    %c0_i32_0 = arith.constant 0 : i32
    %c0_i32_1 = arith.constant 0 : i32
    %c0_i32_2 = arith.constant 0 : i32
    return %c0_i32, %c0_i32_0, %c0_i32_1 : i32, i32, i32
  }
  func.func @transform_13(%arg0: i32) -> (i32, i32, i32) {
    %c0_i32 = arith.constant 0 : i32
    %c0_i32_0 = arith.constant 0 : i32
    %c0_i32_1 = arith.constant 0 : i32
    %c0_i32_2 = arith.constant 0 : i32
    return %c0_i32, %c0_i32_0, %c0_i32_1 : i32, i32, i32
  }
  func.func @transform_14(%arg0: i32) -> (i32, i32, i32) {
    %c0_i32 = arith.constant 0 : i32
    %c0_i32_0 = arith.constant 0 : i32
    %c0_i32_1 = arith.constant 0 : i32
    return %arg0, %c0_i32, %c0_i32_0 : i32, i32, i32
  }
}

</mosaic_0001>

<bundles_post_ra>
// kernel: tpu_custom_call.1
= control target key start
LH: loop header
LB: loop body
LE: loop exit
PB: predicated region body
PF: predicated region fallthrough
CT: control target
= control target key end

     0   :  { %s9532_s0 = inlined_call_operand.vmem [shape: bf16[2,64,4], index: 0, kind: input, shape index: {}]   ;;  %s9533_s1 = inlined_call_operand.vmem [shape: bf16[32,4], index: 1, kind: input, shape index: {}]   ;;  %s9534_s2 = inlined_call_operand.vmem [shape: f32[1,32], index: 2, kind: input, shape index: {}]   ;;  %s9535_s3 = inlined_call_operand.hbm [shape: bf16[32,32], index: 3, kind: input, shape index: {}]   ;;  %s9536_s4 = inlined_call_operand.hbm [shape: f32[1,32], index: 4, kind: input, shape index: {}]   ;;  %s9537_s5 = inlined_call_operand.vmem [shape: bf16[2,4,8,32], index: 5, kind: input, shape index: {}]   ;;  %s9538_s6 = inlined_call_operand.vmem [shape: bf16[2,4,8,32], index: 6, kind: input, shape index: {}]   ;;  %s9539_s7 = inlined_call_operand.vmem [shape: bf16[2,4,8,32], index: 7, kind: input, shape index: {}]   ;;  %s9540_s8 = inlined_call_operand.hbm [shape: f32[2,4,1,8], index: 8, kind: input, shape index: {}]   ;;  %s9541_s9 = inlined_call_operand.hbm [shape: f32[2,4,1,8], index: 9, kind: input, shape index: {}]   ;;  %s9542_s10 = inlined_call_operand.hbm [shape: f32[2,4,1,8], index: 10, kind: input, shape index: {}]   ;;  %s9543_s11 = inlined_call_operand.hbm [shape: bf16[2,4,8,32], index: 11, kind: input, shape index: {}]   ;;  %s9544_s12 = inlined_call_operand.vmem [shape: f32[2,1,32], index: 12, kind: input, shape index: {}]   ;;  %s9545_s13 = inlined_call_operand.vmem [shape: bf16[2,32,32], index: 13, kind: input, shape index: {}]   ;;  %s9546_s14 = inlined_call_operand.vmem [shape: f32[2,64,32], index: 14, kind: output, shape index: {}]  }
   0x1   :  { %9556 = sst [smem:[#allocation18_spill]] %s9536_s4 }
   0x2   :  { %9557 = sst [smem:[#allocation19_spill]] %s9541_s9 }
   0x3   :  { %19 = vsyncpa [#allocation4], 0 }
   0x4   :  { %20 = vsyncpa [#allocation6], 0 }
   0x5   :  { %21 = vsyncpa [#allocation9], 0 }
   0x6   :  { %22 = vsyncpa [#allocation12], 0  ;;  %s8203_s29 = smov 0  }
   0x7 LB: > { %9558 = sst [smem:[#allocation17_spill]] %s8116_s29  ;;  %s8118_s30 = smov [#allocation5]   ;;  %s8116_s29 = sphi %s8203_s29, %s28_s29  }
   0x8   : > { %s390_s15 = sshll.u32 %s8118_s30, 4  ;;  %s8209_s16 = sadd.s32 4294967295, %s8116_s29   ;;  %s391_s15 = int_to_ptr.vmem [resolvable:$true] %s390_s15 }
   0x9   : > { %p6168_p0 = scmp.ge.s32.totalorder %s8116_s29, 1  ;;  %p358_p1 = scmp.lt.s32.totalorder %s8116_s29, 3 }
   0xa   : > { %p9547_p2 = scmp.eq.s32.totalorder %s8209_s16, 0  ;;  %s8119_s18 = smov [#allocation8]  }
   0xb   : > { %p8214_p3 = pnand %p6168_p0, %p358_p1  ;;  %s422_s19 = sshll.u32 %s8119_s18, 4  ;;  %s8220_s19 = int_to_ptr.vmem [resolvable:$true] %s422_s19 }
   0xc   : > { %s8120_s21 = smov [#allocation3]   ;;  %s9561_s4 = sld [smem:[#allocation18_spill]] }
   0xd   : > { %s9559_s17 = scalar_select %p8214_p3, 1, 0 }
   0xe   : > { %p7561_p4 = pneg %p8214_p3  ;;  %s376_s22 = sshll.u32 %s8120_s21, 4  ;;  %s8228_s22 = int_to_ptr.vmem [resolvable:$true] %s376_s22 }
  0x10   : > { %p8224_p5 = pnand %p9547_p2, %p7561_p4 }
  0x12   : > { %s7926_s25 = scalar_lea.hbm %s9561_s4, 16  ;;  %p8238_p7 = pneg %p8224_p5 }
  0x13   : > { %p7927_p6 = scmp.ne.s32.totalorder %s9561_s4, %s7926_s25  ;;  %p7933_p10 = scmp.lt.u32.totalorder %s7926_s25, %s9561_s4 }
  0x15   : > { %p7929_p8 = pnand %p8238_p7, %p7927_p6 }
  0x17   : > { %p7930_p9 = pneg %p7929_p8 }
  0x19   : > { %p7935_p11 = pnand %p7933_p10, %p7930_p9 }
  0x1b   : > { %7938 = shalt.err (!%p7935_p11)
}
  0x1c   : > { %s7939_s21 = scalar_lea.vmem %s391_s15, 16  ;;  %s7946_s23 = scalar_lea.vmem %s391_s15, 32 }
  0x1d   : > { %p7940_p12 = scmp.ne.s32.totalorder %s391_s15, %s7939_s21  ;;  %p7947_p1 = scmp.lt.s32.totalorder %s391_s15, %s391_s15 }
  0x1e   : > { %p7948_p4 = scmp.lt.s32.totalorder %s7946_s23, %s7939_s21 }
  0x1f   : > { %p7942_p13 = pnand %p7940_p12, %p8238_p7 }
  0x20   : > { %p7949_p2 = por %p7948_p4, %p7947_p1 }
  0x21   : > { %p7943_p0 = pneg %p7942_p13 }
  0x23   : > { %p7950_p3 = pnand %p7949_p2, %p7943_p0 }
  0x25   : > { %7953 = shalt.err (!%p7950_p3)
}
  0x26   : > { %7567 = dma.hbm_to_vmem [thread:$0]  (!%p8224_p5), %s9561_s4, 16, %s391_s15, [#allocation6]  }
  0x27   : > { %s9563_s9 = sld [smem:[#allocation19_spill]] }
  0x2d   : > { %s7954_s30 = scalar_lea.hbm %s9563_s9, 128 }
  0x2e   : > { %p7955_p6 = scmp.ne.s32.totalorder %s9563_s9, %s7954_s30  ;;  %p7961_p2 = scmp.lt.u32.totalorder %s7954_s30, %s9563_s9 }
  0x30   : > { %p7957_p8 = pnand %p7955_p6, %p8238_p7 }
  0x32   : > { %p7958_p9 = pneg %p7957_p8 }
  0x34   : > { %p7963_p3 = pnand %p7961_p2, %p7958_p9 }
  0x36   : > { %7966 = shalt.err (!%p7963_p3)
}
  0x37   : > { %s7967_s15 = scalar_lea.vmem %s8220_s19, 128  ;;  %p7975_p13 = scmp.lt.s32.totalorder %s8220_s19, %s8220_s19 }
  0x38   : > { %p7968_p10 = scmp.ne.s32.totalorder %s8220_s19, %s7967_s15  ;;  %p7976_p0 = scmp.lt.s32.totalorder %s7967_s15, %s7967_s15 }
  0x3a   : > { %p7970_p11 = pnand %p7968_p10, %p8238_p7  ;;  %p7977_p1 = por %p7976_p0, %p7975_p13 }
  0x3c   : > { %p7971_p12 = pneg %p7970_p11 }
  0x3e   : > { %p7978_p4 = pnand %p7977_p1, %p7971_p12 }
  0x40   : > { %7981 = shalt.err (!%p7978_p4)
}
  0x41   : > { %s9550_s29 = smov 16   ;;  %s9552_s24 = smov 1  }
  0x42   : > { %7573 = dma.hbm_to_vmem [thread:$0]  (!%p8224_p5), %s9563_s9, 128, %s8220_s19, [#allocation9], %s9550_s29, %s9550_s29, %s9552_s24  }
  0x43   : > { %s7982_s18 = scalar_lea.hbm %s9535_s3, 256 }
  0x44   : > { %p7983_p6 = scmp.ne.s32.totalorder %s9535_s3, %s7982_s18  ;;  %p7989_p2 = scmp.lt.u32.totalorder %s7982_s18, %s9535_s3 }
  0x46   : > { %p7985_p8 = pnand %p7983_p6, %p8238_p7 }
  0x48   : > { %p7986_p9 = pneg %p7985_p8 }
  0x4a   : > { %p7991_p3 = pnand %p7989_p2, %p7986_p9 }
  0x4c   : > { %7994 = shalt.err (!%p7991_p3)
}
  0x4d   : > { %s7995_s19 = scalar_lea.vmem %s8228_s22, 256  ;;  %p8003_p13 = scmp.lt.s32.totalorder %s8228_s22, %s8228_s22 }
  0x4e   : > { %p7996_p10 = scmp.ne.s32.totalorder %s8228_s22, %s7995_s19  ;;  %p8004_p0 = scmp.lt.s32.totalorder %s7995_s19, %s7995_s19 }
  0x50   : > { %p7998_p11 = pnand %p7996_p10, %p8238_p7  ;;  %p8005_p1 = por %p8004_p0, %p8003_p13 }
  0x52   : > { %p7999_p12 = pneg %p7998_p11 }
  0x54   : > { %p8006_p4 = pnand %p8005_p1, %p7999_p12 }
  0x56   : > { %8009 = shalt.err (!%p8006_p4)
}
  0x57   : > { %s9554_s26 = smov 64   ;;  %s9555_s4 = smov 4  }
  0x58   : > { %7564 = dma.hbm_to_vmem [thread:$0]  (!%p8224_p5), %s9535_s3, 256, %s8228_s22, [#allocation4], %s9554_s26, %s9554_s26, %s9555_s4  }
  0x59   : > { %s8125_s30 = smov [#allocation7]   ;;  %s8126_s21 = smov [#allocation10]  }
  0x5a   : > { %s409_s18 = sshll.u32 %s8125_s30, 4  ;;  %s435_s23 = sshll.u32 %s8126_s21, 4  ;;  %s410_s18 = int_to_ptr.vmem [resolvable:$true] %s409_s18  ;;  %s8306_s23 = int_to_ptr.vmem [resolvable:$true] %s435_s23 }
  0x5b   : > { %s8010_s29 = scalar_lea.hbm %s9540_s8, 128 }
  0x5c   : > { %p8011_p6 = scmp.ne.s32.totalorder %s9540_s8, %s8010_s29  ;;  %p8017_p2 = scmp.lt.u32.totalorder %s8010_s29, %s9540_s8 }
  0x5e   : > { %p8013_p8 = pnand %p8011_p6, %p8238_p7 }
  0x60   : > { %p8014_p9 = pneg %p8013_p8 }
  0x62   : > { %p8019_p3 = pnand %p8017_p2, %p8014_p9 }
  0x64   : > { %8022 = shalt.err (!%p8019_p3)
}
  0x65   : > { %s8023_s27 = scalar_lea.vmem %s410_s18, 128  ;;  %p8031_p13 = scmp.lt.s32.totalorder %s410_s18, %s410_s18 }
  0x66   : > { %p8024_p10 = scmp.ne.s32.totalorder %s410_s18, %s8023_s27  ;;  %p8032_p0 = scmp.lt.s32.totalorder %s8023_s27, %s8023_s27 }
  0x68   : > { %p8026_p11 = pnand %p8024_p10, %p8238_p7  ;;  %p8033_p1 = por %p8032_p0, %p8031_p13 }
  0x6a   : > { %p8027_p12 = pneg %p8026_p11 }
  0x6c   : > { %p8034_p4 = pnand %p8033_p1, %p8027_p12 }
  0x6e   : > { %8037 = shalt.err (!%p8034_p4)
}
  0x6f   : > { %s9564_s9 = smov 1   ;;  %s9565_s24 = smov 16  }
  0x70   : > { %7570 = dma.hbm_to_vmem [thread:$0]  (!%p8224_p5), %s9540_s8, 128, %s410_s18, [#allocation6], %s9565_s24, %s9565_s24, %s9564_s9  }
  0x71   : > { %s8038_s19 = scalar_lea.hbm %s9542_s10, 128 }
  0x72   : > { %p8039_p6 = scmp.ne.s32.totalorder %s9542_s10, %s8038_s19  ;;  %p8045_p2 = scmp.lt.u32.totalorder %s8038_s19, %s9542_s10 }
  0x74   : > { %p8041_p8 = pnand %p8039_p6, %p8238_p7 }
  0x76   : > { %p8042_p9 = pneg %p8041_p8 }
  0x78   : > { %p8047_p3 = pnand %p8045_p2, %p8042_p9 }
  0x7a   : > { %8050 = shalt.err (!%p8047_p3)
}
  0x7b   : > { %s8051_s18 = scalar_lea.vmem %s8306_s23, 128  ;;  %p8059_p13 = scmp.lt.s32.totalorder %s8306_s23, %s8306_s23 }
  0x7c   : > { %p8052_p10 = scmp.ne.s32.totalorder %s8306_s23, %s8051_s18  ;;  %p8060_p0 = scmp.lt.s32.totalorder %s8051_s18, %s8051_s18 }
  0x7e   : > { %p8054_p11 = pnand %p8052_p10, %p8238_p7  ;;  %p8061_p1 = por %p8060_p0, %p8059_p13 }
  0x80   : > { %p8055_p12 = pneg %p8054_p11 }
  0x82   : > { %p8062_p4 = pnand %p8061_p1, %p8055_p12 }
  0x84   : > { %8065 = shalt.err (!%p8062_p4)
}
  0x85   : > { %7576 = dma.hbm_to_vmem [thread:$0]  (!%p8224_p5), %s9542_s10, 128, %s8306_s23, [#allocation9], %s9565_s24, %s9565_s24, %s9564_s9  }
  0x86   : > { %s8127_s29 = smov [#allocation11]   ;;  %s8066_s25 = scalar_lea.hbm %s9543_s11, 512 }
  0x87   : > { %s448_s21 = sshll.u32 %s8127_s29, 4  ;;  %p8067_p6 = scmp.ne.s32.totalorder %s9543_s11, %s8066_s25  ;;  %s449_s21 = int_to_ptr.vmem [resolvable:$true] %s448_s21 }
  0x88   : > { %p8073_p2 = scmp.lt.u32.totalorder %s8066_s25, %s9543_s11 }
  0x89   : > { %p8069_p8 = pnand %p8067_p6, %p8238_p7 }
  0x8b   : > { %p8070_p9 = pneg %p8069_p8 }
  0x8d   : > { %p8075_p3 = pnand %p8073_p2, %p8070_p9 }
  0x8f   : > { %8078 = shalt.err (!%p8075_p3)
}
  0x90   : > { %s8079_s23 = scalar_lea.vmem %s449_s21, 512  ;;  %p8087_p13 = scmp.lt.s32.totalorder %s449_s21, %s449_s21 }
  0x91   : > { %p8080_p10 = scmp.ne.s32.totalorder %s449_s21, %s8079_s23  ;;  %p8088_p0 = scmp.lt.s32.totalorder %s8079_s23, %s8079_s23 }
  0x93   : > { %p8082_p11 = pnand %p8080_p10, %p8238_p7  ;;  %p8089_p1 = por %p8088_p0, %p8087_p13 }
  0x95   : > { %p8083_p12 = pneg %p8082_p11 }
  0x97   : > { %p8090_p4 = pnand %p8089_p1, %p8083_p12 }
  0x99   : > { %8093 = shalt.err (!%p8090_p4)
}
  0x9a   : > { %s9566_s9 = smov 4   ;;  %s9567_s24 = smov 64  }
  0x9b   : > { %7579 = dma.hbm_to_vmem [thread:$0]  (!%p8224_p5), %s9543_s11, 512, %s449_s21, [#allocation12], %s9567_s24, %s9567_s24, %s9566_s9  }
  0x9c   : > { %p9568_p6 = scmp.ne.s32.totalorder %s9559_s17, 0 }
  0x9d   : > { %p9569_p7 = scmp.eq.s32.totalorder (!%p9568_p6), %s8209_s16, 0 }
  0x9e   : > { %478 = sbr.rel (%p9568_p6) target bundleno = 8349 (0x209d), region = 76 }
  0xa5   : > { %8099 = dma.done.wait (%p9569_p7), [#allocation4], 256   ;;  %p9570_p8 = pmov %p9569_p7 }
  0xa6   : > { %p9571_p9 = pmov %p9569_p7 }
  0xa7   : > { %8101 = vsyncadd (%p9570_p8), [#allocation4], 4294967040 }
  0xa8   : > { %8103 = dma.done.wait (%p9571_p9), [#allocation6], 144   ;;  %p9572_p2 = pmov %p9569_p7 }
  0xaa   : > { %8105 = vsyncadd (%p9572_p2), [#allocation6], 4294967152  ;;  %p9573_p3 = pmov %p9572_p2 }
  0xab   : > { %p9574_p5 = pmov %p9572_p2 }
  0xac   : > { %8107 = dma.done.wait (%p9573_p3), [#allocation9], 256  }
  0xad   : > { %8109 = vsyncadd (%p9574_p5), [#allocation9], 4294967040  ;;  %p9575_p10 = pmov %p9572_p2 }
  0xae   : > { %p9576_p11 = pmov %p9572_p2 }
  0xaf   : > { %8111 = dma.done.wait (%p9575_p10), [#allocation12], 512  }
  0xb0   : > { %8113 = vsyncadd (%p9576_p11), [#allocation12], 4294966784  ;;  %p544_p12 = scmp.lt.s32.totalorder %s8209_s16, 1  ;;  %vm604_vm0 = vcmask 31744   ;;  %v7610_v0 = vld [vmem:[%s9533_s1] sm:$0xff]   ;;  %v7611_v1 = vld [vmem:[%s9533_s1 + $0x8] sm:$0xff]  }
  0xb1   : > { %7465 = vmatprep.subr.msk.bf16.mxu0 %vm604_vm0, %v7610_v0  ;;  %v618_v2 = vsel %vm604_vm0, %v7610_v0, 0  ;;  %v621_v4 = vsel %vm604_vm0, %v7611_v1, 0  ;;  %v7616_v8 = vld [vmem:[#allocation3] sm:$0xff]   ;;  %vm761_vm1 = vcmask 261120   ;;  %v7617_v10 = vld [vmem:[#allocation3 + $0x8] sm:$0xff]   ;;  %vm1656_vm2 = vcmask 64512  }
  0xb2   : > { %s9579_s16 = smov (!%p544_p12, %s8209_s16), 1  ;;  %6778 = vmatpush3.bf16.xpose.msra.mxu0 %v618_v2  ;;  %7467 = vmatprep.subr.msk.bf16.mxu1 %vm761_vm1, %v7616_v8  ;;  %v775_v9 = vsel %vm761_vm1, %v7616_v8, 0  ;;  %v778_v11 = vsel %vm761_vm1, %v7617_v10, 0  ;;  %v6187_v12 = vld [vmem:[%s9534_s2] ss:$0 sm:$0xff]  ;;  %vm1746_vm3 = vcmask 523264  }
  0xb3   : > { %s6463_s17 = sshll.u32 %s9579_s16, 5  ;;  %7466 = vmatprep.subr.msk.bf16.mxu0 %vm604_vm0, %v7611_v1  ;;  %6790 = vmatpush3.bf16.xpose.msra.mxu1 %v775_v9  ;;  %vm1933_vm4 = vcmask 1043456   ;;  %s6464_s28 = sshll.u32 %s9579_s16, 6 }
  0xb4   : > { %s548_s30 = scalar_lea.vmem %s9532_s0, %s6463_s17  ;;  %7468 = vmatprep.subr.msk.bf16.mxu1 %vm761_vm1, %v7617_v10  ;;  %s553_s21 = scalar_lea.vmem %s9546_s14, %s6464_s28 }
  0xb5   : > { %v7612_v3 = vld [vmem:[%s548_s30] sm:$0xff]   ;;  %v7613_v5 = vld [vmem:[%s548_s30 + $0x8] sm:$0xff]   ;;  %v7614_v6 = vld [vmem:[%s548_s30 + $0x10] sm:$0xff]  }
  0xb6   : > { %6781 = vmatprep.mubr.msk.bf16.mxu0 %vm604_vm0, %v7612_v3  ;;  %v7615_v7 = vld [vmem:[%s548_s30 + $0x18] sm:$0xff]  }
  0xba   : > { %6780 = vmatpush3.bf16.xpose.msra.mxu0 %v621_v4 }
  0xbb   : > { %6792 = vmatpush3.bf16.xpose.msra.mxu1 %v778_v11 }
  0xc1   : > { %6782 = vmatmul.mubr.msk.bf16.vlgmr.msra.gmra.mrb[0].mxu0 %vm604_vm0, %v7613_v5 }
  0xc2   : > { %6785 = vmatprep.mubr.msk.bf16.mxu0 %vm604_vm0, %v7614_v6 }
  0xc9   : > { %6786 = vmatmul.mubr.msk.bf16.gmra.mrb[4].mxu0 %vm604_vm0, %v7615_v7 }
 0x194   : > { %v6783_v13 = vpop.f32.mrb[0].mxu0 }
 0x195   : > { %v8423_v14 = vadd.f32 %v6783_v13, %v6187_v12  ;;  %v657_v15 = vpop.f32.mrb[1].mxu0 }
 0x196   : > { %v8425_v16 = vadd.f32 %v6187_v12, %v657_v15  ;;  %v6784_v17 = vpop.f32.mrb[2].mxu0 }
 0x197   : > { %v690_v18 = vsub.f32 0.0, %v8423_v14  ;;  %v669_v19 = vadd.f32 %v6784_v17, %v6187_v12  ;;  %v660_v20 = vpop.f32.mrb[3].mxu0 }
 0x198   : > { %v688_v21 = vsub.f32 0.0, %v8425_v16  ;;  %v661_v22 = vadd.f32 %v6187_v12, %v660_v20 }
 0x199   : > { %v700_v23 = vmul.f32 1.442695, %v690_v18  ;;  %v691_v24 = vsub.f32 0.0, %v669_v19 }
 0x19a   : > { %v696_v25 = vmul.f32 1.442695, %v688_v21  ;;  %v689_v26 = vsub.f32 0.0, %v661_v22  ;;  %v6215_v21 = vld [vmem:[%s9538_s6 + $0x4] sm:$0xf] }
 0x19b   : > { %7622 = vpow2.f32 %v700_v23  ;;  %v702_v27 = vmul.f32 1.442695, %v691_v24  ;;  %v6198_v23 = vld [vmem:[#allocation5] ss:$0 sm:$0xff] }
 0x19c   : > { %7624 = vpow2.f32 %v696_v25  ;;  %v698_v28 = vmul.f32 1.442695, %v689_v26  ;;  %v6787_v29 = vpop.f32.mrb[4].mxu0 }
 0x19d   : > { %7626 = vpow2.f32 %v702_v27  ;;  %v8429_v30 = vadd.f32 %v6787_v29, %v6187_v12  ;;  %v673_v31 = vpop.f32.mrb[5].mxu0 }
 0x19e   : > { %7628 = vpow2.f32 %v698_v28  ;;  %v674_v32 = vadd.f32 %v6187_v12, %v673_v31  ;;  %v6788_v33 = vpop.f32.mrb[6].mxu0 }
 0x19f   : > { %v694_v34 = vsub.f32 0.0, %v8429_v30  ;;  %v685_v35 = vadd.f32 %v6788_v33, %v6187_v12  ;;  %v676_v36 = vpop.f32.mrb[7].mxu0 }
 0x1a0   : > { %v692_v37 = vsub.f32 0.0, %v674_v32  ;;  %v677_v38 = vadd.f32 %v6187_v12, %v676_v36 }
 0x1a1   : > { %v708_v39 = vmul.f32 1.442695, %v694_v34  ;;  %v695_v40 = vsub.f32 0.0, %v685_v35 }
 0x1a2   : > { %v704_v41 = vmul.f32 1.442695, %v692_v37  ;;  %v693_v42 = vsub.f32 0.0, %v677_v38 }
 0x1a3   : > { %7630 = vpow2.f32 %v708_v39  ;;  %v710_v43 = vmul.f32 1.442695, %v695_v40 }
 0x1a4   : > { %7632 = vpow2.f32 %v704_v41  ;;  %v706_v44 = vmul.f32 1.442695, %v693_v42 }
 0x1a5   : > { %v7623_v45 = vpop.eup %7622  ;;  %7634 = vpow2.f32 %v710_v43 }
 0x1a6   : > { %v7625_v46 = vpop.eup %7624  ;;  %v714_v47 = vadd.f32 1.0, %v7623_v45  ;;  %7636 = vpow2.f32 %v706_v44 }
 0x1a7   : > { %v7627_v48 = vpop.eup %7626  ;;  %v712_v49 = vadd.f32 1.0, %v7625_v46 }
 0x1a8   : > { %v7629_v50 = vpop.eup %7628  ;;  %7638 = vrcp.f32 %v714_v47  ;;  %v715_v51 = vadd.f32 1.0, %v7627_v48 }
 0x1a9   : > { %7640 = vrcp.f32 %v712_v49  ;;  %v713_v52 = vadd.f32 1.0, %v7629_v50 }
 0x1aa   : > { %7642 = vrcp.f32 %v715_v51 }
 0x1ab   : > { %7644 = vrcp.f32 %v713_v52 }
 0x1ad   : > { %v7631_v53 = vpop.eup %7630 }
 0x1ae   : > { %v7633_v54 = vpop.eup %7632  ;;  %v718_v55 = vadd.f32 1.0, %v7631_v53 }
 0x1af   : > { %v7635_v56 = vpop.eup %7634  ;;  %v716_v57 = vadd.f32 1.0, %v7633_v54  ;;  %v1056_v54 = vsel %vm761_vm1, %v6215_v21, 0 }
 0x1b0   : > { %v7637_v58 = vpop.eup %7636  ;;  %7646 = vrcp.f32 %v718_v55  ;;  %v719_v59 = vadd.f32 1.0, %v7635_v56  ;;  %v6227_v56 = vld [vmem:[%s9538_s6 + $0x8] sm:$0xf] }
 0x1b1   : > { %7648 = vrcp.f32 %v716_v57  ;;  %v717_v60 = vadd.f32 1.0, %v7637_v58  ;;  %v6233_v57 = vld [vmem:[%s9539_s7 + $0x8] sm:$0xf] }
 0x1b2   : > { %v7639_v61 = vpop.eup %7638  ;;  %7650 = vrcp.f32 %v719_v59 }
 0x1b3   : > { %v7641_v62 = vpop.eup %7640  ;;  %7652 = vrcp.f32 %v717_v60  ;;  %v730_v4 = vmul.f32 %v7639_v61, %v8423_v14  ;;  %v873_v14 = vld [vmem:[%s9538_s6] sm:$0xf] }
 0x1b4   : > { %v7643_v63 = vpop.eup %7642  ;;  %v728_v2 = vmul.f32 %v7641_v62, %v8425_v16  ;;  %7469 = vmatprep.subr.msk.bf16.mxu0 %vm761_vm1, %v873_v14  ;;  %v894_v18 = vsel %vm761_vm1, %v873_v14, 0 }
 0x1b5   : > { %v7645_v0 = vpop.eup %7644  ;;  %v731_v1 = vmul.f32 %v7643_v63, %v669_v19  ;;  %6802 = vmatpush3.bf16.xpose.msra.mxu0 %v894_v18  ;;  %v965_v19 = vld [vmem:[%s9539_s7] sm:$0xf] }
 0x1b6   : > { %v729_v3 = vmul.f32 %v7645_v0, %v661_v22  ;;  %7470 = vmatprep.subr.msk.bf16.mxu1 %vm761_vm1, %v965_v19  ;;  %v974_v20 = vsel %vm761_vm1, %v965_v19, 0  ;;  %7471 = vmatprep.subr.msk.bf16.mxu0 %vm761_vm1, %v6215_v21  ;;  %v6221_v22 = vld [vmem:[%s9539_s7 + $0x4] sm:$0xf]  ;;  %v1220_v0 = vsel %vm761_vm1, %v6227_v56, 0 }
 0x1b7   : > { %v741_v6 = vpack.c.bf16 %v731_v1, %v730_v4  ;;  %v1138_v55 = vsel %vm761_vm1, %v6221_v22, 0 }
 0x1b8   : > { %v740_v5 = vpack.c.bf16 %v729_v3, %v728_v2 }
 0x1ba   : > { %v7647_v7 = vpop.eup %7646  ;;  %6793 = vmatprep.mubr.msk.bf16.mxu1 %vm761_vm1, %v740_v5 }
 0x1bb   : > { %v7649_v8 = vpop.eup %7648  ;;  %6794 = vmatmul.mubr.msk.bf16.vlgmr.msra.gmra.mrb[0].mxu1 %vm761_vm1, %v741_v6  ;;  %v734_v15 = vmul.f32 %v7647_v7, %v8429_v30  ;;  %v1564_v6 = vld [vmem:[%s9537_s5] sm:$0xf] }
 0x1bc   : > { %v7651_v9 = vpop.eup %7650  ;;  %v732_v12 = vmul.f32 %v7649_v8, %v674_v32  ;;  %6812 = vmatpush3.bf16.xpose.msra.mxu1 %v974_v20  ;;  %v1585_v7 = vsel %vm761_vm1, %v1564_v6, 0 }
 0x1bd   : > { %v7653_v10 = vpop.eup %7652  ;;  %v735_v11 = vmul.f32 %v7651_v9, %v685_v35  ;;  %7472 = vmatprep.subr.msk.bf16.mxu1 %vm761_vm1, %v6221_v22  ;;  %v6205_v9 = vld [vmem:[#allocation8] ss:$0 sm:$0xff] }
 0x1be   : > { %v733_v13 = vmul.f32 %v7653_v10, %v677_v38 }
 0x1bf   : > { %v743_v16 = vpack.c.bf16 %v735_v11, %v734_v15 }
 0x1c0   : > { %v742_v17 = vpack.c.bf16 %v733_v13, %v732_v12 }
 0x1c2   : > { %6797 = vmatprep.mubr.msk.bf16.mxu1 %vm761_vm1, %v742_v17 }
 0x1c3   : > { %6798 = vmatmul.mubr.msk.bf16.gmra.mrb[4].mxu1 %vm761_vm1, %v743_v16 }
 0x28e   : > { %v6795_v24 = vpop.f32.mrb[0].mxu1 }
 0x28f   : > { %v823_v25 = vadd.f32 %v6795_v24, %v6198_v23  ;;  %v814_v26 = vpop.f32.mrb[1].mxu1 }
 0x290   : > { %v815_v27 = vadd.f32 %v6198_v23, %v814_v26  ;;  %v6796_v28 = vpop.f32.mrb[2].mxu1 }
 0x291   : > { %v847_v29 = vadd.f32 %v823_v25, %v730_v4  ;;  %v826_v30 = vadd.f32 %v6796_v28, %v6198_v23  ;;  %v817_v31 = vpop.f32.mrb[3].mxu1 }
 0x292   : > { %v845_v32 = vadd.f32 %v815_v27, %v728_v2  ;;  %v818_v33 = vadd.f32 %v6198_v23, %v817_v31  ;;  %v6239_v2 = vld [vmem:[%s9538_s6 + $0xc] sm:$0xf] }
 0x293   : > { %855 = vst.msk [vmem:[#allocation2 + $0x10] sm:$0xff] %vm761_vm1, %v847_v29  ;;  %v848_v34 = vadd.f32 %v826_v30, %v731_v1  ;;  %v1302_v1 = vsel %vm761_vm1, %v6233_v57, 0  ;;  %v1384_v4 = vsel %vm761_vm1, %v6239_v2, 0 }
 0x294   : > { %853 = vst.msk [vmem:[#allocation2] sm:$0xff] %vm761_vm1, %v845_v32  ;;  %v846_v35 = vadd.f32 %v818_v33, %v729_v3  ;;  %v6245_v3 = vld [vmem:[%s9539_s7 + $0xc] sm:$0xf] }
 0x295   : > { %856 = vst.msk [vmem:[#allocation2 + $0x18] sm:$0xff] %vm761_vm1, %v848_v34  ;;  %v1466_v5 = vsel %vm761_vm1, %v6245_v3, 0 }
 0x296   : > { %854 = vst.msk [vmem:[#allocation2 + $0x8] sm:$0xff] %vm761_vm1, %v846_v35  ;;  %v6799_v36 = vpop.f32.mrb[4].mxu1 }
 0x297   : > { %v839_v37 = vadd.f32 %v6799_v36, %v6198_v23  ;;  %v830_v38 = vpop.f32.mrb[5].mxu1 }
 0x298   : > { %v831_v39 = vadd.f32 %v6198_v23, %v830_v38  ;;  %v6800_v40 = vpop.f32.mrb[6].mxu1 }
 0x299   : > { %v851_v41 = vadd.f32 %v839_v37, %v734_v15  ;;  %v842_v42 = vadd.f32 %v6800_v40, %v6198_v23  ;;  %v833_v43 = vpop.f32.mrb[7].mxu1 }
 0x29a   : > { %v849_v44 = vadd.f32 %v831_v39, %v732_v12  ;;  %v834_v45 = vadd.f32 %v6198_v23, %v833_v43  ;;  %v863_v52 = vld [vmem:[#allocation2 + $0x10] sm:$0xff] }
 0x29b   : > { %859 = vst.msk [vmem:[#allocation2 + $0x30] sm:$0xff] %vm761_vm1, %v851_v41  ;;  %v852_v46 = vadd.f32 %v842_v42, %v735_v11  ;;  %v861_v49 = vld [vmem:[#allocation2] sm:$0xff] }
 0x29c   : > { %857 = vst.msk [vmem:[#allocation2 + $0x20] sm:$0xff] %vm761_vm1, %v849_v44  ;;  %v850_v47 = vadd.f32 %v834_v45, %v733_v13  ;;  %v864_v48 = vld [vmem:[#allocation2 + $0x18] sm:$0xff]  ;;  %v6210_v11 = vld [vmem:[#allocation10] ss:$0 sm:$0xff] }
 0x29d   : > { %860 = vst.msk [vmem:[#allocation2 + $0x38] sm:$0xff] %vm761_vm1, %v852_v46  ;;  %v862_v50 = vld [vmem:[#allocation2 + $0x8] sm:$0xff]  ;;  %v8467_v53 = vpack.c.bf16 %v864_v48, %v863_v52  ;;  %v6216_v52 = vld [vmem:[#allocation8 + $0x1] ss:$0 sm:$0xff] }
 0x29e   : > { %858 = vst.msk [vmem:[#allocation2 + $0x28] sm:$0xff] %vm761_vm1, %v850_v47  ;;  %v8465_v51 = vpack.c.bf16 %v862_v50, %v861_v49 }
 0x2a0   : > { %6803 = vmatprep.mubr.msk.bf16.mxu0 %vm761_vm1, %v8465_v51  ;;  %6813 = vmatprep.mubr.msk.bf16.mxu1 %vm761_vm1, %v8465_v51 }
 0x2a1   : > { %6804 = vmatmul.mubr.msk.bf16.vlgmr.msra.gmra.mrb[8].mxu0 %vm761_vm1, %v8467_v53  ;;  %6814 = vmatmul.mubr.msk.bf16.vlgmr.msra.gmra.mrb[8].mxu1 %vm761_vm1, %v8467_v53 }
 0x2a2   : > { %6822 = vmatpush3.bf16.xpose.msra.mxu0 %v1056_v54  ;;  %6832 = vmatpush3.bf16.xpose.msra.mxu1 %v1138_v55  ;;  %v867_v62 = vld [vmem:[#allocation2 + $0x30] sm:$0xff] }
 0x2a3   : > { %7473 = vmatprep.subr.msk.bf16.mxu0 %vm761_vm1, %v6227_v56  ;;  %7474 = vmatprep.subr.msk.bf16.mxu1 %vm761_vm1, %v6233_v57  ;;  %v865_v59 = vld [vmem:[#allocation2 + $0x20] sm:$0xff] }
 0x2a4   : > { %v868_v58 = vld [vmem:[#allocation2 + $0x38] sm:$0xff]  ;;  %v6222_v56 = vld [vmem:[#allocation10 + $0x1] ss:$0 sm:$0xff] }
 0x2a5   : > { %v866_v60 = vld [vmem:[#allocation2 + $0x28] sm:$0xff]  ;;  %v8489_v63 = vpack.c.bf16 %v868_v58, %v867_v62 }
 0x2a6   : > { %v8487_v61 = vpack.c.bf16 %v866_v60, %v865_v59 }
 0x2a8   : > { %6807 = vmatprep.mubr.msk.bf16.mxu0 %vm761_vm1, %v8487_v61  ;;  %6817 = vmatprep.mubr.msk.bf16.mxu1 %vm761_vm1, %v8487_v61 }
 0x2a9   : > { %6808 = vmatmul.mubr.msk.bf16.gmra.mrb[12].mxu0 %vm761_vm1, %v8489_v63  ;;  %6818 = vmatmul.mubr.msk.bf16.gmra.mrb[12].mxu1 %vm761_vm1, %v8489_v63 }
 0x2aa   : > { %6823 = vmatprep.mubr.msk.bf16.mxu0 %vm761_vm1, %v8465_v51  ;;  %6833 = vmatprep.mubr.msk.bf16.mxu1 %vm761_vm1, %v8465_v51 }
 0x2b1   : > { %6824 = vmatmul.mubr.msk.bf16.vlgmr.msra.gmra.mrb[16].mxu0 %vm761_vm1, %v8467_v53  ;;  %6834 = vmatmul.mubr.msk.bf16.vlgmr.msra.gmra.mrb[16].mxu1 %vm761_vm1, %v8467_v53 }
 0x2b2   : > { %6842 = vmatpush3.bf16.xpose.msra.mxu0 %v1220_v0  ;;  %6827 = vmatprep.mubr.msk.bf16.mxu0 %vm761_vm1, %v8487_v61 }
 0x2b3   : > { %6837 = vmatprep.mubr.msk.bf16.mxu1 %vm761_vm1, %v8487_v61  ;;  %6852 = vmatpush3.bf16.xpose.msra.mxu1 %v1302_v1 }
 0x2b4   : > { %7475 = vmatprep.subr.msk.bf16.mxu0 %vm761_vm1, %v6239_v2  ;;  %7476 = vmatprep.subr.msk.bf16.mxu1 %vm761_vm1, %v6245_v3 }
 0x2b9   : > { %6828 = vmatmul.mubr.msk.bf16.gmra.mrb[20].mxu0 %vm761_vm1, %v8489_v63  ;;  %6838 = vmatmul.mubr.msk.bf16.gmra.mrb[20].mxu1 %vm761_vm1, %v8489_v63 }
 0x2ba   : > { %6843 = vmatprep.mubr.msk.bf16.mxu0 %vm761_vm1, %v8465_v51  ;;  %6853 = vmatprep.mubr.msk.bf16.mxu1 %vm761_vm1, %v8465_v51 }
 0x2c1   : > { %6844 = vmatmul.mubr.msk.bf16.vlgmr.msra.gmra.mrb[24].mxu0 %vm761_vm1, %v8467_v53  ;;  %6854 = vmatmul.mubr.msk.bf16.vlgmr.msra.gmra.mrb[24].mxu1 %vm761_vm1, %v8467_v53 }
 0x2c2   : > { %6862 = vmatpush3.bf16.xpose.msra.mxu0 %v1384_v4  ;;  %6847 = vmatprep.mubr.msk.bf16.mxu0 %vm761_vm1, %v8487_v61 }
 0x2c3   : > { %6857 = vmatprep.mubr.msk.bf16.mxu1 %vm761_vm1, %v8487_v61  ;;  %6872 = vmatpush3.bf16.xpose.msra.mxu1 %v1466_v5 }
 0x2c4   : > { %7477 = vmatprep.subr.msk.bf16.mxu0 %vm761_vm1, %v1564_v6 }
 0x2c9   : > { %6848 = vmatmul.mubr.msk.bf16.gmra.mrb[28].mxu0 %vm761_vm1, %v8489_v63  ;;  %6858 = vmatmul.mubr.msk.bf16.gmra.mrb[28].mxu1 %vm761_vm1, %v8489_v63 }
 0x2ca   : > { %6863 = vmatprep.mubr.msk.bf16.mxu0 %vm761_vm1, %v8465_v51  ;;  %6873 = vmatprep.mubr.msk.bf16.mxu1 %vm761_vm1, %v8465_v51 }
 0x2d1   : > { %6864 = vmatmul.mubr.msk.bf16.vlgmr.msra.gmra.mrb[32].mxu0 %vm761_vm1, %v8467_v53  ;;  %6874 = vmatmul.mubr.msk.bf16.vlgmr.msra.gmra.mrb[32].mxu1 %vm761_vm1, %v8467_v53 }
 0x2d2   : > { %6882 = vmatpush3.bf16.xpose.msra.mxu0 %v1585_v7  ;;  %6867 = vmatprep.mubr.msk.bf16.mxu0 %vm761_vm1, %v8487_v61 }
 0x2d3   : > { %6877 = vmatprep.mubr.msk.bf16.mxu1 %vm761_vm1, %v8487_v61 }
 0x2d9   : > { %6868 = vmatmul.mubr.msk.bf16.gmra.mrb[36].mxu0 %vm761_vm1, %v8489_v63  ;;  %6878 = vmatmul.mubr.msk.bf16.gmra.mrb[36].mxu1 %vm761_vm1, %v8489_v63 }
 0x2da   : > { %6883 = vmatprep.mubr.msk.bf16.mxu0 %vm761_vm1, %v8465_v51 }
 0x2e1   : > { %6884 = vmatmul.mubr.msk.bf16.vlgmr.msra.gmra.mrb[40].mxu0 %vm761_vm1, %v8467_v53 }
 0x2e2   : > { %6887 = vmatprep.mubr.msk.bf16.mxu0 %vm761_vm1, %v8487_v61 }
 0x2e9   : > { %6888 = vmatmul.mubr.msk.bf16.gmra.mrb[44].mxu0 %vm761_vm1, %v8489_v63 }
 0x374   : > { %v6805_v8 = vpop.f32.mrb[8].mxu0  ;;  %v6815_v10 = vpop.f32.mrb[8].mxu1 }
 0x375   : > { %v930_v12 = vpop.f32.mrb[9].mxu0  ;;  %v1010_v13 = vpop.f32.mrb[9].mxu1  ;;  %v939_v16 = vadd.f32 %v6805_v8, %v6205_v9  ;;  %v1019_v14 = vadd.f32 %v6815_v10, %v6210_v11 }
 0x376   : > { %v6806_v15 = vpop.f32.mrb[10].mxu0  ;;  %v6816_v17 = vpop.f32.mrb[10].mxu1  ;;  %v931_v22 = vadd.f32 %v6205_v9, %v930_v12  ;;  %v1011_v23 = vadd.f32 %v6210_v11, %v1010_v13 }
 0x377   : > { %v942_v18 = vadd.f32 %v6806_v15, %v6205_v9  ;;  %v1022_v19 = vadd.f32 %v6816_v17, %v6210_v11  ;;  %v933_v20 = vpop.f32.mrb[11].mxu0  ;;  %v1013_v21 = vpop.f32.mrb[11].mxu1 }
 0x378   : > { %v934_v24 = vadd.f32 %v6205_v9, %v933_v20  ;;  %v1014_v25 = vadd.f32 %v6210_v11, %v1013_v21 }
 0x379   : > { %v962_v26 = vpack.c.bf16 %v942_v18, %v939_v16  ;;  %v1042_v27 = vpack.c.bf16 %v1022_v19, %v1019_v14 }
 0x37a   : > { %v961_v28 = vpack.c.bf16 %v934_v24, %v931_v22  ;;  %v1041_v29 = vpack.c.bf16 %v1014_v25, %v1011_v23 }
 0x37b   : > { %v1673_v57 = vsel %vm1656_vm2, %v962_v26, 0 }
 0x37c   : > { %v6809_v30 = vpop.f32.mrb[12].mxu0  ;;  %v6819_v31 = vpop.f32.mrb[12].mxu1  ;;  %7478 = vmatprep.subr.msk.bf16.mxu1 %vm1656_vm2, %v961_v28  ;;  %6907 = vmatprep.subr.bf16.mxu0 %v1041_v29  ;;  %v1670_v32 = vsel %vm1656_vm2, %v961_v28, 0 }
 0x37d   : > { %v946_v33 = vpop.f32.mrb[13].mxu0  ;;  %v1026_v34 = vpop.f32.mrb[13].mxu1  ;;  %6892 = vmatpush3.bf16.xpose.msra.mxu1 %v1670_v32  ;;  %6908 = vmatpush3.bf16.msra.mxu0 %v1041_v29  ;;  %v955_v37 = vadd.f32 %v6809_v30, %v6205_v9  ;;  %v1035_v38 = vadd.f32 %v6819_v31, %v6210_v11 }
 0x37e   : > { %v6810_v35 = vpop.f32.mrb[14].mxu0  ;;  %v6820_v36 = vpop.f32.mrb[14].mxu1  ;;  %7479 = vmatprep.subr.msk.bf16.mxu1 %vm1656_vm2, %v962_v26  ;;  %6909 = vmatprep.subr.bf16.mxu0 %v1042_v27  ;;  %v947_v43 = vadd.f32 %v6205_v9, %v946_v33  ;;  %v1027_v44 = vadd.f32 %v6210_v11, %v1026_v34 }
 0x37f   : > { %v958_v39 = vadd.f32 %v6810_v35, %v6205_v9  ;;  %v1038_v40 = vadd.f32 %v6820_v36, %v6210_v11  ;;  %v949_v41 = vpop.f32.mrb[15].mxu0  ;;  %v1029_v42 = vpop.f32.mrb[15].mxu1  ;;  %v6234_v35 = vld [vmem:[#allocation10 + $0x2] ss:$0 sm:$0xff] }
 0x380   : > { %v950_v45 = vadd.f32 %v6205_v9, %v949_v41  ;;  %v1030_v46 = vadd.f32 %v6210_v11, %v1029_v42  ;;  %v8598_v36 = vld [vmem:[%s9537_s5 + $0x4] sm:$0xf] }
 0x381   : > { %v964_v47 = vpack.c.bf16 %v958_v39, %v955_v37  ;;  %v1044_v48 = vpack.c.bf16 %v1038_v40, %v1035_v38  ;;  %6910 = vmatpush3.bf16.msra.mxu0 %v1042_v27  ;;  %v6228_v38 = vld [vmem:[#allocation8 + $0x2] ss:$0 sm:$0xff] }
 0x382   : > { %v963_v49 = vpack.c.bf16 %v950_v45, %v947_v43  ;;  %v1043_v50 = vpack.c.bf16 %v1030_v46, %v1027_v44 }
 0x383   : > { %v1679_v40 = vsel %vm1656_vm2, %v964_v47, 0 }
 0x384   : > { %v6825_v54 = vpop.f32.mrb[16].mxu0  ;;  %v6835_v55 = vpop.f32.mrb[16].mxu1  ;;  %6911 = vmatprep.subr.bf16.mxu0 %v1043_v50  ;;  %v1676_v16 = vsel %vm1656_vm2, %v963_v49, 0 }
 0x385   : > { %v1101_v58 = vadd.f32 %v6825_v54, %v6216_v52  ;;  %v1092_v59 = vpop.f32.mrb[17].mxu0  ;;  %v1174_v60 = vpop.f32.mrb[17].mxu1  ;;  %6894 = vmatpush3.bf16.xpose.msra.mxu1 %v1673_v57  ;;  %6912 = vmatpush3.bf16.msra.mxu0 %v1043_v50  ;;  %v1183_v1 = vadd.f32 %v6835_v55, %v6222_v56 }
 0x386   : > { %v6826_v62 = vpop.f32.mrb[18].mxu0  ;;  %v6836_v0 = vpop.f32.mrb[18].mxu1  ;;  %7480 = vmatprep.subr.msk.bf16.mxu1 %vm1656_vm2, %v963_v49  ;;  %6913 = vmatprep.subr.bf16.mxu0 %v1044_v48  ;;  %v1093_v6 = vadd.f32 %v6216_v52, %v1092_v59  ;;  %v1175_v7 = vadd.f32 %v6222_v56, %v1174_v60 }
 0x387   : > { %v1104_v2 = vadd.f32 %v6826_v62, %v6216_v52  ;;  %v1186_v3 = vadd.f32 %v6836_v0, %v6222_v56  ;;  %v1095_v4 = vpop.f32.mrb[19].mxu0  ;;  %v1177_v5 = vpop.f32.mrb[19].mxu1 }
 0x388   : > { %v1096_v8 = vadd.f32 %v6216_v52, %v1095_v4  ;;  %v1178_v9 = vadd.f32 %v6222_v56, %v1177_v5 }
 0x389   : > { %v8577_v10 = vpack.c.bf16 %v1104_v2, %v1101_v58  ;;  %v8579_v11 = vpack.c.bf16 %v1186_v3, %v1183_v1  ;;  %6914 = vmatpush3.bf16.msra.mxu0 %v1044_v48 }
 0x38a   : > { %v8581_v12 = vpack.c.bf16 %v1096_v8, %v1093_v6  ;;  %v8583_v13 = vpack.c.bf16 %v1178_v9, %v1175_v7 }
 0x38c   : > { %v6829_v15 = vpop.f32.mrb[20].mxu0  ;;  %v6839_v17 = vpop.f32.mrb[20].mxu1 }
 0x38d   : > { %v1117_v14 = vadd.f32 %v6829_v15, %v6216_v52  ;;  %v1108_v18 = vpop.f32.mrb[21].mxu0  ;;  %v1190_v19 = vpop.f32.mrb[21].mxu1  ;;  %6896 = vmatpush3.bf16.xpose.msra.mxu1 %v1676_v16  ;;  %v1199_v23 = vadd.f32 %v6839_v17, %v6222_v56 }
 0x38e   : > { %v1109_v20 = vadd.f32 %v6216_v52, %v1108_v18  ;;  %v6830_v21 = vpop.f32.mrb[22].mxu0  ;;  %v6840_v22 = vpop.f32.mrb[22].mxu1  ;;  %7481 = vmatprep.subr.msk.bf16.mxu1 %vm1656_vm2, %v964_v47  ;;  %v1191_v28 = vadd.f32 %v6222_v56, %v1190_v19 }
 0x38f   : > { %v1120_v24 = vadd.f32 %v6830_v21, %v6216_v52  ;;  %v1202_v25 = vadd.f32 %v6840_v22, %v6222_v56  ;;  %v1111_v26 = vpop.f32.mrb[23].mxu0  ;;  %v1193_v27 = vpop.f32.mrb[23].mxu1 }
 0x390   : > { %v1112_v29 = vadd.f32 %v6216_v52, %v1111_v26  ;;  %v1194_v30 = vadd.f32 %v6222_v56, %v1193_v27  ;;  %v6246_v26 = vld [vmem:[#allocation10 + $0x3] ss:$0 sm:$0xff] }
 0x391   : > { %v8587_v31 = vpack.c.bf16 %v1120_v24, %v1117_v14  ;;  %v8589_v32 = vpack.c.bf16 %v1202_v25, %v1199_v23  ;;  %v6240_v23 = vld [vmem:[#allocation8 + $0x3] ss:$0 sm:$0xff] }
 0x392   : > { %v8591_v33 = vpack.c.bf16 %v1112_v29, %v1109_v20  ;;  %v8593_v34 = vpack.c.bf16 %v1194_v30, %v1191_v28 }
 0x394   : > { %v6845_v37 = vpop.f32.mrb[24].mxu0  ;;  %v6855_v39 = vpop.f32.mrb[24].mxu1 }
 0x395   : > { %v1347_v41 = vadd.f32 %v6855_v39, %v6234_v35  ;;  %v1256_v42 = vpop.f32.mrb[25].mxu0  ;;  %v1338_v43 = vpop.f32.mrb[25].mxu1  ;;  %6898 = vmatpush3.bf16.xpose.msra.mxu1 %v1679_v40  ;;  %v1265_v46 = vadd.f32 %v6845_v37, %v6228_v38 }
 0x396   : > { %v6846_v44 = vpop.f32.mrb[26].mxu0  ;;  %v6856_v45 = vpop.f32.mrb[26].mxu1  ;;  %7483 = vmatprep.subr.msk.bf16.mxu1 %vm761_vm1, %v8598_v36  ;;  %v1257_v54 = vadd.f32 %v6228_v38, %v1256_v42  ;;  %v1339_v55 = vadd.f32 %v6234_v35, %v1338_v43 }
 0x397   : > { %v1268_v48 = vadd.f32 %v6846_v44, %v6228_v38  ;;  %v1350_v49 = vadd.f32 %v6856_v45, %v6234_v35  ;;  %v1259_v50 = vpop.f32.mrb[27].mxu0  ;;  %v1341_v52 = vpop.f32.mrb[27].mxu1 }
 0x398   : > { %v1260_v56 = vadd.f32 %v6228_v38, %v1259_v50  ;;  %v1342_v57 = vadd.f32 %v6234_v35, %v1341_v52 }
 0x399   : > { %v8603_v58 = vpack.c.bf16 %v1268_v48, %v1265_v46  ;;  %v8605_v47 = vpack.c.bf16 %v1350_v49, %v1347_v41 }
 0x39a   : > { %v8607_v59 = vpack.c.bf16 %v1260_v56, %v1257_v54  ;;  %v8609_v60 = vpack.c.bf16 %v1342_v57, %v1339_v55 }
 0x39c   : > { %v6849_v62 = vpop.f32.mrb[28].mxu0  ;;  %v6859_v0 = vpop.f32.mrb[28].mxu1 }
 0x39d   : > { %v1363_v1 = vadd.f32 %v6859_v0, %v6234_v35  ;;  %v1272_v2 = vpop.f32.mrb[29].mxu0  ;;  %v1354_v3 = vpop.f32.mrb[29].mxu1  ;;  %v1281_v7 = vadd.f32 %v6849_v62, %v6228_v38 }
 0x39e   : > { %v1355_v4 = vadd.f32 %v6234_v35, %v1354_v3  ;;  %v6850_v5 = vpop.f32.mrb[30].mxu0  ;;  %v6860_v6 = vpop.f32.mrb[30].mxu1  ;;  %v1273_v16 = vadd.f32 %v6228_v38, %v1272_v2 }
 0x39f   : > { %v1284_v8 = vadd.f32 %v6850_v5, %v6228_v38  ;;  %v1366_v9 = vadd.f32 %v6860_v6, %v6234_v35  ;;  %v1275_v15 = vpop.f32.mrb[31].mxu0  ;;  %v1357_v17 = vpop.f32.mrb[31].mxu1 }
 0x3a0   : > { %v1276_v14 = vadd.f32 %v6228_v38, %v1275_v15  ;;  %v1358_v18 = vadd.f32 %v6234_v35, %v1357_v17 }
 0x3a1   : > { %v8611_v19 = vpack.c.bf16 %v1284_v8, %v1281_v7  ;;  %v8613_v20 = vpack.c.bf16 %v1366_v9, %v1363_v1 }
 0x3a2   : > { %v8615_v21 = vpack.c.bf16 %v1276_v14, %v1273_v16  ;;  %v8617_v22 = vpack.c.bf16 %v1358_v18, %v1355_v4 }
 0x3a4   : > { %v6865_v24 = vpop.f32.mrb[32].mxu0  ;;  %v6875_v25 = vpop.f32.mrb[32].mxu1 }
 0x3a5   : > { %v1429_v27 = vadd.f32 %v6865_v24, %v6240_v23  ;;  %v1420_v28 = vpop.f32.mrb[33].mxu0  ;;  %v1502_v29 = vpop.f32.mrb[33].mxu1  ;;  %v1511_v39 = vadd.f32 %v6875_v25, %v6246_v26  ;;  %v6252_v24 = vld [vmem:[#allocation7] ss:$0 sm:$0xff] }
 0x3a6   : > { %v6866_v30 = vpop.f32.mrb[34].mxu0  ;;  %v6876_v37 = vpop.f32.mrb[34].mxu1  ;;  %v1421_v42 = vadd.f32 %v6240_v23, %v1420_v28  ;;  %v1503_v43 = vadd.f32 %v6246_v26, %v1502_v29 }
 0x3a7   : > { %v1432_v38 = vadd.f32 %v6866_v30, %v6240_v23  ;;  %v1514_v35 = vadd.f32 %v6876_v37, %v6246_v26  ;;  %v1423_v40 = vpop.f32.mrb[35].mxu0  ;;  %v1505_v41 = vpop.f32.mrb[35].mxu1 }
 0x3a8   : > { %v1424_v44 = vadd.f32 %v6240_v23, %v1423_v40  ;;  %v1506_v45 = vadd.f32 %v6246_v26, %v1505_v41 }
 0x3a9   : > { %v8619_v46 = vpack.c.bf16 %v1432_v38, %v1429_v27  ;;  %v8621_v48 = vpack.c.bf16 %v1514_v35, %v1511_v39 }
 0x3aa   : > { %v8623_v49 = vpack.c.bf16 %v1424_v44, %v1421_v42  ;;  %v8625_v50 = vpack.c.bf16 %v1506_v45, %v1503_v43 }
 0x3ac   : > { %v6869_v52 = vpop.f32.mrb[36].mxu0  ;;  %v6879_v54 = vpop.f32.mrb[36].mxu1 }
 0x3ad   : > { %v1445_v55 = vadd.f32 %v6869_v52, %v6240_v23  ;;  %v1436_v56 = vpop.f32.mrb[37].mxu0  ;;  %v1518_v57 = vpop.f32.mrb[37].mxu1  ;;  %v1527_v2 = vadd.f32 %v6879_v54, %v6246_v26 }
 0x3ae   : > { %v1437_v62 = vadd.f32 %v6240_v23, %v1436_v56  ;;  %v6870_v0 = vpop.f32.mrb[38].mxu0  ;;  %v6880_v1 = vpop.f32.mrb[38].mxu1  ;;  %v1519_v7 = vadd.f32 %v6246_v26, %v1518_v57 }
 0x3af   : > { %v1448_v3 = vadd.f32 %v6870_v0, %v6240_v23  ;;  %v1530_v4 = vadd.f32 %v6880_v1, %v6246_v26  ;;  %v1439_v5 = vpop.f32.mrb[39].mxu0  ;;  %v1521_v6 = vpop.f32.mrb[39].mxu1 }
 0x3b0   : > { %v1440_v8 = vadd.f32 %v6240_v23, %v1439_v5  ;;  %v1522_v9 = vadd.f32 %v6246_v26, %v1521_v6  ;;  %v2021_v26 = vsel %vm761_vm1, %v8598_v36, 0 }
 0x3b1   : > { %v8627_v15 = vpack.c.bf16 %v1448_v3, %v1445_v55  ;;  %v8629_v17 = vpack.c.bf16 %v1530_v4, %v1527_v2 }
 0x3b2   : > { %v8631_v16 = vpack.c.bf16 %v1440_v8, %v1437_v62  ;;  %v8633_v14 = vpack.c.bf16 %v1522_v9, %v1519_v7  ;;  %v6270_v8 = vld [vmem:[#allocation7 + $0x1] ss:$0 sm:$0xff] }
 0x3b4   : > { %v6885_v18 = vpop.f32.mrb[40].mxu0 }
 0x3b5   : > { %v1621_v25 = vpop.f32.mrb[41].mxu0  ;;  %v1630_v28 = vadd.f32 %v6885_v18, %v6252_v24 }
 0x3b6   : > { %v6886_v27 = vpop.f32.mrb[42].mxu0  ;;  %v1622_v37 = vadd.f32 %v6252_v24, %v1621_v25 }
 0x3b7   : > { %v1633_v29 = vadd.f32 %v6886_v27, %v6252_v24  ;;  %v1624_v30 = vpop.f32.mrb[43].mxu0 }
 0x3b8   : > { %v1625_v39 = vadd.f32 %v6252_v24, %v1624_v30 }
 0x3b9   : > { %v1653_v38 = vpack.c.bf16 %v1633_v29, %v1630_v28 }
 0x3ba   : > { %v1652_v23 = vpack.c.bf16 %v1625_v39, %v1622_v37 }
 0x3bc   : > { %v6889_v35 = vpop.f32.mrb[44].mxu0  ;;  %6899 = vmatprep.mubr.msk.bf16.mxu1 %vm1656_vm2, %v1652_v23 }
 0x3bd   : > { %v1637_v40 = vpop.f32.mrb[45].mxu0  ;;  %6900 = vmatmul.mubr.msk.bf16.vlgmr.msra.gmra.mrb[40].mxu1 %vm1656_vm2, %v1653_v38  ;;  %v1646_v42 = vadd.f32 %v6889_v35, %v6252_v24 }
 0x3be   : > { %6934 = vmatpush3.bf16.xpose.msra.mxu1 %v2021_v26  ;;  %v6890_v41 = vpop.f32.mrb[46].mxu0  ;;  %v1638_v45 = vadd.f32 %v6252_v24, %v1637_v40 }
 0x3bf   : > { %v1649_v43 = vadd.f32 %v6890_v41, %v6252_v24  ;;  %6959 = vmatprep.subr.bf16.mxu1 %v8583_v13  ;;  %v1640_v44 = vpop.f32.mrb[47].mxu0 }
 0x3c0   : > { %v1641_v52 = vadd.f32 %v6252_v24, %v1640_v44 }
 0x3c1   : > { %v1655_v54 = vpack.c.bf16 %v1649_v43, %v1646_v42 }
 0x3c2   : > { %v1654_v55 = vpack.c.bf16 %v1641_v52, %v1638_v45 }
 0x3c4   : > { %6903 = vmatprep.mubr.msk.bf16.mxu1 %vm1656_vm2, %v1654_v55 }
 0x3c5   : > { %6904 = vmatmul.mubr.msk.bf16.gmra.mrb[44].mxu1 %vm1656_vm2, %v1655_v54 }
 0x3c6   : > { %6935 = vmatprep.mubr.msk.bf16.mxu1 %vm761_vm1, %v8465_v51 }
 0x3cd   : > { %6936 = vmatmul.mubr.msk.bf16.vlgmr.msra.gmra.mrb[48].mxu1 %vm761_vm1, %v8467_v53 }
 0x3ce   : > { %6960 = vmatpush3.bf16.msra.mxu1 %v8583_v13  ;;  %6939 = vmatprep.mubr.msk.bf16.mxu1 %vm761_vm1, %v8487_v61 }
 0x3cf   : > { %6961 = vmatprep.subr.bf16.mxu1 %v8579_v11 }
 0x3d2   : > { %6962 = vmatpush3.bf16.msra.mxu1 %v8579_v11 }
 0x3d3   : > { %6963 = vmatprep.subr.bf16.mxu1 %v8593_v34 }
 0x3d5   : > { %6940 = vmatmul.mubr.msk.bf16.gmra.mrb[52].mxu1 %vm761_vm1, %v8489_v63 }
 0x3d6   : > { %6964 = vmatpush3.bf16.msra.mxu1 %v8593_v34 }
 0x3d7   : > { %6965 = vmatprep.subr.bf16.mxu1 %v8589_v32 }
 0x3da   : > { %6966 = vmatpush3.bf16.msra.mxu1 %v8589_v32 }
 0x490   : > { %v6901_v13 = vpop.f32.mrb[40].mxu1 }
 0x491   : > { %v1715_v36 = vpop.f32.mrb[41].mxu1  ;;  %v1753_v56 = vsel %vm1746_vm3, %v6901_v13, -inf }
 0x492   : > { %1754 = vmax.xlane.f32.xlu1 %v1753_v56  ;;  %v6902_v57 = vpop.f32.mrb[42].mxu1  ;;  %v1747_v11 = vsel %vm1746_vm3, %v1715_v36, -inf }
 0x493   : > { %1748 = vmax.xlane.f32.xlu0 %v1747_v11  ;;  %v1718_v62 = vpop.f32.mrb[43].mxu1  ;;  %v1756_v0 = vsel %vm1746_vm3, %v6902_v57, -inf }
 0x494   : > { %v1750_v34 = vsel %vm1746_vm3, %v1718_v62, -inf }
 0x496   : > { %1757 = vmax.xlane.f32.xlu1 %v1756_v0 }
 0x497   : > { %1751 = vmax.xlane.f32.xlu0 %v1750_v34 }
 0x498   : > { %v6905_v1 = vpop.f32.mrb[44].mxu1 }
 0x499   : > { %v1731_v2 = vpop.f32.mrb[45].mxu1  ;;  %v1765_v6 = vsel %vm1746_vm3, %v6905_v1, -inf }
 0x49a   : > { %v8661_v32 = vpop.f32.mrb[46].mxu1  ;;  %v1759_v3 = vsel %vm1746_vm3, %v1731_v2, -inf }
 0x49b   : > { %1760 = vmax.xlane.f32.xlu0 %v1759_v3  ;;  %v1734_v4 = vpop.f32.mrb[47].mxu1  ;;  %v1768_v9 = vsel %vm1746_vm3, %v8661_v32, -inf }
 0x49c   : > { %v1762_v5 = vsel %vm1746_vm3, %v1734_v4, -inf }
 0x49d   : > { %1763 = vmax.xlane.f32.xlu1 %v1762_v5 }
 0x49f   : > { %1766 = vmax.xlane.f32.xlu0 %v1765_v6 }
 0x4a0   : > { %v6937_v7 = vpop.f32.mrb[48].mxu1 }
 0x4a1   : > { %v2057_v18 = vpop.f32.mrb[49].mxu1  ;;  %1769 = vmax.xlane.f32.xlu1 %v1768_v9  ;;  %v8668_v25 = vadd.f32 %v6937_v7, %v6270_v8 }
 0x4a2   : > { %v6938_v24 = vpop.f32.mrb[50].mxu1  ;;  %v8672_v29 = vadd.f32 %v6270_v8, %v2057_v18 }
 0x4a3   : > { %v8670_v27 = vadd.f32 %v6938_v24, %v6270_v8  ;;  %v2060_v28 = vpop.f32.mrb[51].mxu1 }
 0x4a4   : > { %v8674_v30 = vadd.f32 %v6270_v8, %v2060_v28 }
 0x4a5   : > { %v2089_v37 = vpack.c.bf16 %v8670_v27, %v8668_v25 }
 0x4a6   : > { %v2088_v39 = vpack.c.bf16 %v8674_v30, %v8672_v29 }
 0x4a8   : > { %v6941_v38 = vpop.f32.mrb[52].mxu1 }
 0x4a9   : > { %v2073_v23 = vpop.f32.mrb[53].mxu1  ;;  %v8680_v35 = vadd.f32 %v6941_v38, %v6270_v8 }
 0x4aa   : > { %v6942_v26 = vpop.f32.mrb[54].mxu1  ;;  %v8684_v42 = vadd.f32 %v6270_v8, %v2073_v23 }
 0x4ab   : > { %v8682_v40 = vadd.f32 %v6942_v26, %v6270_v8  ;;  %v2076_v41 = vpop.f32.mrb[55].mxu1 }
 0x4ac   : > { %v8686_v43 = vadd.f32 %v6270_v8, %v2076_v41 }
 0x4ad   : > { %v2091_v44 = vpack.c.bf16 %v8682_v40, %v8680_v35 }
 0x4ae   : > { %v2090_v45 = vpack.c.bf16 %v8686_v43, %v8684_v42 }
 0x51f   : > { %v1755_v52 = vpop.xlane.xlu1 %1754 }
 0x520   : > { %v1773_v54 = vsub.f32 %v6901_v13, %v1755_v52  ;;  %v1749_v55 = vpop.xlane.xlu0 %1748 }
 0x521   : > { %v1771_v56 = vsub.f32 %v1715_v36, %v1749_v55 }
 0x522   : > { %v1783_v11 = vmul.f32 1.442695, %v1773_v54 }
 0x523   : > { %v1779_v0 = vmul.f32 1.442695, %v1771_v56  ;;  %v1758_v34 = vpop.xlane.xlu1 %1757 }
 0x524   : > { %v1774_v3 = vsub.f32 %v6902_v57, %v1758_v34  ;;  %v1752_v5 = vpop.xlane.xlu0 %1751 }
 0x525   : > { %7654 = vpow2.f32 %v1779_v0  ;;  %v1772_v6 = vsub.f32 %v1718_v62, %v1752_v5 }
 0x526   : > { %7656 = vpow2.f32 %v1783_v11  ;;  %v1785_v7 = vmul.f32 1.442695, %v1774_v3 }
 0x527   : > { %v1781_v8 = vmul.f32 1.442695, %v1772_v6 }
 0x528   : > { %v1761_v9 = vpop.xlane.xlu0 %1760 }
 0x529   : > { %7658 = vpow2.f32 %v1781_v8  ;;  %v1775_v18 = vsub.f32 %v1731_v2, %v1761_v9  ;;  %v1916_v9 = vld [vmem:[#allocation11] sm:$0xf] }
 0x52a   : > { %v1764_v24 = vpop.xlane.xlu1 %1763  ;;  %7660 = vpow2.f32 %v1785_v7  ;;  %7482 = vmatprep.subr.msk.bf16.mxu0 %vm1933_vm4, %v1916_v9 }
 0x52b   : > { %v1787_v28 = vmul.f32 1.442695, %v1775_v18  ;;  %v1776_v38 = vsub.f32 %v1734_v4, %v1764_v24 }
 0x52c   : > { %v1767_v13 = vpop.xlane.xlu0 %1766 }
 0x52d   : > { %7662 = vpow2.f32 %v1787_v28  ;;  %v1789_v36 = vmul.f32 1.442695, %v1776_v38  ;;  %v1777_v23 = vsub.f32 %v6905_v1, %v1767_v13 }
 0x52e   : > { %v1770_v26 = vpop.xlane.xlu1 %1769 }
 0x52f   : > { %v7655_v41 = vpop.eup %7654  ;;  %7664 = vpow2.f32 %v1789_v36  ;;  %v1791_v57 = vmul.f32 1.442695, %v1777_v23  ;;  %v1778_v62 = vsub.f32 %v8661_v32, %v1770_v26 }
 0x530   : > { %v1795_v52 = vsel %vm1746_vm3, %v7655_v41, 0.0  ;;  %v7657_v54 = vpop.eup %7656 }
 0x531   : > { %7666 = vpow2.f32 %v1791_v57  ;;  %v1793_v55 = vmul.f32 1.442695, %v1778_v62  ;;  %1796 = vadd.xlane.f32.xlu0 %v1795_v52  ;;  %v1801_v4 = vsel %vm1746_vm3, %v7657_v54, 0.0 }
 0x533   : > { %v7659_v2 = vpop.eup %7658  ;;  %7668 = vpow2.f32 %v1793_v55 }
 0x534   : > { %v1798_v56 = vsel %vm1746_vm3, %v7659_v2, 0.0  ;;  %v7661_v11 = vpop.eup %7660 }
 0x535   : > { %1802 = vadd.xlane.f32.xlu0 %v1801_v4  ;;  %1799 = vadd.xlane.f32.xlu1 %v1798_v56  ;;  %v1804_v32 = vsel %vm1746_vm3, %v7661_v11, 0.0 }
 0x537   : > { %v7663_v1 = vpop.eup %7662 }
 0x538   : > { %v1807_v0 = vsel %vm1746_vm3, %v7663_v1, 0.0 }
 0x539   : > { %v7665_v34 = vpop.eup %7664  ;;  %1808 = vadd.xlane.f32.xlu0 %v1807_v0  ;;  %1805 = vadd.xlane.f32.xlu1 %v1804_v32 }
 0x53a   : > { %v1810_v6 = vsel %vm1746_vm3, %v7665_v34, 0.0 }
 0x53b   : > { %v7667_v3 = vpop.eup %7666 }
 0x53c   : > { %v1813_v5 = vsel %vm1746_vm3, %v7667_v3, 0.0 }
 0x53d   : > { %v7669_v7 = vpop.eup %7668  ;;  %1814 = vadd.xlane.f32.xlu0 %v1813_v5  ;;  %1811 = vadd.xlane.f32.xlu1 %v1810_v6 }
 0x53e   : > { %v1816_v8 = vsel %vm1746_vm3, %v7669_v7, 0.0 }
 0x541   : > { %1817 = vadd.xlane.f32.xlu1 %v1816_v8 }
 0x5be   : > { %v1797_v18 = vpop.xlane.xlu0 %1796 }
 0x5bf   : > { %7670 = vrcp.f32 %v1797_v18  ;;  %v1935_v18 = vsel %vm1933_vm4, %v1916_v9, 0 }
 0x5c2   : > { %v1803_v24 = vpop.xlane.xlu0 %1802  ;;  %v1800_v28 = vpop.xlane.xlu1 %1799 }
 0x5c3   : > { %7672 = vrcp.f32 %v1800_v28 }
 0x5c4   : > { %7674 = vrcp.f32 %v1803_v24 }
 0x5c6   : > { %v1809_v38 = vpop.xlane.xlu0 %1808  ;;  %v1806_v13 = vpop.xlane.xlu1 %1805 }
 0x5c7   : > { %7676 = vrcp.f32 %v1806_v13 }
 0x5c8   : > { %7678 = vrcp.f32 %v1809_v38 }
 0x5c9   : > { %v7671_v26 = vpop.eup %7670 }
 0x5ca   : > { %v1815_v36 = vpop.xlane.xlu0 %1814  ;;  %v1812_v23 = vpop.xlane.xlu1 %1811  ;;  %v1820_v52 = vmul.f32 %v7671_v26, %v7655_v41 }
 0x5cb   : > { %7680 = vrcp.f32 %v1812_v23 }
 0x5cc   : > { %7682 = vrcp.f32 %v1815_v36 }
 0x5cd   : > { %v7673_v57 = vpop.eup %7672 }
 0x5ce   : > { %v1818_v62 = vpop.xlane.xlu1 %1817  ;;  %v1822_v55 = vmul.f32 %v7673_v57, %v7659_v2  ;;  %v7675_v4 = vpop.eup %7674 }
 0x5cf   : > { %7684 = vrcp.f32 %v1818_v62  ;;  %v1824_v32 = vmul.f32 %v7675_v4, %v7657_v54 }
 0x5d0   : > { %v1835_v56 = vpack.c.bf16 %v1822_v55, %v1820_v52 }
 0x5d1   : > { %v7677_v0 = vpop.eup %7676 }
 0x5d2   : > { %v1826_v5 = vmul.f32 %v7677_v0, %v7661_v11  ;;  %6915 = vmatprep.mubr.msk.bf16.mxu0 %vm1746_vm3, %v1835_v56  ;;  %v7679_v6 = vpop.eup %7678  ;;  %v2108_v0 = vsel %vm1656_vm2, %v8577_v10, 0 }
 0x5d3   : > { %v1828_v38 = vmul.f32 %v7679_v6, %v7663_v1 }
 0x5d4   : > { %v1836_v8 = vpack.c.bf16 %v1826_v5, %v1824_v32  ;;  %v2351_v32 = vld [vmem:[#allocation11 + $0x4] sm:$0xf] }
 0x5d5   : > { %v7681_v24 = vpop.eup %7680  ;;  %v2369_v29 = vsel %vm1933_vm4, %v2351_v32, 0 }
 0x5d6   : > { %v7683_v28 = vpop.eup %7682  ;;  %6916 = vmatmul.mubr.msk.bf16.vlgmr.msra.gmra.mrb[48].mxu0 %vm1746_vm3, %v1836_v8  ;;  %v1830_v13 = vmul.f32 %v7681_v24, %v7665_v34  ;;  %v2105_v34 = vsel %vm1656_vm2, %v8581_v12, 0 }
 0x5d7   : > { %6924 = vmatpush3.bf16.msra.mxu0 %v1935_v18  ;;  %v1832_v54 = vmul.f32 %v7683_v28, %v7667_v3 }
 0x5d8   : > { %7484 = vmatprep.subr.msk.bf16.mxu0 %vm1656_vm2, %v8581_v12  ;;  %v1837_v2 = vpack.c.bf16 %v1830_v13, %v1828_v38  ;;  %v2111_v12 = vsel %vm1656_vm2, %v8591_v33, 0 }
 0x5d9   : > { %v7685_v41 = vpop.eup %7684 }
 0x5da   : > { %v1834_v11 = vmul.f32 %v7685_v41, %v7669_v7  ;;  %6919 = vmatprep.mubr.msk.bf16.mxu0 %vm1746_vm3, %v1837_v2 }
 0x5dc   : > { %v1838_v36 = vpack.c.bf16 %v1834_v11, %v1832_v54 }
 0x5de   : > { %6920 = vmatmul.mubr.msk.bf16.gmra.mrb[52].mxu0 %vm1746_vm3, %v1838_v36 }
 0x6a9   : > { %v6917_v9 = vpop.f32.mrb[48].mxu0 }
 0x6aa   : > { %v1885_v23 = vpop.f32.mrb[49].mxu0 }
 0x6ab   : > { %v6918_v26 = vpop.f32.mrb[50].mxu0 }
 0x6ac   : > { %v1918_v57 = vpack.c.bf16 %v6918_v26, %v6917_v9  ;;  %v1888_v62 = vpop.f32.mrb[51].mxu0 }
 0x6ad   : > { %v1917_v1 = vpack.c.bf16 %v1888_v62, %v1885_v23 }
 0x6af   : > { %6925 = vmatprep.mubr.msk.bf16.mxu0 %vm1656_vm2, %v1917_v1 }
 0x6b0   : > { %6926 = vmatmul.mubr.msk.bf16.vlgmr.msra.gmra.mrb[56].mxu0 %vm1656_vm2, %v1918_v57 }
 0x6b1   : > { %6944 = vmatpush3.bf16.xpose.msra.mxu0 %v2105_v34  ;;  %v6921_v3 = vpop.f32.mrb[52].mxu0 }
 0x6b2   : > { %7485 = vmatprep.subr.msk.bf16.mxu0 %vm1656_vm2, %v8577_v10  ;;  %v1901_v7 = vpop.f32.mrb[53].mxu0  ;;  %v2114_v10 = vsel %vm1656_vm2, %v8587_v31, 0 }
 0x6b3   : > { %v6922_v52 = vpop.f32.mrb[54].mxu0 }
 0x6b4   : > { %v1920_v55 = vpack.c.bf16 %v6922_v52, %v6921_v3  ;;  %v1904_v4 = vpop.f32.mrb[55].mxu0 }
 0x6b5   : > { %v1919_v56 = vpack.c.bf16 %v1904_v4, %v1901_v7 }
 0x6b7   : > { %6929 = vmatprep.mubr.msk.bf16.mxu0 %vm1656_vm2, %v1919_v56 }
 0x6b8   : > { %6930 = vmatmul.mubr.msk.bf16.gmra.mrb[60].mxu0 %vm1656_vm2, %v1920_v55 }
 0x6b9   : > { %6946 = vmatpush3.bf16.xpose.msra.mxu0 %v2108_v0  ;;  %6951 = vmatprep.mubr.msk.bf16.mxu0 %vm1656_vm2, %v2088_v39 }
 0x6ba   : > { %7486 = vmatprep.subr.msk.bf16.mxu0 %vm1656_vm2, %v8591_v33 }
 0x6c1   : > { %6948 = vmatpush3.bf16.xpose.msra.mxu0 %v2111_v12 }
 0x6c2   : > { %7487 = vmatprep.subr.msk.bf16.mxu0 %vm1656_vm2, %v8587_v31 }
 0x6c9   : > { %6950 = vmatpush3.bf16.xpose.msra.mxu0 %v2114_v10 }
 0x6ca   : > { %7488 = vmatprep.subr.msk.bf16.mxu0 %vm1933_vm4, %v2351_v32 }
 0x6d0   : > { %6952 = vmatmul.mubr.msk.bf16.vlgmr.msra.gmra.mrb[64].mxu0 %vm1656_vm2, %v2089_v37 }
 0x6d1   : > { %6955 = vmatprep.mubr.msk.bf16.mxu0 %vm1656_vm2, %v2090_v45  ;;  %6976 = vmatpush3.bf16.msra.mxu0 %v2369_v29 }
 0x6d2   : > { %7011 = vmatprep.subr.bf16.mxu0 %v8609_v60 }
 0x6d8   : > { %6956 = vmatmul.mubr.msk.bf16.gmra.mrb[68].mxu0 %vm1656_vm2, %v2091_v44 }
 0x7a3   : > { %v6953_v31 = vpop.f32.mrb[64].mxu0 }
 0x7a4   : > { %v2150_v33 = vpop.f32.mrb[65].mxu0  ;;  %v2187_v39 = vsel %vm1746_vm3, %v6953_v31, -inf }
 0x7a5   : > { %v6954_v30 = vpop.f32.mrb[66].mxu0  ;;  %v2181_v25 = vsel %vm1746_vm3, %v2150_v33, -inf }
 0x7a6   : > { %2182 = vmax.xlane.f32.xlu0 %v2181_v25  ;;  %v2153_v27 = vpop.f32.mrb[67].mxu0  ;;  %v2190_v43 = vsel %vm1746_vm3, %v6954_v30, -inf }
 0x7a7   : > { %v2184_v37 = vsel %vm1746_vm3, %v2153_v27, -inf }
 0x7a8   : > { %2185 = vmax.xlane.f32.xlu1 %v2184_v37 }
 0x7aa   : > { %2188 = vmax.xlane.f32.xlu0 %v2187_v39 }
 0x7ab   : > { %v6957_v42 = vpop.f32.mrb[68].mxu0 }
 0x7ac   : > { %2191 = vmax.xlane.f32.xlu1 %v2190_v43  ;;  %v2166_v35 = vpop.f32.mrb[69].mxu0  ;;  %v2199_v6 = vsel %vm1746_vm3, %v6957_v42, -inf }
 0x7ad   : > { %v6958_v40 = vpop.f32.mrb[70].mxu0  ;;  %v2193_v44 = vsel %vm1746_vm3, %v2166_v35, -inf }
 0x7ae   : > { %2194 = vmax.xlane.f32.xlu0 %v2193_v44  ;;  %v2169_v45 = vpop.f32.mrb[71].mxu0  ;;  %v2202_v8 = vsel %vm1746_vm3, %v6958_v40, -inf }
 0x7af   : > { %v2196_v5 = vsel %vm1746_vm3, %v2169_v45, -inf }
 0x7b0   : > { %2197 = vmax.xlane.f32.xlu1 %v2196_v5 }
 0x7b2   : > { %2200 = vmax.xlane.f32.xlu0 %v2199_v6 }
 0x7b4   : > { %2203 = vmax.xlane.f32.xlu1 %v2202_v8 }
 0x833   : > { %v2183_v18 = vpop.xlane.xlu0 %2182 }
 0x834   : > { %v2205_v24 = vsub.f32 %v2150_v33, %v2183_v18 }
 0x835   : > { %v2186_v28 = vpop.xlane.xlu1 %2185 }
 0x836   : > { %v2213_v38 = vmul.f32 1.442695, %v2205_v24  ;;  %v2206_v13 = vsub.f32 %v2153_v27, %v2186_v28 }
 0x837   : > { %v2189_v41 = vpop.xlane.xlu0 %2188 }
 0x838   : > { %7686 = vpow2.f32 %v2213_v38  ;;  %v2215_v2 = vmul.f32 1.442695, %v2206_v13  ;;  %v2207_v54 = vsub.f32 %v6953_v31, %v2189_v41 }
 0x839   : > { %v2192_v11 = vpop.xlane.xlu1 %2191 }
 0x83a   : > { %7688 = vpow2.f32 %v2215_v2  ;;  %v2217_v36 = vmul.f32 1.442695, %v2207_v54  ;;  %v2208_v9 = vsub.f32 %v6954_v30, %v2192_v11 }
 0x83b   : > { %v2195_v23 = vpop.xlane.xlu0 %2194 }
 0x83c   : > { %7690 = vpow2.f32 %v2217_v36  ;;  %v2219_v26 = vmul.f32 1.442695, %v2208_v9  ;;  %v2209_v57 = vsub.f32 %v2166_v35, %v2195_v23 }
 0x83d   : > { %v2198_v62 = vpop.xlane.xlu1 %2197 }
 0x83e   : > { %7692 = vpow2.f32 %v2219_v26  ;;  %v2221_v1 = vmul.f32 1.442695, %v2209_v57  ;;  %v2210_v34 = vsub.f32 %v2169_v45, %v2198_v62  ;;  %v6287_v45 = vld [vmem:[%s9537_s5 + $0x8] sm:$0xf] }
 0x83f   : > { %v2201_v3 = vpop.xlane.xlu0 %2200  ;;  %7489 = vmatprep.subr.msk.bf16.mxu1 %vm761_vm1, %v6287_v45 }
 0x840   : > { %7694 = vpow2.f32 %v2221_v1  ;;  %v2223_v7 = vmul.f32 1.442695, %v2210_v34  ;;  %v2211_v52 = vsub.f32 %v6957_v42, %v2201_v3  ;;  %v2455_v34 = vsel %vm761_vm1, %v6287_v45, 0 }
 0x841   : > { %v2204_v55 = vpop.xlane.xlu1 %2203 }
 0x842   : > { %v7687_v4 = vpop.eup %7686  ;;  %7696 = vpow2.f32 %v2223_v7  ;;  %v2225_v56 = vmul.f32 1.442695, %v2211_v52  ;;  %v2212_v0 = vsub.f32 %v6958_v40, %v2204_v55 }
 0x843   : > { %v2229_v12 = vsel %vm1746_vm3, %v7687_v4, 0.0 }
 0x844   : > { %v7689_v32 = vpop.eup %7688  ;;  %7698 = vpow2.f32 %v2225_v56  ;;  %v2227_v10 = vmul.f32 1.442695, %v2212_v0  ;;  %2230 = vadd.xlane.f32.xlu0 %v2229_v12 }
 0x845   : > { %v2232_v29 = vsel %vm1746_vm3, %v7689_v32, 0.0 }
 0x846   : > { %v7691_v31 = vpop.eup %7690  ;;  %7700 = vpow2.f32 %v2227_v10  ;;  %2233 = vadd.xlane.f32.xlu1 %v2232_v29  ;;  %v2539_v10 = vsel %vm1656_vm2, %v8607_v59, 0  ;;  %v2542_v29 = vsel %vm1656_vm2, %v8603_v58, 0 }
 0x847   : > { %v2235_v33 = vsel %vm1746_vm3, %v7691_v31, 0.0 }
 0x848   : > { %v7693_v30 = vpop.eup %7692  ;;  %2236 = vadd.xlane.f32.xlu0 %v2235_v33  ;;  %v6305_v33 = vld [vmem:[%s9537_s5 + $0xc] sm:$0xf] }
 0x849   : > { %v2238_v25 = vsel %vm1746_vm3, %v7693_v30, 0.0 }
 0x84a   : > { %v7695_v27 = vpop.eup %7694  ;;  %2239 = vadd.xlane.f32.xlu1 %v2238_v25 }
 0x84b   : > { %v2241_v37 = vsel %vm1746_vm3, %v7695_v27, 0.0 }
 0x84c   : > { %v7697_v39 = vpop.eup %7696  ;;  %2242 = vadd.xlane.f32.xlu0 %v2241_v37 }
 0x84d   : > { %v2244_v42 = vsel %vm1746_vm3, %v7697_v39, 0.0 }
 0x84e   : > { %v7699_v43 = vpop.eup %7698  ;;  %2245 = vadd.xlane.f32.xlu1 %v2244_v42 }
 0x84f   : > { %v2247_v35 = vsel %vm1746_vm3, %v7699_v43, 0.0 }
 0x850   : > { %v7701_v40 = vpop.eup %7700  ;;  %2248 = vadd.xlane.f32.xlu0 %v2247_v35 }
 0x851   : > { %v2250_v44 = vsel %vm1746_vm3, %v7701_v40, 0.0 }
 0x852   : > { %2251 = vadd.xlane.f32.xlu1 %v2250_v44 }
 0x8d1   : > { %v2231_v5 = vpop.xlane.xlu0 %2230 }
 0x8d2   : > { %7702 = vrcp.f32 %v2231_v5 }
 0x8d3   : > { %v2234_v6 = vpop.xlane.xlu1 %2233 }
 0x8d4   : > { %7704 = vrcp.f32 %v2234_v6 }
 0x8d5   : > { %v2237_v8 = vpop.xlane.xlu0 %2236 }
 0x8d6   : > { %7706 = vrcp.f32 %v2237_v8 }
 0x8d7   : > { %v2240_v18 = vpop.xlane.xlu1 %2239 }
 0x8d8   : > { %7708 = vrcp.f32 %v2240_v18 }
 0x8d9   : > { %v2243_v24 = vpop.xlane.xlu0 %2242 }
 0x8da   : > { %7710 = vrcp.f32 %v2243_v24 }
 0x8db   : > { %v2246_v28 = vpop.xlane.xlu1 %2245 }
 0x8dc   : > { %v7703_v38 = vpop.eup %7702  ;;  %7712 = vrcp.f32 %v2246_v28 }
 0x8dd   : > { %v2249_v13 = vpop.xlane.xlu0 %2248  ;;  %v2254_v54 = vmul.f32 %v7703_v38, %v7687_v4 }
 0x8de   : > { %v7705_v41 = vpop.eup %7704  ;;  %7714 = vrcp.f32 %v2249_v13  ;;  %v2889_v13 = vsel %vm761_vm1, %v6305_v33, 0 }
 0x8df   : > { %v2252_v2 = vpop.xlane.xlu1 %2251  ;;  %v2256_v11 = vmul.f32 %v7705_v41, %v7689_v32 }
 0x8e0   : > { %v7707_v36 = vpop.eup %7706  ;;  %7716 = vrcp.f32 %v2252_v2 }
 0x8e1   : > { %v2269_v9 = vpack.c.bf16 %v2256_v11, %v2254_v54  ;;  %v2258_v26 = vmul.f32 %v7707_v36, %v7691_v31  ;;  %v2548_v31 = vsel %vm1656_vm2, %v8611_v19, 0 }
 0x8e2   : > { %v7709_v23 = vpop.eup %7708 }
 0x8e3   : > { %v2260_v57 = vmul.f32 %v7709_v23, %v7693_v30  ;;  %6967 = vmatprep.mubr.msk.bf16.mxu1 %vm1746_vm3, %v2269_v9 }
 0x8e4   : > { %v7711_v62 = vpop.eup %7710 }
 0x8e5   : > { %v2270_v1 = vpack.c.bf16 %v2260_v57, %v2258_v26  ;;  %v2262_v7 = vmul.f32 %v7711_v62, %v7695_v27 }
 0x8e6   : > { %v7713_v3 = vpop.eup %7712 }
 0x8e7   : > { %6968 = vmatmul.mubr.msk.bf16.vlgmr.msra.gmra.mrb[56].mxu1 %vm1746_vm3, %v2270_v1  ;;  %v2264_v52 = vmul.f32 %v7713_v3, %v7697_v39 }
 0x8e8   : > { %v7715_v55 = vpop.eup %7714  ;;  %6986 = vmatpush3.bf16.xpose.msra.mxu1 %v2455_v34 }
 0x8e9   : > { %7490 = vmatprep.subr.msk.bf16.mxu1 %vm1656_vm2, %v8607_v59  ;;  %v2271_v4 = vpack.c.bf16 %v2264_v52, %v2262_v7  ;;  %v2266_v0 = vmul.f32 %v7715_v55, %v7699_v43  ;;  %v2545_v59 = vsel %vm1656_vm2, %v8615_v21, 0 }
 0x8ea   : > { %v7717_v56 = vpop.eup %7716 }
 0x8eb   : > { %6971 = vmatprep.mubr.msk.bf16.mxu1 %vm1746_vm3, %v2271_v4  ;;  %v2268_v12 = vmul.f32 %v7717_v56, %v7701_v40  ;;  %v6306_v4 = vld [vmem:[#allocation7 + $0x3] ss:$0 sm:$0xff] }
 0x8ed   : > { %v2272_v32 = vpack.c.bf16 %v2268_v12, %v2266_v0 }
 0x8ef   : > { %6972 = vmatmul.mubr.msk.bf16.gmra.mrb[60].mxu1 %vm1746_vm3, %v2272_v32 }
 0x8f0   : > { %6987 = vmatprep.mubr.msk.bf16.mxu1 %vm761_vm1, %v8465_v51 }
 0x8f7   : > { %6988 = vmatmul.mubr.msk.bf16.vlgmr.msra.gmra.mrb[64].mxu1 %vm761_vm1, %v8467_v53 }
 0x8f8   : > { %6996 = vmatpush3.bf16.xpose.msra.mxu1 %v2539_v10  ;;  %6991 = vmatprep.mubr.msk.bf16.mxu1 %vm761_vm1, %v8487_v61 }
 0x8f9   : > { %7491 = vmatprep.subr.msk.bf16.mxu1 %vm1656_vm2, %v8603_v58 }
 0x8ff   : > { %6992 = vmatmul.mubr.msk.bf16.gmra.mrb[68].mxu1 %vm761_vm1, %v8489_v63 }
 0x900   : > { %6998 = vmatpush3.bf16.xpose.msra.mxu1 %v2542_v29 }
 0x901   : > { %7492 = vmatprep.subr.msk.bf16.mxu1 %vm1656_vm2, %v8615_v21 }
 0x908   : > { %7000 = vmatpush3.bf16.xpose.msra.mxu1 %v2545_v59 }
 0x909   : > { %7493 = vmatprep.subr.msk.bf16.mxu1 %vm1656_vm2, %v8611_v19 }
 0x910   : > { %7002 = vmatpush3.bf16.xpose.msra.mxu1 %v2548_v31 }
 0x911   : > { %7495 = vmatprep.subr.msk.bf16.mxu1 %vm761_vm1, %v6305_v33 }
 0x9ba   : > { %v6969_v58 = vpop.f32.mrb[56].mxu1 }
 0x9bb   : > { %v2319_v30 = vpop.f32.mrb[57].mxu1 }
 0x9bc   : > { %v6970_v25 = vpop.f32.mrb[58].mxu1 }
 0x9bd   : > { %v2353_v27 = vpack.c.bf16 %v6970_v25, %v6969_v58  ;;  %v2322_v37 = vpop.f32.mrb[59].mxu1 }
 0x9be   : > { %v2352_v21 = vpack.c.bf16 %v2322_v37, %v2319_v30 }
 0x9c0   : > { %6977 = vmatprep.mubr.msk.bf16.mxu0 %vm1656_vm2, %v2352_v21 }
 0x9c1   : > { %6978 = vmatmul.mubr.msk.bf16.vlgmr.msra.gmra.mrb[56].mxu0 %vm1656_vm2, %v2353_v27 }
 0x9c2   : > { %7012 = vmatpush3.bf16.msra.mxu0 %v8609_v60  ;;  %v6973_v19 = vpop.f32.mrb[60].mxu1  ;;  %v6288_v60 = vld [vmem:[#allocation7 + $0x2] ss:$0 sm:$0xff] }
 0x9c3   : > { %7013 = vmatprep.subr.bf16.mxu0 %v8605_v47  ;;  %v2335_v39 = vpop.f32.mrb[61].mxu1 }
 0x9c4   : > { %v6974_v42 = vpop.f32.mrb[62].mxu1 }
 0x9c5   : > { %v2355_v43 = vpack.c.bf16 %v6974_v42, %v6973_v19  ;;  %v2338_v35 = vpop.f32.mrb[63].mxu1 }
 0x9c6   : > { %v2354_v40 = vpack.c.bf16 %v2338_v35, %v2335_v39  ;;  %7014 = vmatpush3.bf16.msra.mxu0 %v8605_v47 }
 0x9c7   : > { %7015 = vmatprep.subr.bf16.mxu0 %v8617_v22 }
 0x9c8   : > { %6981 = vmatprep.mubr.msk.bf16.mxu0 %vm1656_vm2, %v2354_v40 }
 0x9c9   : > { %6982 = vmatmul.mubr.msk.bf16.gmra.mrb[60].mxu0 %vm1656_vm2, %v2355_v43 }
 0x9ca   : > { %7016 = vmatpush3.bf16.msra.mxu0 %v8617_v22  ;;  %v6989_v44 = vpop.f32.mrb[64].mxu1 }
 0x9cb   : > { %7017 = vmatprep.subr.bf16.mxu0 %v8613_v20  ;;  %v2491_v45 = vpop.f32.mrb[65].mxu1  ;;  %v2500_v6 = vadd.f32 %v6989_v44, %v6288_v60 }
 0x9cc   : > { %v6990_v5 = vpop.f32.mrb[66].mxu1  ;;  %v2492_v24 = vadd.f32 %v6288_v60, %v2491_v45 }
 0x9cd   : > { %v2503_v8 = vadd.f32 %v6990_v5, %v6288_v60  ;;  %v2494_v18 = vpop.f32.mrb[67].mxu1 }
 0x9ce   : > { %v2495_v28 = vadd.f32 %v6288_v60, %v2494_v18  ;;  %7018 = vmatpush3.bf16.msra.mxu0 %v8613_v20 }
 0x9cf   : > { %v2523_v47 = vpack.c.bf16 %v2503_v8, %v2500_v6 }
 0x9d0   : > { %v2522_v38 = vpack.c.bf16 %v2495_v28, %v2492_v24 }
 0x9d2   : > { %v6993_v41 = vpop.f32.mrb[68].mxu1  ;;  %7003 = vmatprep.mubr.msk.bf16.mxu1 %vm1656_vm2, %v2522_v38 }
 0x9d3   : > { %v2507_v22 = vpop.f32.mrb[69].mxu1  ;;  %7004 = vmatmul.mubr.msk.bf16.vlgmr.msra.gmra.mrb[72].mxu1 %vm1656_vm2, %v2523_v47  ;;  %v2516_v54 = vadd.f32 %v6993_v41, %v6288_v60 }
 0x9d4   : > { %7038 = vmatpush3.bf16.xpose.msra.mxu1 %v2889_v13  ;;  %v6994_v2 = vpop.f32.mrb[70].mxu1  ;;  %v2508_v9 = vadd.f32 %v6288_v60, %v2507_v22 }
 0x9d5   : > { %v2519_v11 = vadd.f32 %v6994_v2, %v6288_v60  ;;  %7063 = vmatprep.subr.bf16.mxu1 %v8625_v50  ;;  %v2510_v36 = vpop.f32.mrb[71].mxu1 }
 0x9d6   : > { %v2511_v23 = vadd.f32 %v6288_v60, %v2510_v36 }
 0x9d7   : > { %v2525_v20 = vpack.c.bf16 %v2519_v11, %v2516_v54 }
 0x9d8   : > { %v2524_v26 = vpack.c.bf16 %v2511_v23, %v2508_v9 }
 0x9da   : > { %7007 = vmatprep.mubr.msk.bf16.mxu1 %vm1656_vm2, %v2524_v26 }
 0x9db   : > { %7008 = vmatmul.mubr.msk.bf16.gmra.mrb[76].mxu1 %vm1656_vm2, %v2525_v20 }
 0x9dc   : > { %7039 = vmatprep.mubr.msk.bf16.mxu1 %vm761_vm1, %v8465_v51 }
 0x9e3   : > { %7040 = vmatmul.mubr.msk.bf16.vlgmr.msra.gmra.mrb[80].mxu1 %vm761_vm1, %v8467_v53 }
 0x9e4   : > { %7064 = vmatpush3.bf16.msra.mxu1 %v8625_v50  ;;  %7043 = vmatprep.mubr.msk.bf16.mxu1 %vm761_vm1, %v8487_v61 }
 0x9e5   : > { %7065 = vmatprep.subr.bf16.mxu1 %v8621_v48 }
 0x9e8   : > { %7066 = vmatpush3.bf16.msra.mxu1 %v8621_v48 }
 0x9e9   : > { %7067 = vmatprep.subr.bf16.mxu1 %v8633_v14 }
 0x9eb   : > { %7044 = vmatmul.mubr.msk.bf16.gmra.mrb[84].mxu1 %vm761_vm1, %v8489_v63 }
 0x9ec   : > { %7068 = vmatpush3.bf16.msra.mxu1 %v8633_v14 }
 0x9ed   : > { %7069 = vmatprep.subr.bf16.mxu1 %v8629_v17 }
 0x9f0   : > { %7070 = vmatpush3.bf16.msra.mxu1 %v8629_v17 }
 0xaa6   : > { %v7005_v51 = vpop.f32.mrb[72].mxu1 }
 0xaa7   : > { %v2584_v53 = vpop.f32.mrb[73].mxu1  ;;  %v2621_v62 = vsel %vm1746_vm3, %v7005_v51, -inf }
 0xaa8   : > { %v7006_v50 = vpop.f32.mrb[74].mxu1  ;;  %v2615_v61 = vsel %vm1746_vm3, %v2584_v53, -inf }
 0xaa9   : > { %2616 = vmax.xlane.f32.xlu0 %v2615_v61  ;;  %v2587_v57 = vpop.f32.mrb[75].mxu1  ;;  %v2624_v14 = vsel %vm1746_vm3, %v7006_v50, -inf }
 0xaaa   : > { %v2618_v48 = vsel %vm1746_vm3, %v2587_v57, -inf }
 0xaab   : > { %2619 = vmax.xlane.f32.xlu1 %v2618_v48 }
 0xaad   : > { %2622 = vmax.xlane.f32.xlu0 %v2621_v62 }
 0xaae   : > { %v8834_v63 = vpop.f32.mrb[76].mxu1 }
 0xaaf   : > { %2625 = vmax.xlane.f32.xlu1 %v2624_v14  ;;  %v2600_v1 = vpop.f32.mrb[77].mxu1  ;;  %v2633_v52 = vsel %vm1746_vm3, %v8834_v63, -inf }
 0xab0   : > { %v8837_v17 = vpop.f32.mrb[78].mxu1  ;;  %v2627_v34 = vsel %vm1746_vm3, %v2600_v1, -inf }
 0xab1   : > { %2628 = vmax.xlane.f32.xlu0 %v2627_v34  ;;  %v2603_v3 = vpop.f32.mrb[79].mxu1  ;;  %v2636_v56 = vsel %vm1746_vm3, %v8837_v17, -inf }
 0xab2   : > { %v2630_v7 = vsel %vm1746_vm3, %v2603_v3, -inf }
 0xab3   : > { %2631 = vmax.xlane.f32.xlu1 %v2630_v7 }
 0xab5   : > { %2634 = vmax.xlane.f32.xlu0 %v2633_v52 }
 0xab6   : > { %v7041_v55 = vpop.f32.mrb[80].mxu1 }
 0xab7   : > { %v2925_v0 = vpop.f32.mrb[81].mxu1  ;;  %2637 = vmax.xlane.f32.xlu1 %v2636_v56  ;;  %v8845_v32 = vadd.f32 %v7041_v55, %v6306_v4  ;;  %v2785_v56 = vld [vmem:[#allocation11 + $0x8] sm:$0xf] }
 0xab8   : > { %v7042_v12 = vpop.f32.mrb[82].mxu1  ;;  %v8849_v59 = vadd.f32 %v6306_v4, %v2925_v0  ;;  %7494 = vmatprep.subr.msk.bf16.mxu0 %vm1933_vm4, %v2785_v56 }
 0xab9   : > { %v8847_v10 = vadd.f32 %v7042_v12, %v6306_v4  ;;  %v2928_v29 = vpop.f32.mrb[83].mxu1 }
 0xaba   : > { %v8851_v31 = vadd.f32 %v6306_v4, %v2928_v29 }
 0xabb   : > { %v2957_v33 = vpack.c.bf16 %v8847_v10, %v8845_v32 }
 0xabc   : > { %v2956_v58 = vpack.c.bf16 %v8851_v31, %v8849_v59 }
 0xabe   : > { %v7045_v30 = vpop.f32.mrb[84].mxu1 }
 0xabf   : > { %v2941_v25 = vpop.f32.mrb[85].mxu1  ;;  %v8857_v37 = vadd.f32 %v7045_v30, %v6306_v4 }
 0xac0   : > { %v7046_v27 = vpop.f32.mrb[86].mxu1  ;;  %v8861_v39 = vadd.f32 %v6306_v4, %v2941_v25 }
 0xac1   : > { %v8859_v21 = vadd.f32 %v7046_v27, %v6306_v4  ;;  %v2944_v19 = vpop.f32.mrb[87].mxu1 }
 0xac2   : > { %v8863_v42 = vadd.f32 %v6306_v4, %v2944_v19 }
 0xac3   : > { %v2959_v43 = vpack.c.bf16 %v8859_v21, %v8857_v37 }
 0xac4   : > { %v2958_v35 = vpack.c.bf16 %v8863_v42, %v8861_v39 }
 0xb36   : > { %v2617_v40 = vpop.xlane.xlu0 %2616 }
 0xb37   : > { %v2639_v44 = vsub.f32 %v2584_v53, %v2617_v40 }
 0xb38   : > { %v2620_v60 = vpop.xlane.xlu1 %2619 }
 0xb39   : > { %v2647_v45 = vmul.f32 1.442695, %v2639_v44  ;;  %v2640_v5 = vsub.f32 %v2587_v57, %v2620_v60 }
 0xb3a   : > { %v2623_v6 = vpop.xlane.xlu0 %2622 }
 0xb3b   : > { %7718 = vpow2.f32 %v2647_v45  ;;  %v2649_v8 = vmul.f32 1.442695, %v2640_v5  ;;  %v2641_v18 = vsub.f32 %v7005_v51, %v2623_v6 }
 0xb3c   : > { %v2626_v24 = vpop.xlane.xlu1 %2625 }
 0xb3d   : > { %7720 = vpow2.f32 %v2649_v8  ;;  %v2651_v28 = vmul.f32 1.442695, %v2641_v18  ;;  %v2642_v47 = vsub.f32 %v7006_v50, %v2626_v24 }
 0xb3e   : > { %v2629_v38 = vpop.xlane.xlu0 %2628 }
 0xb3f   : > { %7722 = vpow2.f32 %v2651_v28  ;;  %v2653_v13 = vmul.f32 1.442695, %v2642_v47  ;;  %v2643_v41 = vsub.f32 %v2600_v1, %v2629_v38 }
 0xb40   : > { %v2632_v22 = vpop.xlane.xlu1 %2631 }
 0xb41   : > { %7724 = vpow2.f32 %v2653_v13  ;;  %v2655_v2 = vmul.f32 1.442695, %v2643_v41  ;;  %v2644_v54 = vsub.f32 %v2603_v3, %v2632_v22  ;;  %v2803_v13 = vsel %vm1933_vm4, %v2785_v56, 0 }
 0xb42   : > { %v2635_v11 = vpop.xlane.xlu0 %2634 }
 0xb43   : > { %7726 = vpow2.f32 %v2655_v2  ;;  %v2657_v36 = vmul.f32 1.442695, %v2644_v54  ;;  %v2645_v9 = vsub.f32 %v8834_v63, %v2635_v11 }
 0xb44   : > { %v2638_v23 = vpop.xlane.xlu1 %2637 }
 0xb45   : > { %v7719_v20 = vpop.eup %7718  ;;  %7728 = vpow2.f32 %v2657_v36  ;;  %v2659_v26 = vmul.f32 1.442695, %v2645_v9  ;;  %v2646_v51 = vsub.f32 %v8837_v17, %v2638_v23 }
 0xb46   : > { %v2663_v53 = vsel %vm1746_vm3, %v7719_v20, 0.0 }
 0xb47   : > { %v7721_v50 = vpop.eup %7720  ;;  %7730 = vpow2.f32 %v2659_v26  ;;  %v2661_v61 = vmul.f32 1.442695, %v2646_v51  ;;  %2664 = vadd.xlane.f32.xlu0 %v2663_v53 }
 0xb48   : > { %v2666_v57 = vsel %vm1746_vm3, %v7721_v50, 0.0 }
 0xb49   : > { %v7723_v48 = vpop.eup %7722  ;;  %7732 = vpow2.f32 %v2661_v61  ;;  %2667 = vadd.xlane.f32.xlu1 %v2666_v57 }
 0xb4a   : > { %v2669_v62 = vsel %vm1746_vm3, %v7723_v48, 0.0 }
 0xb4b   : > { %v7725_v63 = vpop.eup %7724  ;;  %2670 = vadd.xlane.f32.xlu0 %v2669_v62 }
 0xb4c   : > { %v2672_v14 = vsel %vm1746_vm3, %v7725_v63, 0.0 }
 0xb4d   : > { %v7727_v1 = vpop.eup %7726  ;;  %2673 = vadd.xlane.f32.xlu1 %v2672_v14 }
 0xb4e   : > { %v2675_v17 = vsel %vm1746_vm3, %v7727_v1, 0.0 }
 0xb4f   : > { %v7729_v34 = vpop.eup %7728  ;;  %2676 = vadd.xlane.f32.xlu0 %v2675_v17 }
 0xb50   : > { %v2678_v3 = vsel %vm1746_vm3, %v7729_v34, 0.0 }
 0xb51   : > { %v7731_v7 = vpop.eup %7730  ;;  %2679 = vadd.xlane.f32.xlu1 %v2678_v3  ;;  %v2976_v3 = vsel %vm1656_vm2, %v8619_v46, 0 }
 0xb52   : > { %v2681_v52 = vsel %vm1746_vm3, %v7731_v7, 0.0 }
 0xb53   : > { %v7733_v55 = vpop.eup %7732  ;;  %2682 = vadd.xlane.f32.xlu0 %v2681_v52 }
 0xb54   : > { %v2684_v4 = vsel %vm1746_vm3, %v7733_v55, 0.0 }
 0xb55   : > { %2685 = vadd.xlane.f32.xlu1 %v2684_v4 }
 0xbd4   : > { %v2665_v0 = vpop.xlane.xlu0 %2664 }
 0xbd5   : > { %7734 = vrcp.f32 %v2665_v0 }
 0xbd6   : > { %v2668_v12 = vpop.xlane.xlu1 %2667 }
 0xbd7   : > { %7736 = vrcp.f32 %v2668_v12 }
 0xbd8   : > { %v2671_v29 = vpop.xlane.xlu0 %2670 }
 0xbd9   : > { %7738 = vrcp.f32 %v2671_v29 }
 0xbda   : > { %v2674_v30 = vpop.xlane.xlu1 %2673 }
 0xbdb   : > { %7740 = vrcp.f32 %v2674_v30 }
 0xbdc   : > { %v2677_v25 = vpop.xlane.xlu0 %2676 }
 0xbdd   : > { %7742 = vrcp.f32 %v2677_v25 }
 0xbde   : > { %v2680_v27 = vpop.xlane.xlu1 %2679 }
 0xbdf   : > { %v7735_v19 = vpop.eup %7734  ;;  %7744 = vrcp.f32 %v2680_v27 }
 0xbe0   : > { %v2683_v40 = vpop.xlane.xlu0 %2682  ;;  %v2688_v45 = vmul.f32 %v7735_v19, %v7719_v20 }
 0xbe1   : > { %v7737_v44 = vpop.eup %7736  ;;  %7746 = vrcp.f32 %v2683_v40 }
 0xbe2   : > { %v2686_v60 = vpop.xlane.xlu1 %2685  ;;  %v2690_v5 = vmul.f32 %v7737_v44, %v7721_v50 }
 0xbe3   : > { %v7739_v6 = vpop.eup %7738  ;;  %7748 = vrcp.f32 %v2686_v60 }
 0xbe4   : > { %v2703_v8 = vpack.c.bf16 %v2690_v5, %v2688_v45  ;;  %v2692_v24 = vmul.f32 %v7739_v6, %v7723_v48  ;;  %v2973_v48 = vsel %vm1656_vm2, %v8623_v49, 0 }
 0xbe5   : > { %v7741_v18 = vpop.eup %7740 }
 0xbe6   : > { %v2694_v28 = vmul.f32 %v7741_v18, %v7725_v63  ;;  %7019 = vmatprep.mubr.msk.bf16.mxu0 %vm1746_vm3, %v2703_v8 }
 0xbe7   : > { %v7743_v47 = vpop.eup %7742 }
 0xbe8   : > { %v2704_v38 = vpack.c.bf16 %v2694_v28, %v2692_v24  ;;  %v2696_v22 = vmul.f32 %v7743_v47, %v7727_v1 }
 0xbe9   : > { %v7745_v41 = vpop.eup %7744 }
 0xbea   : > { %7020 = vmatmul.mubr.msk.bf16.vlgmr.msra.gmra.mrb[72].mxu0 %vm1746_vm3, %v2704_v38  ;;  %v2698_v2 = vmul.f32 %v7745_v41, %v7729_v34 }
 0xbeb   : > { %v7747_v54 = vpop.eup %7746  ;;  %7028 = vmatpush3.bf16.msra.mxu0 %v2803_v13 }
 0xbec   : > { %7496 = vmatprep.subr.msk.bf16.mxu0 %vm1656_vm2, %v8623_v49  ;;  %v2705_v11 = vpack.c.bf16 %v2698_v2, %v2696_v22  ;;  %v2700_v9 = vmul.f32 %v7747_v54, %v7731_v7  ;;  %v2979_v49 = vsel %vm1656_vm2, %v8631_v16, 0  ;;  %v2982_v7 = vsel %vm1656_vm2, %v8627_v15, 0 }
 0xbed   : > { %v7749_v36 = vpop.eup %7748 }
 0xbee   : > { %7023 = vmatprep.mubr.msk.bf16.mxu0 %vm1746_vm3, %v2705_v11  ;;  %v2702_v23 = vmul.f32 %v7749_v36, %v7733_v55 }
 0xbf0   : > { %v2706_v20 = vpack.c.bf16 %v2702_v23, %v2700_v9 }
 0xbf2   : > { %7024 = vmatmul.mubr.msk.bf16.gmra.mrb[76].mxu0 %vm1746_vm3, %v2706_v20 }
 0xcbd   : > { %v7021_v26 = vpop.f32.mrb[72].mxu0 }
 0xcbe   : > { %v2753_v51 = vpop.f32.mrb[73].mxu0 }
 0xcbf   : > { %v7022_v53 = vpop.f32.mrb[74].mxu0 }
 0xcc0   : > { %v2787_v50 = vpack.c.bf16 %v7022_v53, %v7021_v26  ;;  %v2756_v61 = vpop.f32.mrb[75].mxu0 }
 0xcc1   : > { %v2786_v57 = vpack.c.bf16 %v2756_v61, %v2753_v51 }
 0xcc3   : > { %7029 = vmatprep.mubr.msk.bf16.mxu0 %vm1656_vm2, %v2786_v57 }
 0xcc4   : > { %7030 = vmatmul.mubr.msk.bf16.vlgmr.msra.gmra.mrb[56].mxu0 %vm1656_vm2, %v2787_v50 }
 0xcc5   : > { %7048 = vmatpush3.bf16.xpose.msra.mxu0 %v2973_v48  ;;  %v7025_v62 = vpop.f32.mrb[76].mxu0 }
 0xcc6   : > { %7497 = vmatprep.subr.msk.bf16.mxu0 %vm1656_vm2, %v8619_v46  ;;  %v2769_v63 = vpop.f32.mrb[77].mxu0 }
 0xcc7   : > { %v7026_v14 = vpop.f32.mrb[78].mxu0 }
 0xcc8   : > { %v2789_v1 = vpack.c.bf16 %v7026_v14, %v7025_v62  ;;  %v2772_v17 = vpop.f32.mrb[79].mxu0 }
 0xcc9   : > { %v2788_v34 = vpack.c.bf16 %v2772_v17, %v2769_v63  ;;  %v3219_v63 = vld [vmem:[#allocation11 + $0xc] sm:$0xf] }
 0xcca   : > { %v3237_v14 = vsel %vm1933_vm4, %v3219_v63, 0 }
 0xccb   : > { %7033 = vmatprep.mubr.msk.bf16.mxu0 %vm1656_vm2, %v2788_v34 }
 0xccc   : > { %7034 = vmatmul.mubr.msk.bf16.gmra.mrb[60].mxu0 %vm1656_vm2, %v2789_v1 }
 0xccd   : > { %7050 = vmatpush3.bf16.xpose.msra.mxu0 %v2976_v3  ;;  %7055 = vmatprep.mubr.msk.bf16.mxu0 %vm1656_vm2, %v2956_v58 }
 0xcce   : > { %7498 = vmatprep.subr.msk.bf16.mxu0 %vm1656_vm2, %v8631_v16 }
 0xcd5   : > { %7052 = vmatpush3.bf16.xpose.msra.mxu0 %v2979_v49 }
 0xcd6   : > { %7499 = vmatprep.subr.msk.bf16.mxu0 %vm1656_vm2, %v8627_v15 }
 0xcdd   : > { %7054 = vmatpush3.bf16.xpose.msra.mxu0 %v2982_v7 }
 0xcde   : > { %7500 = vmatprep.subr.msk.bf16.mxu0 %vm1933_vm4, %v3219_v63 }
 0xce4   : > { %7056 = vmatmul.mubr.msk.bf16.vlgmr.msra.gmra.mrb[80].mxu0 %vm1656_vm2, %v2957_v33 }
 0xce5   : > { %7059 = vmatprep.mubr.msk.bf16.mxu0 %vm1656_vm2, %v2958_v35  ;;  %7080 = vmatpush3.bf16.msra.mxu0 %v3237_v14 }
 0xcec   : > { %7060 = vmatmul.mubr.msk.bf16.gmra.mrb[84].mxu0 %vm1656_vm2, %v2959_v43 }
 0xdb7   : > { %v7057_v46 = vpop.f32.mrb[80].mxu0 }
 0xdb8   : > { %v3018_v16 = vpop.f32.mrb[81].mxu0  ;;  %v3055_v10 = vsel %vm1746_vm3, %v7057_v46, -inf }
 0xdb9   : > { %v7058_v59 = vpop.f32.mrb[82].mxu0  ;;  %v3049_v15 = vsel %vm1746_vm3, %v3018_v16, -inf }
 0xdba   : > { %3050 = vmax.xlane.f32.xlu0 %v3049_v15  ;;  %v3021_v31 = vpop.f32.mrb[83].mxu0  ;;  %v3058_v58 = vsel %vm1746_vm3, %v7058_v59, -inf }
 0xdbb   : > { %v3052_v32 = vsel %vm1746_vm3, %v3021_v31, -inf }
 0xdbc   : > { %3053 = vmax.xlane.f32.xlu1 %v3052_v32 }
 0xdbe   : > { %3056 = vmax.xlane.f32.xlu0 %v3055_v10 }
 0xdbf   : > { %v7061_v33 = vpop.f32.mrb[84].mxu0 }
 0xdc0   : > { %3059 = vmax.xlane.f32.xlu1 %v3058_v58  ;;  %v3034_v37 = vpop.f32.mrb[85].mxu0  ;;  %v3067_v35 = vsel %vm1746_vm3, %v7061_v33, -inf }
 0xdc1   : > { %v7062_v21 = vpop.f32.mrb[86].mxu0  ;;  %v3061_v39 = vsel %vm1746_vm3, %v3034_v37, -inf }
 0xdc2   : > { %3062 = vmax.xlane.f32.xlu0 %v3061_v39  ;;  %v3037_v42 = vpop.f32.mrb[87].mxu0  ;;  %v3070_v52 = vsel %vm1746_vm3, %v7062_v21, -inf }
 0xdc3   : > { %v3064_v43 = vsel %vm1746_vm3, %v3037_v42, -inf }
 0xdc4   : > { %3065 = vmax.xlane.f32.xlu1 %v3064_v43 }
 0xdc6   : > { %3068 = vmax.xlane.f32.xlu0 %v3067_v35 }
 0xdc8   : > { %3071 = vmax.xlane.f32.xlu1 %v3070_v52 }
 0xe47   : > { %v3051_v55 = vpop.xlane.xlu0 %3050 }
 0xe48   : > { %v3073_v4 = vsub.f32 %v3018_v16, %v3051_v55 }
 0xe49   : > { %v3054_v56 = vpop.xlane.xlu1 %3053 }
 0xe4a   : > { %v3081_v0 = vmul.f32 1.442695, %v3073_v4  ;;  %v3074_v12 = vsub.f32 %v3021_v31, %v3054_v56 }
 0xe4b   : > { %v3057_v29 = vpop.xlane.xlu0 %3056 }
 0xe4c   : > { %7750 = vpow2.f32 %v3081_v0  ;;  %v3083_v30 = vmul.f32 1.442695, %v3074_v12  ;;  %v3075_v25 = vsub.f32 %v7057_v46, %v3057_v29 }
 0xe4d   : > { %v3060_v27 = vpop.xlane.xlu1 %3059 }
 0xe4e   : > { %7752 = vpow2.f32 %v3083_v30  ;;  %v3085_v19 = vmul.f32 1.442695, %v3075_v25  ;;  %v3076_v40 = vsub.f32 %v7058_v59, %v3060_v27 }
 0xe4f   : > { %v3063_v44 = vpop.xlane.xlu0 %3062 }
 0xe50   : > { %7754 = vpow2.f32 %v3085_v19  ;;  %v3087_v60 = vmul.f32 1.442695, %v3076_v40  ;;  %v3077_v45 = vsub.f32 %v3034_v37, %v3063_v44 }
 0xe51   : > { %v3066_v5 = vpop.xlane.xlu1 %3065 }
 0xe52   : > { %7756 = vpow2.f32 %v3087_v60  ;;  %v3089_v6 = vmul.f32 1.442695, %v3077_v45  ;;  %v3078_v8 = vsub.f32 %v3037_v42, %v3066_v5 }
 0xe53   : > { %v3069_v18 = vpop.xlane.xlu0 %3068 }
 0xe54   : > { %7758 = vpow2.f32 %v3089_v6  ;;  %v3091_v24 = vmul.f32 1.442695, %v3078_v8  ;;  %v3079_v28 = vsub.f32 %v7061_v33, %v3069_v18 }
 0xe55   : > { %v3072_v47 = vpop.xlane.xlu1 %3071 }
 0xe56   : > { %v7751_v38 = vpop.eup %7750  ;;  %7760 = vpow2.f32 %v3091_v24  ;;  %v3093_v13 = vmul.f32 1.442695, %v3079_v28  ;;  %v3080_v41 = vsub.f32 %v7062_v21, %v3072_v47  ;;  %v7618_v24 = vld [vmem:[%s9545_s13] sm:$0xff]   ;;  %v7619_v47 = vld [vmem:[%s9545_s13 + $0x8] sm:$0xff]  }
 0xe57   : > { %v3097_v22 = vsel %vm1746_vm3, %v7751_v38, 0.0  ;;  %7501 = vmatprep.subr.msk.bf16.mxu1 %vm761_vm1, %v7618_v24  ;;  %v3359_v28 = vsel %vm761_vm1, %v7618_v24, 0 }
 0xe58   : > { %v7753_v2 = vpop.eup %7752  ;;  %7762 = vpow2.f32 %v3093_v13  ;;  %v3095_v54 = vmul.f32 1.442695, %v3080_v41  ;;  %3098 = vadd.xlane.f32.xlu0 %v3097_v22  ;;  %v6251_v13 = vld [vmem:[%s9544_s12] ss:$0 sm:$0xff]  ;;  %v7910_v41 = vld [vmem:[#allocation2 + $0x10] sm:$0xff] }
 0xe59   : > { %v3100_v11 = vsel %vm1746_vm3, %v7753_v2, 0.0  ;;  %v1558_v22 = vadd.f32 %v7910_v41, %v6251_v13 }
 0xe5a   : > { %v7755_v36 = vpop.eup %7754  ;;  %7764 = vpow2.f32 %v3095_v54  ;;  %3101 = vadd.xlane.f32.xlu1 %v3100_v11  ;;  %v7911_v54 = vld [vmem:[#allocation2] sm:$0xff] }
 0xe5b   : > { %v3103_v9 = vsel %vm1746_vm3, %v7755_v36, 0.0  ;;  %v1556_v11 = vadd.f32 %v7911_v54, %v6251_v13 }
 0xe5c   : > { %v7757_v23 = vpop.eup %7756  ;;  %3104 = vadd.xlane.f32.xlu0 %v3103_v9 }
 0xe5d   : > { %v3106_v20 = vsel %vm1746_vm3, %v7757_v23, 0.0 }
 0xe5e   : > { %v7759_v26 = vpop.eup %7758  ;;  %3107 = vadd.xlane.f32.xlu1 %v3106_v20 }
 0xe5f   : > { %v3109_v51 = vsel %vm1746_vm3, %v7759_v26, 0.0 }
 0xe60   : > { %v7761_v53 = vpop.eup %7760  ;;  %3110 = vadd.xlane.f32.xlu0 %v3109_v51 }
 0xe61   : > { %v3112_v50 = vsel %vm1746_vm3, %v7761_v53, 0.0 }
 0xe62   : > { %v7763_v61 = vpop.eup %7762  ;;  %3113 = vadd.xlane.f32.xlu1 %v3112_v50 }
 0xe63   : > { %v3115_v57 = vsel %vm1746_vm3, %v7763_v61, 0.0 }
 0xe64   : > { %v7765_v48 = vpop.eup %7764  ;;  %3116 = vadd.xlane.f32.xlu0 %v3115_v57 }
 0xe65   : > { %v3118_v62 = vsel %vm1746_vm3, %v7765_v48, 0.0 }
 0xe66   : > { %3119 = vadd.xlane.f32.xlu1 %v3118_v62  ;;  %v7914_v62 = vld [vmem:[#allocation2 + $0x30] sm:$0xff] }
 0xe67   : > { %v1562_v63 = vadd.f32 %v7914_v62, %v6251_v13 }
 0xee5   : > { %v3099_v1 = vpop.xlane.xlu0 %3098 }
 0xee6   : > { %7766 = vrcp.f32 %v3099_v1  ;;  %v7915_v1 = vld [vmem:[#allocation2 + $0x20] sm:$0xff] }
 0xee7   : > { %v3102_v17 = vpop.xlane.xlu1 %3101 }
 0xee8   : > { %7768 = vrcp.f32 %v3102_v17  ;;  %v1560_v17 = vadd.f32 %v7915_v1, %v6251_v13 }
 0xee9   : > { %v3105_v34 = vpop.xlane.xlu0 %3104 }
 0xeea   : > { %7770 = vrcp.f32 %v3105_v34 }
 0xeeb   : > { %v3108_v3 = vpop.xlane.xlu1 %3107 }
 0xeec   : > { %7772 = vrcp.f32 %v3108_v3 }
 0xeed   : > { %v3111_v49 = vpop.xlane.xlu0 %3110 }
 0xeee   : > { %7774 = vrcp.f32 %v3111_v49  ;;  %v7916_v49 = vld [vmem:[#allocation2 + $0x38] sm:$0xff] }
 0xeef   : > { %v3114_v7 = vpop.xlane.xlu1 %3113 }
 0xef0   : > { %v7767_v46 = vpop.eup %7766  ;;  %7776 = vrcp.f32 %v3114_v7  ;;  %v1563_v7 = vadd.f32 %v7916_v49, %v6251_v13 }
 0xef1   : > { %v3117_v16 = vpop.xlane.xlu0 %3116  ;;  %v3122_v31 = vmul.f32 %v7767_v46, %v7751_v38  ;;  %v3362_v38 = vsel %vm761_vm1, %v7619_v47, 0 }
 0xef2   : > { %v7769_v59 = vpop.eup %7768  ;;  %7778 = vrcp.f32 %v3117_v16 }
 0xef3   : > { %v3120_v15 = vpop.xlane.xlu1 %3119  ;;  %v3124_v32 = vmul.f32 %v7769_v59, %v7753_v2  ;;  %v7917_v59 = vld [vmem:[#allocation2 + $0x28] sm:$0xff] }
 0xef4   : > { %v7771_v10 = vpop.eup %7770  ;;  %7780 = vrcp.f32 %v3120_v15  ;;  %v1561_v15 = vadd.f32 %v7917_v59, %v6251_v13  ;;  %v6330_v59 = vld [vmem:[#allocation8 + $0x4] ss:$0 sm:$0xff] }
 0xef5   : > { %v3137_v33 = vpack.c.bf16 %v3124_v32, %v3122_v31  ;;  %v3126_v37 = vmul.f32 %v7771_v10, %v7755_v36 }
 0xef6   : > { %v7773_v58 = vpop.eup %7772 }
 0xef7   : > { %v3128_v21 = vmul.f32 %v7773_v58, %v7757_v23  ;;  %7071 = vmatprep.mubr.msk.bf16.mxu1 %vm1746_vm3, %v3137_v33  ;;  %v7912_v23 = vld [vmem:[#allocation2 + $0x18] sm:$0xff] }
 0xef8   : > { %v7775_v39 = vpop.eup %7774  ;;  %v1559_v20 = vadd.f32 %v7912_v23, %v6251_v13 }
 0xef9   : > { %v3138_v42 = vpack.c.bf16 %v3128_v21, %v3126_v37  ;;  %v3130_v35 = vmul.f32 %v7775_v39, %v7759_v26 }
 0xefa   : > { %v7777_v43 = vpop.eup %7776 }
 0xefb   : > { %7072 = vmatmul.mubr.msk.bf16.vlgmr.msra.gmra.mrb[88].mxu1 %vm1746_vm3, %v3138_v42  ;;  %v3132_v52 = vmul.f32 %v7777_v43, %v7761_v53  ;;  %v7913_v53 = vld [vmem:[#allocation2 + $0x8] sm:$0xff] }
 0xefc   : > { %v7779_v55 = vpop.eup %7778  ;;  %7090 = vmatpush3.bf16.xpose.msra.mxu1 %v3359_v28  ;;  %v1557_v50 = vadd.f32 %v7913_v53, %v6251_v13  ;;  %v6359_v53 = vld [vmem:[%s9539_s7 + $0x18] sm:$0xf] }
 0xefd   : > { %v3139_v4 = vpack.c.bf16 %v3132_v52, %v3130_v35  ;;  %v3134_v0 = vmul.f32 %v7779_v55, %v7763_v61  ;;  %7502 = vmatprep.subr.msk.bf16.mxu1 %vm761_vm1, %v7619_v47  ;;  %v3890_v1 = vsel %vm761_vm1, %v6359_v53, 0 }
 0xefe   : > { %v7781_v56 = vpop.eup %7780 }
 0xeff   : > { %7075 = vmatprep.mubr.msk.bf16.mxu1 %vm1746_vm3, %v3139_v4  ;;  %v3136_v12 = vmul.f32 %v7781_v56, %v7765_v48 }
 0xf01   : > { %v3140_v29 = vpack.c.bf16 %v3136_v12, %v3134_v0  ;;  %v6329_v0 = vld [vmem:[%s9538_s6 + $0x10] sm:$0xf] }
 0xf02   : > { %v3480_v12 = vsel %vm761_vm1, %v6329_v0, 0 }
 0xf03   : > { %7076 = vmatmul.mubr.msk.bf16.gmra.mrb[92].mxu1 %vm1746_vm3, %v3140_v29  ;;  %v6335_v29 = vld [vmem:[%s9539_s7 + $0x10] sm:$0xf] }
 0xf04   : > { %7092 = vmatpush3.bf16.xpose.msra.mxu1 %v3362_v38  ;;  %7504 = vmatprep.subr.msk.bf16.mxu0 %vm761_vm1, %v6335_v29 }
 0xf05   : > { %7503 = vmatprep.subr.msk.bf16.mxu1 %vm761_vm1, %v6329_v0 }
 0xfce   : > { %v7073_v30 = vpop.f32.mrb[88].mxu1 }
 0xfcf   : > { %v3187_v25 = vpop.f32.mrb[89].mxu1 }
 0xfd0   : > { %v7074_v27 = vpop.f32.mrb[90].mxu1 }
 0xfd1   : > { %v3221_v19 = vpack.c.bf16 %v7074_v27, %v7073_v30  ;;  %v3190_v40 = vpop.f32.mrb[91].mxu1  ;;  %v3562_v30 = vsel %vm761_vm1, %v6335_v29, 0  ;;  %v6347_v27 = vld [vmem:[%s9539_s7 + $0x14] sm:$0xf] }
 0xfd2   : > { %v3220_v44 = vpack.c.bf16 %v3190_v40, %v3187_v25  ;;  %v6341_v25 = vld [vmem:[%s9538_s6 + $0x14] sm:$0xf] }
 0xfd4   : > { %7081 = vmatprep.mubr.msk.bf16.mxu0 %vm1656_vm2, %v3220_v44 }
 0xfd5   : > { %7082 = vmatmul.mubr.msk.bf16.vlgmr.msra.gmra.mrb[56].mxu0 %vm1656_vm2, %v3221_v19 }
 0xfd6   : > { %v7077_v60 = vpop.f32.mrb[92].mxu1  ;;  %7112 = vmatpush3.bf16.xpose.msra.mxu0 %v3562_v30 }
 0xfd7   : > { %v3203_v45 = vpop.f32.mrb[93].mxu1  ;;  %7506 = vmatprep.subr.msk.bf16.mxu0 %vm761_vm1, %v6347_v27 }
 0xfd8   : > { %v7078_v5 = vpop.f32.mrb[94].mxu1 }
 0xfd9   : > { %v3223_v6 = vpack.c.bf16 %v7078_v5, %v7077_v60  ;;  %v3206_v8 = vpop.f32.mrb[95].mxu1 }
 0xfda   : > { %v3222_v18 = vpack.c.bf16 %v3206_v8, %v3203_v45 }
 0xfdc   : > { %7085 = vmatprep.mubr.msk.bf16.mxu0 %vm1656_vm2, %v3222_v18 }
 0xfdd   : > { %7086 = vmatmul.mubr.msk.bf16.gmra.mrb[60].mxu0 %vm1656_vm2, %v3223_v6 }
0x10a8   : > { %v7083_v2 = vpop.f32.mrb[56].mxu0 }
0x10a9   : > { %v7401_v36 = vadd.f32 %v7083_v2, %v1558_v22  ;;  %v3273_v9 = vpop.f32.mrb[57].mxu0 }
0x10aa   : > { %v7402_v26 = vadd.f32 %v3273_v9, %v1556_v11  ;;  %v7084_v51 = vpop.f32.mrb[58].mxu0 }
0x10ab   : > { %3314 = vst.msk [vmem:[#allocation2 + $0x10] sm:$0xff] %vm761_vm1, %v7401_v36  ;;  %v7403_v61 = vadd.f32 %v7084_v51, %v1559_v20  ;;  %v3276_v57 = vpop.f32.mrb[59].mxu0  ;;  %v3644_v20 = vsel %vm761_vm1, %v6341_v25, 0  ;;  %v6353_v51 = vld [vmem:[%s9538_s6 + $0x18] sm:$0xf] }
0x10ac   : > { %3312 = vst.msk [vmem:[#allocation2] sm:$0xff] %vm761_vm1, %v7402_v26  ;;  %v7404_v48 = vadd.f32 %v3276_v57, %v1557_v50  ;;  %v3726_v26 = vsel %vm761_vm1, %v6347_v27, 0 }
0x10ad   : > { %3315 = vst.msk [vmem:[#allocation2 + $0x18] sm:$0xff] %vm761_vm1, %v7403_v61 }
0x10ae   : > { %3313 = vst.msk [vmem:[#allocation2 + $0x8] sm:$0xff] %vm761_vm1, %v7404_v48 }
0x10b0   : > { %v7087_v14 = vpop.f32.mrb[60].mxu0 }
0x10b1   : > { %v7405_v34 = vadd.f32 %v7087_v14, %v1562_v63  ;;  %v3289_v3 = vpop.f32.mrb[61].mxu0  ;;  %v3808_v14 = vsel %vm761_vm1, %v6353_v51, 0 }
0x10b2   : > { %v7406_v46 = vadd.f32 %v3289_v3, %v1560_v17  ;;  %v7088_v16 = vpop.f32.mrb[62].mxu0  ;;  %v3322_v39 = vld [vmem:[#allocation2 + $0x10] sm:$0xff]  ;;  %v6365_v17 = vld [vmem:[%s9538_s6 + $0x1c] sm:$0xf] }
0x10b3   : > { %3318 = vst.msk [vmem:[#allocation2 + $0x30] sm:$0xff] %vm761_vm1, %v7405_v34  ;;  %v7407_v31 = vadd.f32 %v7088_v16, %v1563_v7  ;;  %v3292_v32 = vpop.f32.mrb[63].mxu0  ;;  %v3320_v58 = vld [vmem:[#allocation2] sm:$0xff]  ;;  %v6371_v34 = vld [vmem:[%s9539_s7 + $0x1c] sm:$0xf]  ;;  %v3972_v3 = vsel %vm761_vm1, %v6365_v17, 0 }
0x10b4   : > { %3316 = vst.msk [vmem:[#allocation2 + $0x20] sm:$0xff] %vm761_vm1, %v7406_v46  ;;  %v7408_v10 = vadd.f32 %v3292_v32, %v1561_v15  ;;  %v3323_v33 = vld [vmem:[#allocation2 + $0x18] sm:$0xff]  ;;  %v4054_v49 = vsel %vm761_vm1, %v6371_v34, 0  ;;  %v6379_v7 = vld [vmem:[%s9537_s5 + $0x10] sm:$0xf] }
0x10b5   : > { %3319 = vst.msk [vmem:[#allocation2 + $0x38] sm:$0xff] %vm761_vm1, %v7407_v31  ;;  %v3321_v37 = vld [vmem:[#allocation2 + $0x8] sm:$0xff]  ;;  %v3333_v42 = vpack.c.bf16 %v3323_v33, %v3322_v39  ;;  %v4176_v46 = vsel %vm761_vm1, %v6379_v7, 0  ;;  %v6336_v31 = vld [vmem:[#allocation10 + $0x4] ss:$0 sm:$0xff] }
0x10b6   : > { %3317 = vst.msk [vmem:[#allocation2 + $0x28] sm:$0xff] %vm761_vm1, %v7408_v10  ;;  %v3332_v21 = vpack.c.bf16 %v3321_v37, %v3320_v58 }
0x10b8   : > { %7093 = vmatprep.mubr.msk.bf16.mxu1 %vm761_vm1, %v3332_v21 }
0x10b9   : > { %7094 = vmatmul.mubr.msk.bf16.vlgmr.msra.gmra.mrb[96].mxu1 %vm761_vm1, %v3333_v42 }
0x10ba   : > { %v3326_v4 = vld [vmem:[#allocation2 + $0x30] sm:$0xff]  ;;  %7102 = vmatpush3.bf16.xpose.msra.mxu1 %v3480_v12 }
0x10bb   : > { %v3324_v35 = vld [vmem:[#allocation2 + $0x20] sm:$0xff]  ;;  %7505 = vmatprep.subr.msk.bf16.mxu1 %vm761_vm1, %v6341_v25 }
0x10bc   : > { %v3327_v43 = vld [vmem:[#allocation2 + $0x38] sm:$0xff] }
0x10bd   : > { %v3325_v52 = vld [vmem:[#allocation2 + $0x28] sm:$0xff]  ;;  %v3335_v56 = vpack.c.bf16 %v3327_v43, %v3326_v4 }
0x10be   : > { %v3334_v55 = vpack.c.bf16 %v3325_v52, %v3324_v35 }
0x10c0   : > { %7097 = vmatprep.mubr.msk.bf16.mxu1 %vm761_vm1, %v3334_v55 }
0x10c1   : > { %7098 = vmatmul.mubr.msk.bf16.gmra.mrb[100].mxu1 %vm761_vm1, %v3335_v56 }
0x118c   : > { %v7095_v19 = vpop.f32.mrb[96].mxu1 }
0x118d   : > { %v3431_v40 = vadd.f32 %v7095_v19, %v3322_v39  ;;  %v3398_v44 = vpop.f32.mrb[97].mxu1 }
0x118e   : > { %v3429_v60 = vadd.f32 %v3398_v44, %v3320_v58  ;;  %v7096_v45 = vpop.f32.mrb[98].mxu1 }
0x118f   : > { %3439 = vst.msk [vmem:[#allocation2 + $0x10] sm:$0xff] %vm761_vm1, %v3431_v40  ;;  %v3432_v5 = vadd.f32 %v7096_v45, %v3323_v33  ;;  %v3401_v6 = vpop.f32.mrb[99].mxu1 }
0x1190   : > { %3437 = vst.msk [vmem:[#allocation2] sm:$0xff] %vm761_vm1, %v3429_v60  ;;  %v3430_v8 = vadd.f32 %v3401_v6, %v3321_v37 }
0x1191   : > { %3440 = vst.msk [vmem:[#allocation2 + $0x18] sm:$0xff] %vm761_vm1, %v3432_v5 }
0x1192   : > { %3438 = vst.msk [vmem:[#allocation2 + $0x8] sm:$0xff] %vm761_vm1, %v3430_v8 }
0x1194   : > { %v7099_v18 = vpop.f32.mrb[100].mxu1 }
0x1195   : > { %v3435_v24 = vadd.f32 %v7099_v18, %v3326_v4  ;;  %v3414_v28 = vpop.f32.mrb[101].mxu1 }
0x1196   : > { %v3433_v47 = vadd.f32 %v3414_v28, %v3324_v35  ;;  %v7100_v38 = vpop.f32.mrb[102].mxu1  ;;  %v3447_v9 = vld [vmem:[#allocation2 + $0x10] sm:$0xff] }
0x1197   : > { %3443 = vst.msk [vmem:[#allocation2 + $0x30] sm:$0xff] %vm761_vm1, %v3435_v24  ;;  %v3436_v13 = vadd.f32 %v7100_v38, %v3327_v43  ;;  %v3417_v41 = vpop.f32.mrb[103].mxu1  ;;  %v3445_v54 = vld [vmem:[#allocation2] sm:$0xff] }
0x1198   : > { %3441 = vst.msk [vmem:[#allocation2 + $0x20] sm:$0xff] %vm761_vm1, %v3433_v47  ;;  %v3434_v22 = vadd.f32 %v3417_v41, %v3325_v52  ;;  %v3448_v2 = vld [vmem:[#allocation2 + $0x18] sm:$0xff] }
0x1199   : > { %3444 = vst.msk [vmem:[#allocation2 + $0x38] sm:$0xff] %vm761_vm1, %v3436_v13  ;;  %v3446_v11 = vld [vmem:[#allocation2 + $0x8] sm:$0xff]  ;;  %v9000_v23 = vpack.c.bf16 %v3448_v2, %v3447_v9  ;;  %v6342_v9 = vld [vmem:[#allocation8 + $0x5] ss:$0 sm:$0xff] }
0x119a   : > { %3442 = vst.msk [vmem:[#allocation2 + $0x28] sm:$0xff] %vm761_vm1, %v3434_v22  ;;  %v8998_v36 = vpack.c.bf16 %v3446_v11, %v3445_v54 }
0x119c   : > { %7103 = vmatprep.mubr.msk.bf16.mxu1 %vm761_vm1, %v8998_v36  ;;  %7113 = vmatprep.mubr.msk.bf16.mxu0 %vm761_vm1, %v8998_v36 }
0x119d   : > { %7104 = vmatmul.mubr.msk.bf16.vlgmr.msra.gmra.mrb[104].mxu1 %vm761_vm1, %v9000_v23  ;;  %7114 = vmatmul.mubr.msk.bf16.vlgmr.msra.gmra.mrb[88].mxu0 %vm761_vm1, %v9000_v23 }
0x119e   : > { %7122 = vmatpush3.bf16.xpose.msra.mxu1 %v3644_v20  ;;  %7132 = vmatpush3.bf16.xpose.msra.mxu0 %v3726_v26  ;;  %v3451_v62 = vld [vmem:[#allocation2 + $0x30] sm:$0xff] }
0x119f   : > { %7507 = vmatprep.subr.msk.bf16.mxu1 %vm761_vm1, %v6353_v51  ;;  %7508 = vmatprep.subr.msk.bf16.mxu0 %vm761_vm1, %v6359_v53  ;;  %v3449_v61 = vld [vmem:[#allocation2 + $0x20] sm:$0xff] }
0x11a0   : > { %v3452_v50 = vld [vmem:[#allocation2 + $0x38] sm:$0xff]  ;;  %v6348_v51 = vld [vmem:[#allocation10 + $0x5] ss:$0 sm:$0xff] }
0x11a1   : > { %v3450_v57 = vld [vmem:[#allocation2 + $0x28] sm:$0xff]  ;;  %v9022_v63 = vpack.c.bf16 %v3452_v50, %v3451_v62 }
0x11a2   : > { %v9020_v48 = vpack.c.bf16 %v3450_v57, %v3449_v61 }
0x11a4   : > { %7107 = vmatprep.mubr.msk.bf16.mxu1 %vm761_vm1, %v9020_v48  ;;  %7117 = vmatprep.mubr.msk.bf16.mxu0 %vm761_vm1, %v9020_v48 }
0x11a5   : > { %7108 = vmatmul.mubr.msk.bf16.gmra.mrb[108].mxu1 %vm761_vm1, %v9022_v63  ;;  %7118 = vmatmul.mubr.msk.bf16.gmra.mrb[92].mxu0 %vm761_vm1, %v9022_v63 }
0x11a6   : > { %7123 = vmatprep.mubr.msk.bf16.mxu1 %vm761_vm1, %v8998_v36  ;;  %7133 = vmatprep.mubr.msk.bf16.mxu0 %vm761_vm1, %v8998_v36 }
0x11ad   : > { %7124 = vmatmul.mubr.msk.bf16.vlgmr.msra.gmra.mrb[112].mxu1 %vm761_vm1, %v9000_v23  ;;  %7134 = vmatmul.mubr.msk.bf16.vlgmr.msra.gmra.mrb[96].mxu0 %vm761_vm1, %v9000_v23 }
0x11ae   : > { %7142 = vmatpush3.bf16.xpose.msra.mxu1 %v3808_v14  ;;  %7127 = vmatprep.mubr.msk.bf16.mxu1 %vm761_vm1, %v9020_v48 }
0x11af   : > { %7137 = vmatprep.mubr.msk.bf16.mxu0 %vm761_vm1, %v9020_v48  ;;  %7152 = vmatpush3.bf16.xpose.msra.mxu0 %v3890_v1 }
0x11b0   : > { %7509 = vmatprep.subr.msk.bf16.mxu1 %vm761_vm1, %v6365_v17  ;;  %7510 = vmatprep.subr.msk.bf16.mxu0 %vm761_vm1, %v6371_v34 }
0x11b5   : > { %7128 = vmatmul.mubr.msk.bf16.gmra.mrb[116].mxu1 %vm761_vm1, %v9022_v63  ;;  %7138 = vmatmul.mubr.msk.bf16.gmra.mrb[100].mxu0 %vm761_vm1, %v9022_v63 }
0x11b6   : > { %7143 = vmatprep.mubr.msk.bf16.mxu1 %vm761_vm1, %v8998_v36  ;;  %7153 = vmatprep.mubr.msk.bf16.mxu0 %vm761_vm1, %v8998_v36 }
0x11bd   : > { %7144 = vmatmul.mubr.msk.bf16.vlgmr.msra.gmra.mrb[120].mxu1 %vm761_vm1, %v9000_v23  ;;  %7154 = vmatmul.mubr.msk.bf16.vlgmr.msra.gmra.mrb[104].mxu0 %vm761_vm1, %v9000_v23 }
0x11be   : > { %7162 = vmatpush3.bf16.xpose.msra.mxu1 %v3972_v3  ;;  %7147 = vmatprep.mubr.msk.bf16.mxu1 %vm761_vm1, %v9020_v48 }
0x11bf   : > { %7157 = vmatprep.mubr.msk.bf16.mxu0 %vm761_vm1, %v9020_v48  ;;  %7172 = vmatpush3.bf16.xpose.msra.mxu0 %v4054_v49 }
0x11c0   : > { %7511 = vmatprep.subr.msk.bf16.mxu1 %vm761_vm1, %v6379_v7 }
0x11c5   : > { %7148 = vmatmul.mubr.msk.bf16.gmra.mrb[124].mxu1 %vm761_vm1, %v9022_v63  ;;  %7158 = vmatmul.mubr.msk.bf16.gmra.mrb[108].mxu0 %vm761_vm1, %v9022_v63 }
0x11c6   : > { %7163 = vmatprep.mubr.msk.bf16.mxu1 %vm761_vm1, %v8998_v36  ;;  %7173 = vmatprep.mubr.msk.bf16.mxu0 %vm761_vm1, %v8998_v36 }
0x11cd   : > { %7164 = vmatmul.mubr.msk.bf16.vlgmr.msra.gmra.mrb[128].mxu1 %vm761_vm1, %v9000_v23  ;;  %7174 = vmatmul.mubr.msk.bf16.vlgmr.msra.gmra.mrb[112].mxu0 %vm761_vm1, %v9000_v23 }
0x11ce   : > { %7182 = vmatpush3.bf16.xpose.msra.mxu1 %v4176_v46  ;;  %7167 = vmatprep.mubr.msk.bf16.mxu1 %vm761_vm1, %v9020_v48 }
0x11cf   : > { %7177 = vmatprep.mubr.msk.bf16.mxu0 %vm761_vm1, %v9020_v48 }
0x11d5   : > { %7168 = vmatmul.mubr.msk.bf16.gmra.mrb[132].mxu1 %vm761_vm1, %v9022_v63  ;;  %7178 = vmatmul.mubr.msk.bf16.gmra.mrb[116].mxu0 %vm761_vm1, %v9022_v63 }
0x11d6   : > { %7183 = vmatprep.mubr.msk.bf16.mxu1 %vm761_vm1, %v8998_v36 }
0x11dd   : > { %7184 = vmatmul.mubr.msk.bf16.vlgmr.msra.gmra.mrb[136].mxu1 %vm761_vm1, %v9000_v23 }
0x11de   : > { %7187 = vmatprep.mubr.msk.bf16.mxu1 %vm761_vm1, %v9020_v48 }
0x11e5   : > { %7188 = vmatmul.mubr.msk.bf16.gmra.mrb[140].mxu1 %vm761_vm1, %v9022_v63 }
0x1270   : > { %v7105_v16 = vpop.f32.mrb[104].mxu1  ;;  %v7115_v15 = vpop.f32.mrb[88].mxu0 }
0x1271   : > { %v3516_v32 = vpop.f32.mrb[105].mxu1  ;;  %v3598_v10 = vpop.f32.mrb[89].mxu0  ;;  %v3525_v37 = vadd.f32 %v7105_v16, %v6330_v59  ;;  %v3607_v21 = vadd.f32 %v7115_v15, %v6336_v31 }
0x1272   : > { %v7106_v33 = vpop.f32.mrb[106].mxu1  ;;  %v7116_v58 = vpop.f32.mrb[90].mxu0  ;;  %v3517_v52 = vadd.f32 %v6330_v59, %v3516_v32  ;;  %v3599_v55 = vadd.f32 %v6336_v31, %v3598_v10 }
0x1273   : > { %v3528_v39 = vadd.f32 %v7106_v33, %v6330_v59  ;;  %v3610_v42 = vadd.f32 %v7116_v58, %v6336_v31  ;;  %v3519_v43 = vpop.f32.mrb[107].mxu1  ;;  %v3601_v35 = vpop.f32.mrb[91].mxu0 }
0x1274   : > { %v3520_v4 = vadd.f32 %v6330_v59, %v3519_v43  ;;  %v3602_v56 = vadd.f32 %v6336_v31, %v3601_v35 }
0x1275   : > { %v3548_v0 = vpack.c.bf16 %v3528_v39, %v3525_v37  ;;  %v3630_v12 = vpack.c.bf16 %v3610_v42, %v3607_v21 }
0x1276   : > { %v3547_v29 = vpack.c.bf16 %v3520_v4, %v3517_v52  ;;  %v3629_v30 = vpack.c.bf16 %v3602_v56, %v3599_v55 }
0x1277   : > { %v4263_v53 = vsel %vm1656_vm2, %v3548_v0, 0 }
0x1278   : > { %v7109_v25 = vpop.f32.mrb[108].mxu1  ;;  %v7119_v27 = vpop.f32.mrb[92].mxu0  ;;  %7512 = vmatprep.subr.msk.bf16.mxu0 %vm1656_vm2, %v3547_v29  ;;  %7207 = vmatprep.subr.bf16.mxu1 %v3629_v30  ;;  %v4260_v19 = vsel %vm1656_vm2, %v3547_v29, 0 }
0x1279   : > { %v3532_v40 = vpop.f32.mrb[109].mxu1  ;;  %v3614_v44 = vpop.f32.mrb[93].mxu0  ;;  %7192 = vmatpush3.bf16.xpose.msra.mxu0 %v4260_v19  ;;  %7208 = vmatpush3.bf16.msra.mxu1 %v3629_v30  ;;  %v3541_v5 = vadd.f32 %v7109_v25, %v6330_v59  ;;  %v3623_v6 = vadd.f32 %v7119_v27, %v6336_v31 }
0x127a   : > { %v7110_v60 = vpop.f32.mrb[110].mxu1  ;;  %v7120_v45 = vpop.f32.mrb[94].mxu0  ;;  %7513 = vmatprep.subr.msk.bf16.mxu0 %vm1656_vm2, %v3548_v0  ;;  %7209 = vmatprep.subr.bf16.mxu1 %v3630_v12  ;;  %v3533_v47 = vadd.f32 %v6330_v59, %v3532_v40  ;;  %v3615_v38 = vadd.f32 %v6336_v31, %v3614_v44 }
0x127b   : > { %v3544_v8 = vadd.f32 %v7110_v60, %v6330_v59  ;;  %v3626_v18 = vadd.f32 %v7120_v45, %v6336_v31  ;;  %v3535_v24 = vpop.f32.mrb[111].mxu1  ;;  %v3617_v28 = vpop.f32.mrb[95].mxu0  ;;  %v6360_v60 = vld [vmem:[#allocation10 + $0x6] ss:$0 sm:$0xff]  ;;  %v9131_v45 = vld [vmem:[%s9537_s5 + $0x14] sm:$0xf] }
0x127c   : > { %v3536_v13 = vadd.f32 %v6330_v59, %v3535_v24  ;;  %v3618_v41 = vadd.f32 %v6336_v31, %v3617_v28 }
0x127d   : > { %v3550_v22 = vpack.c.bf16 %v3544_v8, %v3541_v5  ;;  %v3632_v2 = vpack.c.bf16 %v3626_v18, %v3623_v6  ;;  %7210 = vmatpush3.bf16.msra.mxu1 %v3630_v12  ;;  %v6354_v6 = vld [vmem:[#allocation8 + $0x6] ss:$0 sm:$0xff] }
0x127e   : > { %v3549_v54 = vpack.c.bf16 %v3536_v13, %v3533_v47  ;;  %v3631_v11 = vpack.c.bf16 %v3618_v41, %v3615_v38 }
0x127f   : > { %v4269_v18 = vsel %vm1656_vm2, %v3550_v22, 0 }
0x1280   : > { %v7125_v20 = vpop.f32.mrb[112].mxu1  ;;  %v7135_v26 = vpop.f32.mrb[96].mxu0  ;;  %7211 = vmatprep.subr.bf16.mxu1 %v3631_v11  ;;  %v4266_v37 = vsel %vm1656_vm2, %v3549_v54, 0 }
0x1281   : > { %v3689_v50 = vadd.f32 %v7125_v20, %v6342_v9  ;;  %v3680_v61 = vpop.f32.mrb[113].mxu1  ;;  %v3762_v57 = vpop.f32.mrb[97].mxu0  ;;  %7194 = vmatpush3.bf16.xpose.msra.mxu0 %v4263_v53  ;;  %7212 = vmatpush3.bf16.msra.mxu1 %v3631_v11  ;;  %v3771_v1 = vadd.f32 %v7135_v26, %v6348_v51 }
0x1282   : > { %v7126_v62 = vpop.f32.mrb[114].mxu1  ;;  %v7136_v14 = vpop.f32.mrb[98].mxu0  ;;  %7514 = vmatprep.subr.msk.bf16.mxu0 %vm1656_vm2, %v3549_v54  ;;  %7213 = vmatprep.subr.bf16.mxu1 %v3632_v2  ;;  %v3681_v7 = vadd.f32 %v6342_v9, %v3680_v61  ;;  %v3763_v46 = vadd.f32 %v6348_v51, %v3762_v57 }
0x1283   : > { %v3692_v17 = vadd.f32 %v7126_v62, %v6342_v9  ;;  %v3774_v34 = vadd.f32 %v7136_v14, %v6348_v51  ;;  %v3683_v3 = vpop.f32.mrb[115].mxu1  ;;  %v3765_v49 = vpop.f32.mrb[99].mxu0 }
0x1284   : > { %v3684_v16 = vadd.f32 %v6342_v9, %v3683_v3  ;;  %v3766_v59 = vadd.f32 %v6348_v51, %v3765_v49 }
0x1285   : > { %v9110_v15 = vpack.c.bf16 %v3692_v17, %v3689_v50  ;;  %v9112_v31 = vpack.c.bf16 %v3774_v34, %v3771_v1  ;;  %7214 = vmatpush3.bf16.msra.mxu1 %v3632_v2 }
0x1286   : > { %v9114_v32 = vpack.c.bf16 %v3684_v16, %v3681_v7  ;;  %v9116_v10 = vpack.c.bf16 %v3766_v59, %v3763_v46 }
0x1288   : > { %v7129_v33 = vpop.f32.mrb[116].mxu1  ;;  %v7139_v58 = vpop.f32.mrb[100].mxu0 }
0x1289   : > { %v3705_v21 = vadd.f32 %v7129_v33, %v6342_v9  ;;  %v3696_v39 = vpop.f32.mrb[117].mxu1  ;;  %v3778_v42 = vpop.f32.mrb[101].mxu0  ;;  %7196 = vmatpush3.bf16.xpose.msra.mxu0 %v4266_v37  ;;  %v3787_v55 = vadd.f32 %v7139_v58, %v6348_v51 }
0x128a   : > { %v3697_v43 = vadd.f32 %v6342_v9, %v3696_v39  ;;  %v7130_v35 = vpop.f32.mrb[118].mxu1  ;;  %v7140_v52 = vpop.f32.mrb[102].mxu0  ;;  %7515 = vmatprep.subr.msk.bf16.mxu0 %vm1656_vm2, %v3550_v22  ;;  %v3779_v29 = vadd.f32 %v6348_v51, %v3778_v42 }
0x128b   : > { %v3708_v4 = vadd.f32 %v7130_v35, %v6342_v9  ;;  %v3790_v56 = vadd.f32 %v7140_v52, %v6348_v51  ;;  %v3699_v0 = vpop.f32.mrb[119].mxu1  ;;  %v3781_v12 = vpop.f32.mrb[103].mxu0 }
0x128c   : > { %v3700_v30 = vadd.f32 %v6342_v9, %v3699_v0  ;;  %v3782_v25 = vadd.f32 %v6348_v51, %v3781_v12  ;;  %v6372_v0 = vld [vmem:[#allocation10 + $0x7] ss:$0 sm:$0xff] }
0x128d   : > { %v9120_v27 = vpack.c.bf16 %v3708_v4, %v3705_v21  ;;  %v9122_v19 = vpack.c.bf16 %v3790_v56, %v3787_v55  ;;  %v6366_v55 = vld [vmem:[#allocation8 + $0x7] ss:$0 sm:$0xff] }
0x128e   : > { %v9124_v40 = vpack.c.bf16 %v3700_v30, %v3697_v43  ;;  %v9126_v44 = vpack.c.bf16 %v3782_v25, %v3779_v29 }
0x1290   : > { %v7145_v5 = vpop.f32.mrb[120].mxu1  ;;  %v7155_v8 = vpop.f32.mrb[104].mxu0 }
0x1291   : > { %v3935_v24 = vadd.f32 %v7155_v8, %v6360_v60  ;;  %v3844_v28 = vpop.f32.mrb[121].mxu1  ;;  %v3926_v47 = vpop.f32.mrb[105].mxu0  ;;  %7198 = vmatpush3.bf16.xpose.msra.mxu0 %v4269_v18  ;;  %v3853_v41 = vadd.f32 %v7145_v5, %v6354_v6 }
0x1292   : > { %v7146_v38 = vpop.f32.mrb[122].mxu1  ;;  %v7156_v13 = vpop.f32.mrb[106].mxu0  ;;  %7517 = vmatprep.subr.msk.bf16.mxu0 %vm761_vm1, %v9131_v45  ;;  %v3845_v20 = vadd.f32 %v6354_v6, %v3844_v28  ;;  %v3927_v26 = vadd.f32 %v6360_v60, %v3926_v47 }
0x1293   : > { %v3856_v2 = vadd.f32 %v7146_v38, %v6354_v6  ;;  %v3938_v54 = vadd.f32 %v7156_v13, %v6360_v60  ;;  %v3847_v11 = vpop.f32.mrb[123].mxu1  ;;  %v3929_v9 = vpop.f32.mrb[107].mxu0 }
0x1294   : > { %v3848_v51 = vadd.f32 %v6354_v6, %v3847_v11  ;;  %v3930_v53 = vadd.f32 %v6360_v60, %v3929_v9 }
0x1295   : > { %v9136_v50 = vpack.c.bf16 %v3856_v2, %v3853_v41  ;;  %v9138_v22 = vpack.c.bf16 %v3938_v54, %v3935_v24 }
0x1296   : > { %v9140_v61 = vpack.c.bf16 %v3848_v51, %v3845_v20  ;;  %v9142_v57 = vpack.c.bf16 %v3930_v53, %v3927_v26 }
0x1298   : > { %v7149_v62 = vpop.f32.mrb[124].mxu1  ;;  %v7159_v14 = vpop.f32.mrb[108].mxu0 }
0x1299   : > { %v3951_v1 = vadd.f32 %v7159_v14, %v6360_v60  ;;  %v3860_v17 = vpop.f32.mrb[125].mxu1  ;;  %v3942_v34 = vpop.f32.mrb[109].mxu0  ;;  %v3869_v46 = vadd.f32 %v7149_v62, %v6354_v6 }
0x129a   : > { %v3943_v3 = vadd.f32 %v6360_v60, %v3942_v34  ;;  %v7150_v49 = vpop.f32.mrb[126].mxu1  ;;  %v7160_v7 = vpop.f32.mrb[110].mxu0  ;;  %v3861_v37 = vadd.f32 %v6354_v6, %v3860_v17 }
0x129b   : > { %v3872_v16 = vadd.f32 %v7150_v49, %v6354_v6  ;;  %v3954_v59 = vadd.f32 %v7160_v7, %v6360_v60  ;;  %v3863_v33 = vpop.f32.mrb[127].mxu1  ;;  %v3945_v58 = vpop.f32.mrb[111].mxu0 }
0x129c   : > { %v3864_v21 = vadd.f32 %v6354_v6, %v3863_v33  ;;  %v3946_v39 = vadd.f32 %v6360_v60, %v3945_v58 }
0x129d   : > { %v9144_v42 = vpack.c.bf16 %v3872_v16, %v3869_v46  ;;  %v9146_v43 = vpack.c.bf16 %v3954_v59, %v3951_v1 }
0x129e   : > { %v9148_v35 = vpack.c.bf16 %v3864_v21, %v3861_v37  ;;  %v9150_v52 = vpack.c.bf16 %v3946_v39, %v3943_v3 }
0x12a0   : > { %v7165_v4 = vpop.f32.mrb[128].mxu1  ;;  %v7175_v56 = vpop.f32.mrb[112].mxu0 }
0x12a1   : > { %v4017_v12 = vadd.f32 %v7165_v4, %v6366_v55  ;;  %v4008_v29 = vpop.f32.mrb[129].mxu1  ;;  %v4090_v30 = vpop.f32.mrb[113].mxu0  ;;  %v4099_v8 = vadd.f32 %v7175_v56, %v6372_v0  ;;  %v6380_v4 = vld [vmem:[#allocation7 + $0x4] ss:$0 sm:$0xff] }
0x12a2   : > { %v7166_v25 = vpop.f32.mrb[130].mxu1  ;;  %v7176_v5 = vpop.f32.mrb[114].mxu0  ;;  %v4009_v28 = vadd.f32 %v6366_v55, %v4008_v29  ;;  %v4091_v47 = vadd.f32 %v6372_v0, %v4090_v30 }
0x12a3   : > { %v4020_v6 = vadd.f32 %v7166_v25, %v6366_v55  ;;  %v4102_v60 = vadd.f32 %v7176_v5, %v6372_v0  ;;  %v4011_v18 = vpop.f32.mrb[131].mxu1  ;;  %v4093_v24 = vpop.f32.mrb[115].mxu0 }
0x12a4   : > { %v4012_v38 = vadd.f32 %v6366_v55, %v4011_v18  ;;  %v4094_v13 = vadd.f32 %v6372_v0, %v4093_v24 }
0x12a5   : > { %v9152_v41 = vpack.c.bf16 %v4020_v6, %v4017_v12  ;;  %v9154_v2 = vpack.c.bf16 %v4102_v60, %v4099_v8 }
0x12a6   : > { %v9156_v54 = vpack.c.bf16 %v4012_v38, %v4009_v28  ;;  %v9158_v11 = vpack.c.bf16 %v4094_v13, %v4091_v47 }
0x12a8   : > { %v7169_v9 = vpop.f32.mrb[132].mxu1  ;;  %v7179_v20 = vpop.f32.mrb[116].mxu0 }
0x12a9   : > { %v4033_v26 = vadd.f32 %v7169_v9, %v6366_v55  ;;  %v4024_v51 = vpop.f32.mrb[133].mxu1  ;;  %v4106_v53 = vpop.f32.mrb[117].mxu0  ;;  %v4115_v17 = vadd.f32 %v7179_v20, %v6372_v0 }
0x12aa   : > { %v4025_v62 = vadd.f32 %v6366_v55, %v4024_v51  ;;  %v7170_v14 = vpop.f32.mrb[134].mxu1  ;;  %v7180_v1 = vpop.f32.mrb[118].mxu0  ;;  %v4107_v46 = vadd.f32 %v6372_v0, %v4106_v53 }
0x12ab   : > { %v4036_v34 = vadd.f32 %v7170_v14, %v6366_v55  ;;  %v4118_v3 = vadd.f32 %v7180_v1, %v6372_v0  ;;  %v4027_v49 = vpop.f32.mrb[135].mxu1  ;;  %v4109_v7 = vpop.f32.mrb[119].mxu0 }
0x12ac   : > { %v4028_v16 = vadd.f32 %v6366_v55, %v4027_v49  ;;  %v4110_v59 = vadd.f32 %v6372_v0, %v4109_v7  ;;  %v4610_v0 = vsel %vm761_vm1, %v9131_v45, 0 }
0x12ad   : > { %v9160_v33 = vpack.c.bf16 %v4036_v34, %v4033_v26  ;;  %v9162_v58 = vpack.c.bf16 %v4118_v3, %v4115_v17 }
0x12ae   : > { %v9164_v37 = vpack.c.bf16 %v4028_v16, %v4025_v62  ;;  %v9166_v21 = vpack.c.bf16 %v4110_v59, %v4107_v46  ;;  %v6398_v16 = vld [vmem:[#allocation7 + $0x5] ss:$0 sm:$0xff] }
0x12b0   : > { %v7185_v39 = vpop.f32.mrb[136].mxu1 }
0x12b1   : > { %v4212_v56 = vpop.f32.mrb[137].mxu1  ;;  %v4221_v29 = vadd.f32 %v7185_v39, %v6380_v4 }
0x12b2   : > { %v7186_v12 = vpop.f32.mrb[138].mxu1  ;;  %v4213_v5 = vadd.f32 %v6380_v4, %v4212_v56 }
0x12b3   : > { %v4224_v30 = vadd.f32 %v7186_v12, %v6380_v4  ;;  %v4215_v25 = vpop.f32.mrb[139].mxu1 }
0x12b4   : > { %v4216_v8 = vadd.f32 %v6380_v4, %v4215_v25 }
0x12b5   : > { %v4244_v6 = vpack.c.bf16 %v4224_v30, %v4221_v29 }
0x12b6   : > { %v4243_v55 = vpack.c.bf16 %v4216_v8, %v4213_v5 }
0x12b8   : > { %v7189_v60 = vpop.f32.mrb[140].mxu1  ;;  %7199 = vmatprep.mubr.msk.bf16.mxu0 %vm1656_vm2, %v4243_v55 }
0x12b9   : > { %v4228_v18 = vpop.f32.mrb[141].mxu1  ;;  %7200 = vmatmul.mubr.msk.bf16.vlgmr.msra.gmra.mrb[120].mxu0 %vm1656_vm2, %v4244_v6  ;;  %v4237_v28 = vadd.f32 %v7189_v60, %v6380_v4 }
0x12ba   : > { %7234 = vmatpush3.bf16.xpose.msra.mxu0 %v4610_v0  ;;  %v7190_v24 = vpop.f32.mrb[142].mxu1  ;;  %v4229_v13 = vadd.f32 %v6380_v4, %v4228_v18 }
0x12bb   : > { %v4240_v47 = vadd.f32 %v7190_v24, %v6380_v4  ;;  %7259 = vmatprep.subr.bf16.mxu0 %v9116_v10  ;;  %v4231_v38 = vpop.f32.mrb[143].mxu1 }
0x12bc   : > { %v4232_v9 = vadd.f32 %v6380_v4, %v4231_v38 }
0x12bd   : > { %v4246_v20 = vpack.c.bf16 %v4240_v47, %v4237_v28 }
0x12be   : > { %v4245_v26 = vpack.c.bf16 %v4232_v9, %v4229_v13 }
0x12c0   : > { %7203 = vmatprep.mubr.msk.bf16.mxu0 %vm1656_vm2, %v4245_v26 }
0x12c1   : > { %7204 = vmatmul.mubr.msk.bf16.gmra.mrb[124].mxu0 %vm1656_vm2, %v4246_v20 }
0x12c2   : > { %7235 = vmatprep.mubr.msk.bf16.mxu0 %vm761_vm1, %v8998_v36 }
0x12c9   : > { %7236 = vmatmul.mubr.msk.bf16.vlgmr.msra.gmra.mrb[128].mxu0 %vm761_vm1, %v9000_v23 }
0x12ca   : > { %7260 = vmatpush3.bf16.msra.mxu0 %v9116_v10  ;;  %7239 = vmatprep.mubr.msk.bf16.mxu0 %vm761_vm1, %v9020_v48 }
0x12cb   : > { %7261 = vmatprep.subr.bf16.mxu0 %v9112_v31 }
0x12ce   : > { %7262 = vmatpush3.bf16.msra.mxu0 %v9112_v31 }
0x12cf   : > { %7263 = vmatprep.subr.bf16.mxu0 %v9126_v44 }
0x12d1   : > { %7240 = vmatmul.mubr.msk.bf16.gmra.mrb[132].mxu0 %vm761_vm1, %v9022_v63 }
0x12d2   : > { %7264 = vmatpush3.bf16.msra.mxu0 %v9126_v44 }
0x12d3   : > { %7265 = vmatprep.subr.bf16.mxu0 %v9122_v19 }
0x12d6   : > { %7266 = vmatpush3.bf16.msra.mxu0 %v9122_v19 }
0x138c   : > { %v7201_v45 = vpop.f32.mrb[120].mxu0 }
0x138d   : > { %v4305_v10 = vpop.f32.mrb[121].mxu0  ;;  %v4342_v14 = vsel %vm1746_vm3, %v7201_v45, -inf }
0x138e   : > { %v7202_v51 = vpop.f32.mrb[122].mxu0  ;;  %v4336_v53 = vsel %vm1746_vm3, %v4305_v10, -inf }
0x138f   : > { %4337 = vmax.xlane.f32.xlu0 %v4336_v53  ;;  %v4308_v62 = vpop.f32.mrb[123].mxu0  ;;  %v4345_v44 = vsel %vm1746_vm3, %v7202_v51, -inf }
0x1390   : > { %v4339_v31 = vsel %vm1746_vm3, %v4308_v62, -inf }
0x1391   : > { %4340 = vmax.xlane.f32.xlu1 %v4339_v31 }
0x1393   : > { %4343 = vmax.xlane.f32.xlu0 %v4342_v14 }
0x1394   : > { %v9193_v1 = vpop.f32.mrb[124].mxu0 }
0x1395   : > { %4346 = vmax.xlane.f32.xlu1 %v4345_v44  ;;  %v4321_v17 = vpop.f32.mrb[125].mxu0  ;;  %v4354_v7 = vsel %vm1746_vm3, %v9193_v1, -inf }
0x1396   : > { %v9196_v19 = vpop.f32.mrb[126].mxu0  ;;  %v4348_v34 = vsel %vm1746_vm3, %v4321_v17, -inf }
0x1397   : > { %4349 = vmax.xlane.f32.xlu0 %v4348_v34  ;;  %v4324_v3 = vpop.f32.mrb[127].mxu0  ;;  %v4357_v59 = vsel %vm1746_vm3, %v9196_v19, -inf }
0x1398   : > { %v4351_v49 = vsel %vm1746_vm3, %v4324_v3, -inf }
0x1399   : > { %4352 = vmax.xlane.f32.xlu1 %v4351_v49 }
0x139b   : > { %4355 = vmax.xlane.f32.xlu0 %v4354_v7 }
0x139c   : > { %v7237_v46 = vpop.f32.mrb[128].mxu0 }
0x139d   : > { %v4646_v39 = vpop.f32.mrb[129].mxu0  ;;  %4358 = vmax.xlane.f32.xlu1 %v4357_v59  ;;  %v9204_v56 = vadd.f32 %v7237_v46, %v6398_v16 }
0x139e   : > { %v7238_v4 = vpop.f32.mrb[130].mxu0  ;;  %v9208_v30 = vadd.f32 %v6398_v16, %v4646_v39 }
0x139f   : > { %v9206_v12 = vadd.f32 %v7238_v4, %v6398_v16  ;;  %v4649_v29 = vpop.f32.mrb[131].mxu0 }
0x13a0   : > { %v9210_v25 = vadd.f32 %v6398_v16, %v4649_v29 }
0x13a1   : > { %v4678_v5 = vpack.c.bf16 %v9206_v12, %v9204_v56 }
0x13a2   : > { %v4677_v8 = vpack.c.bf16 %v9210_v25, %v9208_v30 }
0x13a4   : > { %v7241_v6 = vpop.f32.mrb[132].mxu0 }
0x13a5   : > { %v4662_v55 = vpop.f32.mrb[133].mxu0  ;;  %v9216_v60 = vadd.f32 %v7241_v6, %v6398_v16 }
0x13a6   : > { %v7242_v0 = vpop.f32.mrb[134].mxu0  ;;  %v9220_v28 = vadd.f32 %v6398_v16, %v4662_v55 }
0x13a7   : > { %v9218_v18 = vadd.f32 %v7242_v0, %v6398_v16  ;;  %v4665_v24 = vpop.f32.mrb[135].mxu0 }
0x13a8   : > { %v9222_v47 = vadd.f32 %v6398_v16, %v4665_v24 }
0x13a9   : > { %v4680_v38 = vpack.c.bf16 %v9218_v18, %v9216_v60 }
0x13aa   : > { %v4679_v13 = vpack.c.bf16 %v9222_v47, %v9220_v28 }
0x141c   : > { %v4338_v9 = vpop.xlane.xlu0 %4337 }
0x141d   : > { %v4360_v20 = vsub.f32 %v4305_v10, %v4338_v9 }
0x141e   : > { %v4341_v26 = vpop.xlane.xlu1 %4340 }
0x141f   : > { %v4368_v53 = vmul.f32 1.442695, %v4360_v20  ;;  %v4361_v31 = vsub.f32 %v4308_v62, %v4341_v26 }
0x1420   : > { %v4344_v14 = vpop.xlane.xlu0 %4343 }
0x1421   : > { %7782 = vpow2.f32 %v4368_v53  ;;  %v4370_v44 = vmul.f32 1.442695, %v4361_v31  ;;  %v4362_v34 = vsub.f32 %v7201_v45, %v4344_v14 }
0x1422   : > { %v4347_v49 = vpop.xlane.xlu1 %4346 }
0x1423   : > { %7784 = vpow2.f32 %v4370_v44  ;;  %v4372_v7 = vmul.f32 1.442695, %v4362_v34  ;;  %v4363_v46 = vsub.f32 %v7202_v51, %v4347_v49 }
0x1424   : > { %v4350_v16 = vpop.xlane.xlu0 %4349 }
0x1425   : > { %7786 = vpow2.f32 %v4372_v7  ;;  %v4374_v59 = vmul.f32 1.442695, %v4363_v46  ;;  %v4364_v39 = vsub.f32 %v4321_v17, %v4350_v16 }
0x1426   : > { %v4353_v4 = vpop.xlane.xlu1 %4352 }
0x1427   : > { %7788 = vpow2.f32 %v4374_v59  ;;  %v4376_v29 = vmul.f32 1.442695, %v4364_v39  ;;  %v4365_v6 = vsub.f32 %v4324_v3, %v4353_v4  ;;  %v4506_v59 = vld [vmem:[#allocation11 + $0x10] sm:$0xf] }
0x1428   : > { %v4356_v10 = vpop.xlane.xlu0 %4355  ;;  %7516 = vmatprep.subr.msk.bf16.mxu1 %vm1933_vm4, %v4506_v59 }
0x1429   : > { %7790 = vpow2.f32 %v4376_v29  ;;  %v4378_v55 = vmul.f32 1.442695, %v4365_v6  ;;  %v4366_v62 = vsub.f32 %v9193_v1, %v4356_v10 }
0x142a   : > { %v4359_v0 = vpop.xlane.xlu1 %4358 }
0x142b   : > { %v7783_v24 = vpop.eup %7782  ;;  %7792 = vpow2.f32 %v4378_v55  ;;  %v4380_v45 = vmul.f32 1.442695, %v4366_v62  ;;  %v4367_v9 = vsub.f32 %v9196_v19, %v4359_v0 }
0x142c   : > { %v4384_v51 = vsel %vm1746_vm3, %v7783_v24, 0.0 }
0x142d   : > { %v7785_v20 = vpop.eup %7784  ;;  %7794 = vpow2.f32 %v4380_v45  ;;  %v4382_v17 = vmul.f32 1.442695, %v4367_v9  ;;  %4385 = vadd.xlane.f32.xlu0 %v4384_v51 }
0x142e   : > { %v4387_v26 = vsel %vm1746_vm3, %v7785_v20, 0.0 }
0x142f   : > { %v7787_v3 = vpop.eup %7786  ;;  %7796 = vpow2.f32 %v4382_v17  ;;  %4388 = vadd.xlane.f32.xlu1 %v4387_v26 }
0x1430   : > { %v4390_v53 = vsel %vm1746_vm3, %v7787_v3, 0.0 }
0x1431   : > { %v7789_v1 = vpop.eup %7788  ;;  %4391 = vadd.xlane.f32.xlu0 %v4390_v53 }
0x1432   : > { %v4393_v31 = vsel %vm1746_vm3, %v7789_v1, 0.0 }
0x1433   : > { %v7791_v14 = vpop.eup %7790  ;;  %4394 = vadd.xlane.f32.xlu1 %v4393_v31 }
0x1434   : > { %v4396_v19 = vsel %vm1746_vm3, %v7791_v14, 0.0 }
0x1435   : > { %v7793_v44 = vpop.eup %7792  ;;  %4397 = vadd.xlane.f32.xlu0 %v4396_v19 }
0x1436   : > { %v4399_v34 = vsel %vm1746_vm3, %v7793_v44, 0.0 }
0x1437   : > { %v7795_v49 = vpop.eup %7794  ;;  %4400 = vadd.xlane.f32.xlu1 %v4399_v34 }
0x1438   : > { %v4402_v7 = vsel %vm1746_vm3, %v7795_v49, 0.0 }
0x1439   : > { %v7797_v46 = vpop.eup %7796  ;;  %4403 = vadd.xlane.f32.xlu0 %v4402_v7 }
0x143a   : > { %v4405_v16 = vsel %vm1746_vm3, %v7797_v46, 0.0 }
0x143b   : > { %4406 = vadd.xlane.f32.xlu1 %v4405_v16 }
0x14ba   : > { %v4386_v39 = vpop.xlane.xlu0 %4385 }
0x14bb   : > { %7798 = vrcp.f32 %v4386_v39  ;;  %v4524_v39 = vsel %vm1933_vm4, %v4506_v59, 0 }
0x14bc   : > { %v4389_v4 = vpop.xlane.xlu1 %4388 }
0x14bd   : > { %7800 = vrcp.f32 %v4389_v4 }
0x14be   : > { %v4392_v29 = vpop.xlane.xlu0 %4391 }
0x14bf   : > { %7802 = vrcp.f32 %v4392_v29 }
0x14c0   : > { %v4395_v6 = vpop.xlane.xlu1 %4394 }
0x14c1   : > { %7804 = vrcp.f32 %v4395_v6 }
0x14c2   : > { %v4398_v10 = vpop.xlane.xlu0 %4397 }
0x14c3   : > { %7806 = vrcp.f32 %v4398_v10 }
0x14c4   : > { %v4401_v55 = vpop.xlane.xlu1 %4400 }
0x14c5   : > { %v7799_v62 = vpop.eup %7798  ;;  %7808 = vrcp.f32 %v4401_v55 }
0x14c6   : > { %v4404_v0 = vpop.xlane.xlu0 %4403  ;;  %v4409_v51 = vmul.f32 %v7799_v62, %v7783_v24 }
0x14c7   : > { %v7801_v45 = vpop.eup %7800  ;;  %7810 = vrcp.f32 %v4404_v0 }
0x14c8   : > { %v4407_v9 = vpop.xlane.xlu1 %4406  ;;  %v4411_v17 = vmul.f32 %v7801_v45, %v7785_v20 }
0x14c9   : > { %v7803_v26 = vpop.eup %7802  ;;  %7812 = vrcp.f32 %v4407_v9  ;;  %v4694_v9 = vsel %vm1656_vm2, %v9114_v32, 0 }
0x14ca   : > { %v4424_v53 = vpack.c.bf16 %v4411_v17, %v4409_v51  ;;  %v4413_v19 = vmul.f32 %v7803_v26, %v7787_v3 }
0x14cb   : > { %v7805_v31 = vpop.eup %7804 }
0x14cc   : > { %v4415_v34 = vmul.f32 %v7805_v31, %v7789_v1  ;;  %7215 = vmatprep.mubr.msk.bf16.mxu1 %vm1746_vm3, %v4424_v53  ;;  %v4697_v31 = vsel %vm1656_vm2, %v9110_v15, 0 }
0x14cd   : > { %v7807_v7 = vpop.eup %7806 }
0x14ce   : > { %v4425_v16 = vpack.c.bf16 %v4415_v34, %v4413_v19  ;;  %v4417_v29 = vmul.f32 %v7807_v7, %v7791_v14  ;;  %v4940_v19 = vld [vmem:[#allocation11 + $0x14] sm:$0xf] }
0x14cf   : > { %v7809_v4 = vpop.eup %7808  ;;  %v4958_v30 = vsel %vm1933_vm4, %v4940_v19, 0 }
0x14d0   : > { %7216 = vmatmul.mubr.msk.bf16.vlgmr.msra.gmra.mrb[144].mxu1 %vm1746_vm3, %v4425_v16  ;;  %v4419_v6 = vmul.f32 %v7809_v4, %v7793_v44 }
0x14d1   : > { %v7811_v10 = vpop.eup %7810  ;;  %7224 = vmatpush3.bf16.msra.mxu1 %v4524_v39 }
0x14d2   : > { %7518 = vmatprep.subr.msk.bf16.mxu1 %vm1656_vm2, %v9114_v32  ;;  %v4426_v24 = vpack.c.bf16 %v4419_v6, %v4417_v29  ;;  %v4421_v3 = vmul.f32 %v7811_v10, %v7795_v49  ;;  %v4700_v32 = vsel %vm1656_vm2, %v9124_v40, 0 }
0x14d3   : > { %v7813_v20 = vpop.eup %7812 }
0x14d4   : > { %7219 = vmatprep.mubr.msk.bf16.mxu1 %vm1746_vm3, %v4426_v24  ;;  %v4423_v1 = vmul.f32 %v7813_v20, %v7797_v46 }
0x14d6   : > { %v4427_v55 = vpack.c.bf16 %v4423_v1, %v4421_v3 }
0x14d8   : > { %7220 = vmatmul.mubr.msk.bf16.gmra.mrb[148].mxu1 %vm1746_vm3, %v4427_v55 }
0x15a3   : > { %v7217_v59 = vpop.f32.mrb[144].mxu1 }
0x15a4   : > { %v4474_v62 = vpop.f32.mrb[145].mxu1 }
0x15a5   : > { %v7218_v0 = vpop.f32.mrb[146].mxu1 }
0x15a6   : > { %v4508_v45 = vpack.c.bf16 %v7218_v0, %v7217_v59  ;;  %v4477_v14 = vpop.f32.mrb[147].mxu1 }
0x15a7   : > { %v4507_v44 = vpack.c.bf16 %v4477_v14, %v4474_v62 }
0x15a9   : > { %7225 = vmatprep.mubr.msk.bf16.mxu1 %vm1656_vm2, %v4507_v44 }
0x15aa   : > { %7226 = vmatmul.mubr.msk.bf16.vlgmr.msra.gmra.mrb[152].mxu1 %vm1656_vm2, %v4508_v45 }
0x15ab   : > { %7244 = vmatpush3.bf16.xpose.msra.mxu1 %v4694_v9  ;;  %v7221_v51 = vpop.f32.mrb[148].mxu1 }
0x15ac   : > { %7519 = vmatprep.subr.msk.bf16.mxu1 %vm1656_vm2, %v9110_v15  ;;  %v4490_v49 = vpop.f32.mrb[149].mxu1  ;;  %v4703_v15 = vsel %vm1656_vm2, %v9120_v27, 0 }
0x15ad   : > { %v7222_v46 = vpop.f32.mrb[150].mxu1 }
0x15ae   : > { %v4510_v17 = vpack.c.bf16 %v7222_v46, %v7221_v51  ;;  %v4493_v26 = vpop.f32.mrb[151].mxu1 }
0x15af   : > { %v4509_v53 = vpack.c.bf16 %v4493_v26, %v4490_v49 }
0x15b1   : > { %7229 = vmatprep.mubr.msk.bf16.mxu1 %vm1656_vm2, %v4509_v53 }
0x15b2   : > { %7230 = vmatmul.mubr.msk.bf16.gmra.mrb[156].mxu1 %vm1656_vm2, %v4510_v17 }
0x15b3   : > { %7246 = vmatpush3.bf16.xpose.msra.mxu1 %v4697_v31  ;;  %7251 = vmatprep.mubr.msk.bf16.mxu1 %vm1656_vm2, %v4677_v8 }
0x15b4   : > { %7520 = vmatprep.subr.msk.bf16.mxu1 %vm1656_vm2, %v9124_v40 }
0x15bb   : > { %7248 = vmatpush3.bf16.xpose.msra.mxu1 %v4700_v32 }
0x15bc   : > { %7521 = vmatprep.subr.msk.bf16.mxu1 %vm1656_vm2, %v9120_v27 }
0x15c3   : > { %7250 = vmatpush3.bf16.xpose.msra.mxu1 %v4703_v15 }
0x15c4   : > { %7522 = vmatprep.subr.msk.bf16.mxu1 %vm1933_vm4, %v4940_v19 }
0x15ca   : > { %7252 = vmatmul.mubr.msk.bf16.vlgmr.msra.gmra.mrb[160].mxu1 %vm1656_vm2, %v4678_v5 }
0x15cb   : > { %7255 = vmatprep.mubr.msk.bf16.mxu1 %vm1656_vm2, %v4679_v13  ;;  %7276 = vmatpush3.bf16.msra.mxu1 %v4958_v30 }
0x15cc   : > { %7311 = vmatprep.subr.bf16.mxu1 %v9142_v57 }
0x15d2   : > { %7256 = vmatmul.mubr.msk.bf16.gmra.mrb[164].mxu1 %vm1656_vm2, %v4680_v38 }
0x169d   : > { %v7253_v27 = vpop.f32.mrb[160].mxu1 }
0x169e   : > { %v4739_v40 = vpop.f32.mrb[161].mxu1  ;;  %v4776_v8 = vsel %vm1746_vm3, %v7253_v27, -inf }
0x169f   : > { %v7254_v25 = vpop.f32.mrb[162].mxu1  ;;  %v4770_v56 = vsel %vm1746_vm3, %v4739_v40, -inf }
0x16a0   : > { %4771 = vmax.xlane.f32.xlu0 %v4770_v56  ;;  %v4742_v12 = vpop.f32.mrb[163].mxu1  ;;  %v4779_v47 = vsel %vm1746_vm3, %v7254_v25, -inf }
0x16a1   : > { %v4773_v5 = vsel %vm1746_vm3, %v4742_v12, -inf }
0x16a2   : > { %4774 = vmax.xlane.f32.xlu1 %v4773_v5 }
0x16a4   : > { %4777 = vmax.xlane.f32.xlu0 %v4776_v8 }
0x16a5   : > { %v7257_v28 = vpop.f32.mrb[164].mxu1 }
0x16a6   : > { %4780 = vmax.xlane.f32.xlu1 %v4779_v47  ;;  %v4755_v60 = vpop.f32.mrb[165].mxu1  ;;  %v4788_v7 = vsel %vm1746_vm3, %v7257_v28, -inf }
0x16a7   : > { %v7258_v18 = vpop.f32.mrb[166].mxu1  ;;  %v4782_v38 = vsel %vm1746_vm3, %v4755_v60, -inf }
0x16a8   : > { %4783 = vmax.xlane.f32.xlu0 %v4782_v38  ;;  %v4758_v13 = vpop.f32.mrb[167].mxu1  ;;  %v4791_v16 = vsel %vm1746_vm3, %v7258_v18, -inf }
0x16a9   : > { %v4785_v34 = vsel %vm1746_vm3, %v4758_v13, -inf }
0x16aa   : > { %4786 = vmax.xlane.f32.xlu1 %v4785_v34 }
0x16ac   : > { %4789 = vmax.xlane.f32.xlu0 %v4788_v7 }
0x16ae   : > { %4792 = vmax.xlane.f32.xlu1 %v4791_v16 }
0x172d   : > { %v4772_v39 = vpop.xlane.xlu0 %4771 }
0x172e   : > { %v4794_v4 = vsub.f32 %v4739_v40, %v4772_v39 }
0x172f   : > { %v4775_v29 = vpop.xlane.xlu1 %4774 }
0x1730   : > { %v4802_v6 = vmul.f32 1.442695, %v4794_v4  ;;  %v4795_v10 = vsub.f32 %v4742_v12, %v4775_v29 }
0x1731   : > { %v4778_v24 = vpop.xlane.xlu0 %4777 }
0x1732   : > { %7814 = vpow2.f32 %v4802_v6  ;;  %v4804_v20 = vmul.f32 1.442695, %v4795_v10  ;;  %v4796_v3 = vsub.f32 %v7253_v27, %v4778_v24 }
0x1733   : > { %v4781_v1 = vpop.xlane.xlu1 %4780 }
0x1734   : > { %7816 = vpow2.f32 %v4804_v20  ;;  %v4806_v55 = vmul.f32 1.442695, %v4796_v3  ;;  %v4797_v59 = vsub.f32 %v7254_v25, %v4781_v1 }
0x1735   : > { %v4784_v62 = vpop.xlane.xlu0 %4783 }
0x1736   : > { %7818 = vpow2.f32 %v4806_v55  ;;  %v4808_v0 = vmul.f32 1.442695, %v4797_v59  ;;  %v4798_v45 = vsub.f32 %v4755_v60, %v4784_v62 }
0x1737   : > { %v4787_v14 = vpop.xlane.xlu1 %4786 }
0x1738   : > { %7820 = vpow2.f32 %v4808_v0  ;;  %v4810_v44 = vmul.f32 1.442695, %v4798_v45  ;;  %v4799_v9 = vsub.f32 %v4758_v13, %v4787_v14  ;;  %v6415_v13 = vld [vmem:[%s9537_s5 + $0x18] sm:$0xf] }
0x1739   : > { %v4790_v51 = vpop.xlane.xlu0 %4789  ;;  %7523 = vmatprep.subr.msk.bf16.mxu0 %vm761_vm1, %v6415_v13 }
0x173a   : > { %7822 = vpow2.f32 %v4810_v44  ;;  %v4812_v49 = vmul.f32 1.442695, %v4799_v9  ;;  %v4800_v46 = vsub.f32 %v7257_v28, %v4790_v51  ;;  %v5044_v9 = vsel %vm761_vm1, %v6415_v13, 0 }
0x173b   : > { %v4793_v17 = vpop.xlane.xlu1 %4792 }
0x173c   : > { %v7815_v26 = vpop.eup %7814  ;;  %7824 = vpow2.f32 %v4812_v49  ;;  %v4814_v53 = vmul.f32 1.442695, %v4800_v46  ;;  %v4801_v31 = vsub.f32 %v7258_v18, %v4793_v17 }
0x173d   : > { %v4818_v32 = vsel %vm1746_vm3, %v7815_v26, 0.0 }
0x173e   : > { %v7817_v19 = vpop.eup %7816  ;;  %7826 = vpow2.f32 %v4814_v53  ;;  %v4816_v15 = vmul.f32 1.442695, %v4801_v31  ;;  %4819 = vadd.xlane.f32.xlu0 %v4818_v32 }
0x173f   : > { %v4821_v30 = vsel %vm1746_vm3, %v7817_v19, 0.0 }
0x1740   : > { %v7819_v27 = vpop.eup %7818  ;;  %7828 = vpow2.f32 %v4816_v15  ;;  %4822 = vadd.xlane.f32.xlu1 %v4821_v30  ;;  %v5128_v15 = vsel %vm1656_vm2, %v9140_v61, 0  ;;  %v5131_v30 = vsel %vm1656_vm2, %v9136_v50, 0 }
0x1741   : > { %v4824_v40 = vsel %vm1746_vm3, %v7819_v27, 0.0 }
0x1742   : > { %v7821_v25 = vpop.eup %7820  ;;  %4825 = vadd.xlane.f32.xlu0 %v4824_v40  ;;  %v6433_v40 = vld [vmem:[%s9537_s5 + $0x1c] sm:$0xf] }
0x1743   : > { %v4827_v56 = vsel %vm1746_vm3, %v7821_v25, 0.0 }
0x1744   : > { %v7823_v12 = vpop.eup %7822  ;;  %4828 = vadd.xlane.f32.xlu1 %v4827_v56 }
0x1745   : > { %v4830_v5 = vsel %vm1746_vm3, %v7823_v12, 0.0 }
0x1746   : > { %v7825_v8 = vpop.eup %7824  ;;  %4831 = vadd.xlane.f32.xlu0 %v4830_v5 }
0x1747   : > { %v4833_v28 = vsel %vm1746_vm3, %v7825_v8, 0.0 }
0x1748   : > { %v7827_v47 = vpop.eup %7826  ;;  %4834 = vadd.xlane.f32.xlu1 %v4833_v28 }
0x1749   : > { %v4836_v60 = vsel %vm1746_vm3, %v7827_v47, 0.0 }
0x174a   : > { %v7829_v18 = vpop.eup %7828  ;;  %4837 = vadd.xlane.f32.xlu0 %v4836_v60 }
0x174b   : > { %v4839_v38 = vsel %vm1746_vm3, %v7829_v18, 0.0 }
0x174c   : > { %4840 = vadd.xlane.f32.xlu1 %v4839_v38 }
0x17cb   : > { %v4820_v34 = vpop.xlane.xlu0 %4819 }
0x17cc   : > { %7830 = vrcp.f32 %v4820_v34 }
0x17cd   : > { %v4823_v7 = vpop.xlane.xlu1 %4822 }
0x17ce   : > { %7832 = vrcp.f32 %v4823_v7 }
0x17cf   : > { %v4826_v16 = vpop.xlane.xlu0 %4825 }
0x17d0   : > { %7834 = vrcp.f32 %v4826_v16 }
0x17d1   : > { %v4829_v39 = vpop.xlane.xlu1 %4828 }
0x17d2   : > { %7836 = vrcp.f32 %v4829_v39 }
0x17d3   : > { %v4832_v4 = vpop.xlane.xlu0 %4831 }
0x17d4   : > { %7838 = vrcp.f32 %v4832_v4 }
0x17d5   : > { %v4835_v29 = vpop.xlane.xlu1 %4834 }
0x17d6   : > { %v7831_v6 = vpop.eup %7830  ;;  %7840 = vrcp.f32 %v4835_v29 }
0x17d7   : > { %v4838_v10 = vpop.xlane.xlu0 %4837  ;;  %v4843_v3 = vmul.f32 %v7831_v6, %v7815_v26 }
0x17d8   : > { %v7833_v24 = vpop.eup %7832  ;;  %7842 = vrcp.f32 %v4838_v10  ;;  %v5478_v10 = vsel %vm761_vm1, %v6433_v40, 0 }
0x17d9   : > { %v4841_v20 = vpop.xlane.xlu1 %4840  ;;  %v4845_v1 = vmul.f32 %v7833_v24, %v7817_v19 }
0x17da   : > { %v7835_v55 = vpop.eup %7834  ;;  %7844 = vrcp.f32 %v4841_v20 }
0x17db   : > { %v4858_v59 = vpack.c.bf16 %v4845_v1, %v4843_v3  ;;  %v4847_v0 = vmul.f32 %v7835_v55, %v7819_v27  ;;  %v5137_v27 = vsel %vm1656_vm2, %v9144_v42, 0 }
0x17dc   : > { %v7837_v62 = vpop.eup %7836 }
0x17dd   : > { %v4849_v45 = vmul.f32 %v7837_v62, %v7821_v25  ;;  %7267 = vmatprep.mubr.msk.bf16.mxu0 %vm1746_vm3, %v4858_v59 }
0x17de   : > { %v7839_v14 = vpop.eup %7838 }
0x17df   : > { %v4859_v44 = vpack.c.bf16 %v4849_v45, %v4847_v0  ;;  %v4851_v49 = vmul.f32 %v7839_v14, %v7823_v12 }
0x17e0   : > { %v7841_v51 = vpop.eup %7840 }
0x17e1   : > { %7268 = vmatmul.mubr.msk.bf16.vlgmr.msra.gmra.mrb[136].mxu0 %vm1746_vm3, %v4859_v44  ;;  %v4853_v46 = vmul.f32 %v7841_v51, %v7825_v8 }
0x17e2   : > { %v7843_v17 = vpop.eup %7842  ;;  %7286 = vmatpush3.bf16.xpose.msra.mxu0 %v5044_v9 }
0x17e3   : > { %7524 = vmatprep.subr.msk.bf16.mxu0 %vm1656_vm2, %v9140_v61  ;;  %v4860_v26 = vpack.c.bf16 %v4853_v46, %v4851_v49  ;;  %v4855_v31 = vmul.f32 %v7843_v17, %v7827_v47  ;;  %v5134_v61 = vsel %vm1656_vm2, %v9148_v35, 0 }
0x17e4   : > { %v7845_v53 = vpop.eup %7844 }
0x17e5   : > { %7271 = vmatprep.mubr.msk.bf16.mxu0 %vm1746_vm3, %v4860_v26  ;;  %v4857_v32 = vmul.f32 %v7845_v53, %v7829_v18  ;;  %v6434_v26 = vld [vmem:[#allocation7 + $0x7] ss:$0 sm:$0xff] }
0x17e7   : > { %v4861_v19 = vpack.c.bf16 %v4857_v32, %v4855_v31 }
0x17e9   : > { %7272 = vmatmul.mubr.msk.bf16.gmra.mrb[140].mxu0 %vm1746_vm3, %v4861_v19 }
0x17ea   : > { %7287 = vmatprep.mubr.msk.bf16.mxu0 %vm761_vm1, %v8998_v36 }
0x17f1   : > { %7288 = vmatmul.mubr.msk.bf16.vlgmr.msra.gmra.mrb[144].mxu0 %vm761_vm1, %v9000_v23 }
0x17f2   : > { %7296 = vmatpush3.bf16.xpose.msra.mxu0 %v5128_v15  ;;  %7291 = vmatprep.mubr.msk.bf16.mxu0 %vm761_vm1, %v9020_v48 }
0x17f3   : > { %7525 = vmatprep.subr.msk.bf16.mxu0 %vm1656_vm2, %v9136_v50 }
0x17f9   : > { %7292 = vmatmul.mubr.msk.bf16.gmra.mrb[148].mxu0 %vm761_vm1, %v9022_v63 }
0x17fa   : > { %7298 = vmatpush3.bf16.xpose.msra.mxu0 %v5131_v30 }
0x17fb   : > { %7526 = vmatprep.subr.msk.bf16.mxu0 %vm1656_vm2, %v9148_v35 }
0x1802   : > { %7300 = vmatpush3.bf16.xpose.msra.mxu0 %v5134_v61 }
0x1803   : > { %7527 = vmatprep.subr.msk.bf16.mxu0 %vm1656_vm2, %v9144_v42 }
0x180a   : > { %7302 = vmatpush3.bf16.xpose.msra.mxu0 %v5137_v27 }
0x180b   : > { %7529 = vmatprep.subr.msk.bf16.mxu0 %vm761_vm1, %v6433_v40 }
0x18b4   : > { %v7269_v50 = vpop.f32.mrb[136].mxu0 }
0x18b5   : > { %v4908_v25 = vpop.f32.mrb[137].mxu0 }
0x18b6   : > { %v7270_v56 = vpop.f32.mrb[138].mxu0 }
0x18b7   : > { %v4942_v12 = vpack.c.bf16 %v7270_v56, %v7269_v50  ;;  %v4911_v5 = vpop.f32.mrb[139].mxu0 }
0x18b8   : > { %v4941_v35 = vpack.c.bf16 %v4911_v5, %v4908_v25 }
0x18ba   : > { %7277 = vmatprep.mubr.msk.bf16.mxu1 %vm1656_vm2, %v4941_v35 }
0x18bb   : > { %7278 = vmatmul.mubr.msk.bf16.vlgmr.msra.gmra.mrb[152].mxu1 %vm1656_vm2, %v4942_v12 }
0x18bc   : > { %7312 = vmatpush3.bf16.msra.mxu1 %v9142_v57  ;;  %v7273_v42 = vpop.f32.mrb[140].mxu0  ;;  %v6416_v57 = vld [vmem:[#allocation7 + $0x6] ss:$0 sm:$0xff] }
0x18bd   : > { %7313 = vmatprep.subr.bf16.mxu1 %v9138_v22  ;;  %v4924_v8 = vpop.f32.mrb[141].mxu0 }
0x18be   : > { %v7274_v28 = vpop.f32.mrb[142].mxu0 }
0x18bf   : > { %v4944_v47 = vpack.c.bf16 %v7274_v28, %v7273_v42  ;;  %v4927_v60 = vpop.f32.mrb[143].mxu0 }
0x18c0   : > { %v4943_v18 = vpack.c.bf16 %v4927_v60, %v4924_v8  ;;  %7314 = vmatpush3.bf16.msra.mxu1 %v9138_v22 }
0x18c1   : > { %7315 = vmatprep.subr.bf16.mxu1 %v9150_v52 }
0x18c2   : > { %7281 = vmatprep.mubr.msk.bf16.mxu1 %vm1656_vm2, %v4943_v18 }
0x18c3   : > { %7282 = vmatmul.mubr.msk.bf16.gmra.mrb[156].mxu1 %vm1656_vm2, %v4944_v47 }
0x18c4   : > { %7316 = vmatpush3.bf16.msra.mxu1 %v9150_v52  ;;  %v7289_v38 = vpop.f32.mrb[144].mxu0 }
0x18c5   : > { %7317 = vmatprep.subr.bf16.mxu1 %v9146_v43  ;;  %v5080_v13 = vpop.f32.mrb[145].mxu0  ;;  %v5089_v7 = vadd.f32 %v7289_v38, %v6416_v57 }
0x18c6   : > { %v7290_v34 = vpop.f32.mrb[146].mxu0  ;;  %v5081_v4 = vadd.f32 %v6416_v57, %v5080_v13 }
0x18c7   : > { %v5092_v16 = vadd.f32 %v7290_v34, %v6416_v57  ;;  %v5083_v39 = vpop.f32.mrb[147].mxu0 }
0x18c8   : > { %v5084_v29 = vadd.f32 %v6416_v57, %v5083_v39  ;;  %7318 = vmatpush3.bf16.msra.mxu1 %v9146_v43 }
0x18c9   : > { %v5112_v22 = vpack.c.bf16 %v5092_v16, %v5089_v7 }
0x18ca   : > { %v5111_v6 = vpack.c.bf16 %v5084_v29, %v5081_v4 }
0x18cc   : > { %v7293_v24 = vpop.f32.mrb[148].mxu0  ;;  %7303 = vmatprep.mubr.msk.bf16.mxu0 %vm1656_vm2, %v5111_v6 }
0x18cd   : > { %v5096_v52 = vpop.f32.mrb[149].mxu0  ;;  %7304 = vmatmul.mubr.msk.bf16.vlgmr.msra.gmra.mrb[152].mxu0 %vm1656_vm2, %v5112_v22  ;;  %v5105_v3 = vadd.f32 %v7293_v24, %v6416_v57 }
0x18ce   : > { %7338 = vmatpush3.bf16.xpose.msra.mxu0 %v5478_v10  ;;  %v7294_v20 = vpop.f32.mrb[150].mxu0  ;;  %v5097_v59 = vadd.f32 %v6416_v57, %v5096_v52 }
0x18cf   : > { %v5108_v1 = vadd.f32 %v7294_v20, %v6416_v57  ;;  %7363 = vmatprep.subr.bf16.mxu0 %v9158_v11  ;;  %v5099_v55 = vpop.f32.mrb[151].mxu0 }
0x18d0   : > { %v5100_v62 = vadd.f32 %v6416_v57, %v5099_v55 }
0x18d1   : > { %v5114_v43 = vpack.c.bf16 %v5108_v1, %v5105_v3 }
0x18d2   : > { %v5113_v0 = vpack.c.bf16 %v5100_v62, %v5097_v59 }
0x18d4   : > { %7307 = vmatprep.mubr.msk.bf16.mxu0 %vm1656_vm2, %v5113_v0 }
0x18d5   : > { %7308 = vmatmul.mubr.msk.bf16.gmra.mrb[156].mxu0 %vm1656_vm2, %v5114_v43 }
0x18d6   : > { %7339 = vmatprep.mubr.msk.bf16.mxu0 %vm761_vm1, %v8998_v36 }
0x18dd   : > { %7340 = vmatmul.mubr.msk.bf16.vlgmr.msra.gmra.mrb[160].mxu0 %vm761_vm1, %v9000_v23 }
0x18de   : > { %7364 = vmatpush3.bf16.msra.mxu0 %v9158_v11  ;;  %7343 = vmatprep.mubr.msk.bf16.mxu0 %vm761_vm1, %v9020_v48 }
0x18df   : > { %7365 = vmatprep.subr.bf16.mxu0 %v9154_v2 }
0x18e2   : > { %7366 = vmatpush3.bf16.msra.mxu0 %v9154_v2 }
0x18e3   : > { %7367 = vmatprep.subr.bf16.mxu0 %v9166_v21 }
0x18e5   : > { %7344 = vmatmul.mubr.msk.bf16.gmra.mrb[164].mxu0 %vm761_vm1, %v9022_v63 }
0x18e6   : > { %7368 = vmatpush3.bf16.msra.mxu0 %v9166_v21 }
0x18e7   : > { %7369 = vmatprep.subr.bf16.mxu0 %v9162_v58 }
0x18ea   : > { %7370 = vmatpush3.bf16.msra.mxu0 %v9162_v58 }
0x19a0   : > { %v7305_v36 = vpop.f32.mrb[152].mxu0 }
0x19a1   : > { %v5173_v23 = vpop.f32.mrb[153].mxu0  ;;  %v5210_v14 = vsel %vm1746_vm3, %v7305_v36, -inf }
0x19a2   : > { %v7306_v11 = vpop.f32.mrb[154].mxu0  ;;  %v5204_v48 = vsel %vm1746_vm3, %v5173_v23, -inf }
0x19a3   : > { %5205 = vmax.xlane.f32.xlu0 %v5204_v48  ;;  %v5176_v45 = vpop.f32.mrb[155].mxu0  ;;  %v5213_v21 = vsel %vm1746_vm3, %v7306_v11, -inf }
0x19a4   : > { %v5207_v2 = vsel %vm1746_vm3, %v5176_v45, -inf }
0x19a5   : > { %5208 = vmax.xlane.f32.xlu1 %v5207_v2 }
0x19a7   : > { %5211 = vmax.xlane.f32.xlu0 %v5210_v14 }
0x19a8   : > { %v9371_v63 = vpop.f32.mrb[156].mxu0 }
0x19a9   : > { %5214 = vmax.xlane.f32.xlu1 %v5213_v21  ;;  %v5189_v44 = vpop.f32.mrb[157].mxu0  ;;  %v5222_v46 = vsel %vm1746_vm3, %v9371_v63, -inf }
0x19aa   : > { %v9374_v58 = vpop.f32.mrb[158].mxu0  ;;  %v5216_v9 = vsel %vm1746_vm3, %v5189_v44, -inf }
0x19ab   : > { %5217 = vmax.xlane.f32.xlu0 %v5216_v9  ;;  %v5192_v51 = vpop.f32.mrb[159].mxu0  ;;  %v5225_v53 = vsel %vm1746_vm3, %v9374_v58, -inf }
0x19ac   : > { %v5219_v49 = vsel %vm1746_vm3, %v5192_v51, -inf }
0x19ad   : > { %5220 = vmax.xlane.f32.xlu1 %v5219_v49 }
0x19af   : > { %5223 = vmax.xlane.f32.xlu0 %v5222_v46 }
0x19b0   : > { %v7341_v17 = vpop.f32.mrb[160].mxu0 }
0x19b1   : > { %v5514_v31 = vpop.f32.mrb[161].mxu0  ;;  %5226 = vmax.xlane.f32.xlu1 %v5225_v53  ;;  %v9382_v19 = vadd.f32 %v7341_v17, %v6434_v26  ;;  %v5374_v53 = vld [vmem:[#allocation11 + $0x18] sm:$0xf] }
0x19b2   : > { %v7342_v32 = vpop.f32.mrb[162].mxu0  ;;  %v9386_v61 = vadd.f32 %v6434_v26, %v5514_v31  ;;  %7528 = vmatprep.subr.msk.bf16.mxu1 %vm1933_vm4, %v5374_v53 }
0x19b3   : > { %v9384_v15 = vadd.f32 %v7342_v32, %v6434_v26  ;;  %v5517_v30 = vpop.f32.mrb[163].mxu0 }
0x19b4   : > { %v9388_v27 = vadd.f32 %v6434_v26, %v5517_v30 }
0x19b5   : > { %v5546_v40 = vpack.c.bf16 %v9384_v15, %v9382_v19 }
0x19b6   : > { %v5545_v50 = vpack.c.bf16 %v9388_v27, %v9386_v61 }
0x19b8   : > { %v7345_v25 = vpop.f32.mrb[164].mxu0 }
0x19b9   : > { %v5530_v56 = vpop.f32.mrb[165].mxu0  ;;  %v9394_v5 = vadd.f32 %v7345_v25, %v6434_v26 }
0x19ba   : > { %v7346_v12 = vpop.f32.mrb[166].mxu0  ;;  %v9398_v8 = vadd.f32 %v6434_v26, %v5530_v56 }
0x19bb   : > { %v9396_v35 = vadd.f32 %v7346_v12, %v6434_v26  ;;  %v5533_v42 = vpop.f32.mrb[167].mxu0 }
0x19bc   : > { %v9400_v28 = vadd.f32 %v6434_v26, %v5533_v42 }
0x19bd   : > { %v5548_v47 = vpack.c.bf16 %v9396_v35, %v9394_v5 }
0x19be   : > { %v5547_v60 = vpack.c.bf16 %v9400_v28, %v9398_v8 }
0x1a30   : > { %v5206_v18 = vpop.xlane.xlu0 %5205 }
0x1a31   : > { %v5228_v38 = vsub.f32 %v5173_v23, %v5206_v18 }
0x1a32   : > { %v5209_v57 = vpop.xlane.xlu1 %5208 }
0x1a33   : > { %v5236_v13 = vmul.f32 1.442695, %v5228_v38  ;;  %v5229_v34 = vsub.f32 %v5176_v45, %v5209_v57 }
0x1a34   : > { %v5212_v7 = vpop.xlane.xlu0 %5211 }
0x1a35   : > { %7846 = vpow2.f32 %v5236_v13  ;;  %v5238_v16 = vmul.f32 1.442695, %v5229_v34  ;;  %v5230_v39 = vsub.f32 %v7305_v36, %v5212_v7 }
0x1a36   : > { %v5215_v4 = vpop.xlane.xlu1 %5214 }
0x1a37   : > { %7848 = vpow2.f32 %v5238_v16  ;;  %v5240_v29 = vmul.f32 1.442695, %v5230_v39  ;;  %v5231_v22 = vsub.f32 %v7306_v11, %v5215_v4 }
0x1a38   : > { %v5218_v6 = vpop.xlane.xlu0 %5217 }
0x1a39   : > { %7850 = vpow2.f32 %v5240_v29  ;;  %v5242_v10 = vmul.f32 1.442695, %v5231_v22  ;;  %v5232_v24 = vsub.f32 %v5189_v44, %v5218_v6 }
0x1a3a   : > { %v5221_v52 = vpop.xlane.xlu1 %5220 }
0x1a3b   : > { %7852 = vpow2.f32 %v5242_v10  ;;  %v5244_v20 = vmul.f32 1.442695, %v5232_v24  ;;  %v5233_v3 = vsub.f32 %v5192_v51, %v5221_v52  ;;  %v5392_v10 = vsel %vm1933_vm4, %v5374_v53, 0 }
0x1a3c   : > { %v5224_v1 = vpop.xlane.xlu0 %5223 }
0x1a3d   : > { %7854 = vpow2.f32 %v5244_v20  ;;  %v5246_v55 = vmul.f32 1.442695, %v5233_v3  ;;  %v5234_v59 = vsub.f32 %v9371_v63, %v5224_v1 }
0x1a3e   : > { %v5227_v62 = vpop.xlane.xlu1 %5226 }
0x1a3f   : > { %v7847_v43 = vpop.eup %7846  ;;  %7856 = vpow2.f32 %v5246_v55  ;;  %v5248_v0 = vmul.f32 1.442695, %v5234_v59  ;;  %v5235_v36 = vsub.f32 %v9374_v58, %v5227_v62 }
0x1a40   : > { %v5252_v23 = vsel %vm1746_vm3, %v7847_v43, 0.0 }
0x1a41   : > { %v7849_v11 = vpop.eup %7848  ;;  %7858 = vpow2.f32 %v5248_v0  ;;  %v5250_v48 = vmul.f32 1.442695, %v5235_v36  ;;  %5253 = vadd.xlane.f32.xlu0 %v5252_v23 }
0x1a42   : > { %v5255_v45 = vsel %vm1746_vm3, %v7849_v11, 0.0 }
0x1a43   : > { %v7851_v2 = vpop.eup %7850  ;;  %7860 = vpow2.f32 %v5250_v48  ;;  %5256 = vadd.xlane.f32.xlu1 %v5255_v45 }
0x1a44   : > { %v5258_v14 = vsel %vm1746_vm3, %v7851_v2, 0.0 }
0x1a45   : > { %v7853_v63 = vpop.eup %7852  ;;  %5259 = vadd.xlane.f32.xlu0 %v5258_v14 }
0x1a46   : > { %v5261_v21 = vsel %vm1746_vm3, %v7853_v63, 0.0 }
0x1a47   : > { %v7855_v44 = vpop.eup %7854  ;;  %5262 = vadd.xlane.f32.xlu1 %v5261_v21 }
0x1a48   : > { %v5264_v58 = vsel %vm1746_vm3, %v7855_v44, 0.0 }
0x1a49   : > { %v7857_v9 = vpop.eup %7856  ;;  %5265 = vadd.xlane.f32.xlu0 %v5264_v58 }
0x1a4a   : > { %v5267_v51 = vsel %vm1746_vm3, %v7857_v9, 0.0 }
0x1a4b   : > { %v7859_v49 = vpop.eup %7858  ;;  %5268 = vadd.xlane.f32.xlu1 %v5267_v51  ;;  %v5565_v51 = vsel %vm1656_vm2, %v9152_v41, 0 }
0x1a4c   : > { %v5270_v46 = vsel %vm1746_vm3, %v7859_v49, 0.0 }
0x1a4d   : > { %v7861_v17 = vpop.eup %7860  ;;  %5271 = vadd.xlane.f32.xlu0 %v5270_v46 }
0x1a4e   : > { %v5273_v26 = vsel %vm1746_vm3, %v7861_v17, 0.0 }
0x1a4f   : > { %5274 = vadd.xlane.f32.xlu1 %v5273_v26 }
0x1ace   : > { %v5254_v31 = vpop.xlane.xlu0 %5253 }
0x1acf   : > { %7862 = vrcp.f32 %v5254_v31 }
0x1ad0   : > { %v5257_v32 = vpop.xlane.xlu1 %5256 }
0x1ad1   : > { %7864 = vrcp.f32 %v5257_v32 }
0x1ad2   : > { %v5260_v30 = vpop.xlane.xlu0 %5259 }
0x1ad3   : > { %7866 = vrcp.f32 %v5260_v30 }
0x1ad4   : > { %v5263_v25 = vpop.xlane.xlu1 %5262 }
0x1ad5   : > { %7868 = vrcp.f32 %v5263_v25 }
0x1ad6   : > { %v5266_v56 = vpop.xlane.xlu0 %5265 }
0x1ad7   : > { %7870 = vrcp.f32 %v5266_v56 }
0x1ad8   : > { %v5269_v12 = vpop.xlane.xlu1 %5268 }
0x1ad9   : > { %v7863_v42 = vpop.eup %7862  ;;  %7872 = vrcp.f32 %v5269_v12 }
0x1ada   : > { %v5272_v18 = vpop.xlane.xlu0 %5271  ;;  %v5277_v13 = vmul.f32 %v7863_v42, %v7847_v43 }
0x1adb   : > { %v7865_v38 = vpop.eup %7864  ;;  %7874 = vrcp.f32 %v5272_v18 }
0x1adc   : > { %v5275_v57 = vpop.xlane.xlu1 %5274  ;;  %v5279_v34 = vmul.f32 %v7865_v38, %v7849_v11 }
0x1add   : > { %v7867_v7 = vpop.eup %7866  ;;  %7876 = vrcp.f32 %v5275_v57 }
0x1ade   : > { %v5292_v16 = vpack.c.bf16 %v5279_v34, %v5277_v13  ;;  %v5281_v4 = vmul.f32 %v7867_v7, %v7851_v2  ;;  %v5562_v2 = vsel %vm1656_vm2, %v9156_v54, 0 }
0x1adf   : > { %v7869_v39 = vpop.eup %7868 }
0x1ae0   : > { %v5283_v29 = vmul.f32 %v7869_v39, %v7853_v63  ;;  %7319 = vmatprep.mubr.msk.bf16.mxu1 %vm1746_vm3, %v5292_v16 }
0x1ae1   : > { %v7871_v22 = vpop.eup %7870 }
0x1ae2   : > { %v5293_v6 = vpack.c.bf16 %v5283_v29, %v5281_v4  ;;  %v5285_v52 = vmul.f32 %v7871_v22, %v7855_v44 }
0x1ae3   : > { %v7873_v24 = vpop.eup %7872 }
0x1ae4   : > { %7320 = vmatmul.mubr.msk.bf16.vlgmr.msra.gmra.mrb[168].mxu1 %vm1746_vm3, %v5293_v6  ;;  %v5287_v20 = vmul.f32 %v7873_v24, %v7857_v9 }
0x1ae5   : > { %v7875_v3 = vpop.eup %7874  ;;  %7328 = vmatpush3.bf16.msra.mxu1 %v5392_v10 }
0x1ae6   : > { %7530 = vmatprep.subr.msk.bf16.mxu1 %vm1656_vm2, %v9156_v54  ;;  %v5294_v1 = vpack.c.bf16 %v5287_v20, %v5285_v52  ;;  %v5289_v59 = vmul.f32 %v7875_v3, %v7859_v49  ;;  %v5568_v54 = vsel %vm1656_vm2, %v9164_v37, 0  ;;  %v5571_v49 = vsel %vm1656_vm2, %v9160_v33, 0 }
0x1ae7   : > { %v7877_v55 = vpop.eup %7876 }
0x1ae8   : > { %7323 = vmatprep.mubr.msk.bf16.mxu1 %vm1746_vm3, %v5294_v1  ;;  %v5291_v62 = vmul.f32 %v7877_v55, %v7861_v17 }
0x1aea   : > { %v5295_v43 = vpack.c.bf16 %v5291_v62, %v5289_v59 }
0x1aec   : > { %7324 = vmatmul.mubr.msk.bf16.gmra.mrb[172].mxu1 %vm1746_vm3, %v5295_v43 }
0x1bb7   : > { %v7321_v0 = vpop.f32.mrb[168].mxu1 }
0x1bb8   : > { %v5342_v36 = vpop.f32.mrb[169].mxu1 }
0x1bb9   : > { %v7322_v23 = vpop.f32.mrb[170].mxu1 }
0x1bba   : > { %v5376_v11 = vpack.c.bf16 %v7322_v23, %v7321_v0  ;;  %v5345_v48 = vpop.f32.mrb[171].mxu1 }
0x1bbb   : > { %v5375_v45 = vpack.c.bf16 %v5345_v48, %v5342_v36 }
0x1bbd   : > { %7329 = vmatprep.mubr.msk.bf16.mxu1 %vm1656_vm2, %v5375_v45 }
0x1bbe   : > { %7330 = vmatmul.mubr.msk.bf16.vlgmr.msra.gmra.mrb[152].mxu1 %vm1656_vm2, %v5376_v11 }
0x1bbf   : > { %7348 = vmatpush3.bf16.xpose.msra.mxu1 %v5562_v2  ;;  %v7325_v14 = vpop.f32.mrb[172].mxu1 }
0x1bc0   : > { %7531 = vmatprep.subr.msk.bf16.mxu1 %vm1656_vm2, %v9152_v41  ;;  %v5358_v63 = vpop.f32.mrb[173].mxu1 }
0x1bc1   : > { %v7326_v21 = vpop.f32.mrb[174].mxu1 }
0x1bc2   : > { %v5378_v44 = vpack.c.bf16 %v7326_v21, %v7325_v14  ;;  %v5361_v58 = vpop.f32.mrb[175].mxu1 }
0x1bc3   : > { %v5377_v9 = vpack.c.bf16 %v5361_v58, %v5358_v63  ;;  %v5808_v63 = vld [vmem:[#allocation11 + $0x1c] sm:$0xf] }
0x1bc4   : > { %v5826_v21 = vsel %vm1933_vm4, %v5808_v63, 0 }
0x1bc5   : > { %7333 = vmatprep.mubr.msk.bf16.mxu1 %vm1656_vm2, %v5377_v9 }
0x1bc6   : > { %7334 = vmatmul.mubr.msk.bf16.gmra.mrb[156].mxu1 %vm1656_vm2, %v5378_v44 }
0x1bc7   : > { %7350 = vmatpush3.bf16.xpose.msra.mxu1 %v5565_v51  ;;  %7355 = vmatprep.mubr.msk.bf16.mxu1 %vm1656_vm2, %v5545_v50 }
0x1bc8   : > { %7532 = vmatprep.subr.msk.bf16.mxu1 %vm1656_vm2, %v9164_v37 }
0x1bcf   : > { %7352 = vmatpush3.bf16.xpose.msra.mxu1 %v5568_v54 }
0x1bd0   : > { %7533 = vmatprep.subr.msk.bf16.mxu1 %vm1656_vm2, %v9160_v33 }
0x1bd7   : > { %7354 = vmatpush3.bf16.xpose.msra.mxu1 %v5571_v49 }
0x1bd8   : > { %7534 = vmatprep.subr.msk.bf16.mxu1 %vm1933_vm4, %v5808_v63 }
0x1bde   : > { %7356 = vmatmul.mubr.msk.bf16.vlgmr.msra.gmra.mrb[176].mxu1 %vm1656_vm2, %v5546_v40 }
0x1bdf   : > { %7359 = vmatprep.mubr.msk.bf16.mxu1 %vm1656_vm2, %v5547_v60  ;;  %7380 = vmatpush3.bf16.msra.mxu1 %v5826_v21 }
0x1be6   : > { %7360 = vmatmul.mubr.msk.bf16.gmra.mrb[180].mxu1 %vm1656_vm2, %v5548_v47 }
0x1cb1   : > { %v7357_v41 = vpop.f32.mrb[176].mxu1 }
0x1cb2   : > { %v5607_v37 = vpop.f32.mrb[177].mxu1  ;;  %v5644_v15 = vsel %vm1746_vm3, %v7357_v41, -inf }
0x1cb3   : > { %v7358_v61 = vpop.f32.mrb[178].mxu1  ;;  %v5638_v33 = vsel %vm1746_vm3, %v5607_v37, -inf }
0x1cb4   : > { %5639 = vmax.xlane.f32.xlu0 %v5638_v33  ;;  %v5610_v27 = vpop.f32.mrb[179].mxu1  ;;  %v5647_v50 = vsel %vm1746_vm3, %v7358_v61, -inf }
0x1cb5   : > { %v5641_v19 = vsel %vm1746_vm3, %v5610_v27, -inf }
0x1cb6   : > { %5642 = vmax.xlane.f32.xlu1 %v5641_v19 }
0x1cb8   : > { %5645 = vmax.xlane.f32.xlu0 %v5644_v15 }
0x1cb9   : > { %v7361_v40 = vpop.f32.mrb[180].mxu1 }
0x1cba   : > { %5648 = vmax.xlane.f32.xlu1 %v5647_v50  ;;  %v5623_v5 = vpop.f32.mrb[181].mxu1  ;;  %v5656_v60 = vsel %vm1746_vm3, %v7361_v40, -inf }
0x1cbb   : > { %v7362_v35 = vpop.f32.mrb[182].mxu1  ;;  %v5650_v8 = vsel %vm1746_vm3, %v5623_v5, -inf }
0x1cbc   : > { %5651 = vmax.xlane.f32.xlu0 %v5650_v8  ;;  %v5626_v28 = vpop.f32.mrb[183].mxu1  ;;  %v5659_v46 = vsel %vm1746_vm3, %v7362_v35, -inf }
0x1cbd   : > { %v5653_v47 = vsel %vm1746_vm3, %v5626_v28, -inf }
0x1cbe   : > { %5654 = vmax.xlane.f32.xlu1 %v5653_v47 }
0x1cc0   : > { %5657 = vmax.xlane.f32.xlu0 %v5656_v60 }
0x1cc2   : > { %5660 = vmax.xlane.f32.xlu1 %v5659_v46 }
0x1d41   : > { %v5640_v17 = vpop.xlane.xlu0 %5639 }
0x1d42   : > { %v5662_v26 = vsub.f32 %v5607_v37, %v5640_v17 }
0x1d43   : > { %v5643_v53 = vpop.xlane.xlu1 %5642 }
0x1d44   : > { %v5670_v31 = vmul.f32 1.442695, %v5662_v26  ;;  %v5663_v32 = vsub.f32 %v5610_v27, %v5643_v53 }
0x1d45   : > { %v5646_v30 = vpop.xlane.xlu0 %5645 }
0x1d46   : > { %7878 = vpow2.f32 %v5670_v31  ;;  %v5672_v25 = vmul.f32 1.442695, %v5663_v32  ;;  %v5664_v56 = vsub.f32 %v7357_v41, %v5646_v30 }
0x1d47   : > { %v5649_v12 = vpop.xlane.xlu1 %5648 }
0x1d48   : > { %7880 = vpow2.f32 %v5672_v25  ;;  %v5674_v42 = vmul.f32 1.442695, %v5664_v56  ;;  %v5665_v18 = vsub.f32 %v7358_v61, %v5649_v12 }
0x1d49   : > { %v5652_v38 = vpop.xlane.xlu0 %5651 }
0x1d4a   : > { %7882 = vpow2.f32 %v5674_v42  ;;  %v5676_v57 = vmul.f32 1.442695, %v5665_v18  ;;  %v5666_v13 = vsub.f32 %v5623_v5, %v5652_v38 }
0x1d4b   : > { %v5655_v34 = vpop.xlane.xlu1 %5654 }
0x1d4c   : > { %7884 = vpow2.f32 %v5676_v57  ;;  %v5678_v7 = vmul.f32 1.442695, %v5666_v13  ;;  %v5667_v16 = vsub.f32 %v5626_v28, %v5655_v34 }
0x1d4d   : > { %v5658_v39 = vpop.xlane.xlu0 %5657 }
0x1d4e   : > { %7886 = vpow2.f32 %v5678_v7  ;;  %v5680_v4 = vmul.f32 1.442695, %v5667_v16  ;;  %v5668_v29 = vsub.f32 %v7361_v40, %v5658_v39 }
0x1d4f   : > { %v5661_v22 = vpop.xlane.xlu1 %5660 }
0x1d50   : > { %v7879_v6 = vpop.eup %7878  ;;  %7888 = vpow2.f32 %v5680_v4  ;;  %v5682_v10 = vmul.f32 1.442695, %v5668_v29  ;;  %v5669_v24 = vsub.f32 %v7362_v35, %v5661_v22  ;;  %v7620_v4 = vld [vmem:[%s9545_s13 + $0x10] sm:$0xff]   ;;  %v7621_v22 = vld [vmem:[%s9545_s13 + $0x18] sm:$0xff]  }
0x1d51   : > { %v5686_v52 = vsel %vm1746_vm3, %v7879_v6, 0.0  ;;  %7535 = vmatprep.subr.msk.bf16.mxu0 %vm761_vm1, %v7620_v4  ;;  %v5949_v29 = vsel %vm761_vm1, %v7620_v4, 0 }
0x1d52   : > { %v7881_v20 = vpop.eup %7880  ;;  %7890 = vpow2.f32 %v5682_v10  ;;  %v5684_v3 = vmul.f32 1.442695, %v5669_v24  ;;  %5687 = vadd.xlane.f32.xlu0 %v5686_v52  ;;  %v6378_v10 = vld [vmem:[%s9544_s12 + $0x1] ss:$0 sm:$0xff]  ;;  %v7918_v24 = vld [vmem:[#allocation2 + $0x10] sm:$0xff] }
0x1d53   : > { %v5689_v1 = vsel %vm1746_vm3, %v7881_v20, 0.0  ;;  %v4147_v52 = vadd.f32 %v7918_v24, %v6378_v10 }
0x1d54   : > { %v7883_v55 = vpop.eup %7882  ;;  %7892 = vpow2.f32 %v5684_v3  ;;  %5690 = vadd.xlane.f32.xlu1 %v5689_v1  ;;  %v7919_v3 = vld [vmem:[#allocation2] sm:$0xff] }
0x1d55   : > { %v5692_v59 = vsel %vm1746_vm3, %v7883_v55, 0.0  ;;  %v4145_v1 = vadd.f32 %v7919_v3, %v6378_v10 }
0x1d56   : > { %v7885_v62 = vpop.eup %7884  ;;  %5693 = vadd.xlane.f32.xlu0 %v5692_v59 }
0x1d57   : > { %v5695_v43 = vsel %vm1746_vm3, %v7885_v62, 0.0 }
0x1d58   : > { %v7887_v0 = vpop.eup %7886  ;;  %5696 = vadd.xlane.f32.xlu1 %v5695_v43 }
0x1d59   : > { %v5698_v36 = vsel %vm1746_vm3, %v7887_v0, 0.0 }
0x1d5a   : > { %v7889_v23 = vpop.eup %7888  ;;  %5699 = vadd.xlane.f32.xlu0 %v5698_v36 }
0x1d5b   : > { %v5701_v11 = vsel %vm1746_vm3, %v7889_v23, 0.0 }
0x1d5c   : > { %v7891_v48 = vpop.eup %7890  ;;  %5702 = vadd.xlane.f32.xlu1 %v5701_v11 }
0x1d5d   : > { %v5704_v45 = vsel %vm1746_vm3, %v7891_v48, 0.0 }
0x1d5e   : > { %v7893_v2 = vpop.eup %7892  ;;  %5705 = vadd.xlane.f32.xlu0 %v5704_v45 }
0x1d5f   : > { %v5707_v14 = vsel %vm1746_vm3, %v7893_v2, 0.0 }
0x1d60   : > { %5708 = vadd.xlane.f32.xlu1 %v5707_v14  ;;  %v7922_v14 = vld [vmem:[#allocation2 + $0x30] sm:$0xff] }
0x1d61   : > { %v4151_v63 = vadd.f32 %v7922_v14, %v6378_v10 }
0x1ddf   : > { %v5688_v44 = vpop.xlane.xlu0 %5687 }
0x1de0   : > { %7894 = vrcp.f32 %v5688_v44  ;;  %v7923_v44 = vld [vmem:[#allocation2 + $0x20] sm:$0xff] }
0x1de1   : > { %v5691_v58 = vpop.xlane.xlu1 %5690 }
0x1de2   : > { %7896 = vrcp.f32 %v5691_v58  ;;  %v4149_v58 = vadd.f32 %v7923_v44, %v6378_v10 }
0x1de3   : > { %v5694_v9 = vpop.xlane.xlu0 %5693 }
0x1de4   : > { %7898 = vrcp.f32 %v5694_v9 }
0x1de5   : > { %v5697_v51 = vpop.xlane.xlu1 %5696 }
0x1de6   : > { %7900 = vrcp.f32 %v5697_v51 }
0x1de7   : > { %v5700_v54 = vpop.xlane.xlu0 %5699 }
0x1de8   : > { %7902 = vrcp.f32 %v5700_v54  ;;  %v7924_v54 = vld [vmem:[#allocation2 + $0x38] sm:$0xff] }
0x1de9   : > { %v5703_v49 = vpop.xlane.xlu1 %5702 }
0x1dea   : > { %v7895_v41 = vpop.eup %7894  ;;  %7904 = vrcp.f32 %v5703_v49  ;;  %v4152_v49 = vadd.f32 %v7924_v54, %v6378_v10 }
0x1deb   : > { %v5706_v37 = vpop.xlane.xlu0 %5705  ;;  %v5711_v27 = vmul.f32 %v7895_v41, %v7879_v6  ;;  %v5952_v6 = vsel %vm761_vm1, %v7621_v22, 0 }
0x1dec   : > { %v7897_v61 = vpop.eup %7896  ;;  %7906 = vrcp.f32 %v5706_v37 }
0x1ded   : > { %v5709_v33 = vpop.xlane.xlu1 %5708  ;;  %v5713_v19 = vmul.f32 %v7897_v61, %v7881_v20  ;;  %v7925_v61 = vld [vmem:[#allocation2 + $0x28] sm:$0xff] }
0x1dee   : > { %v7899_v15 = vpop.eup %7898  ;;  %7908 = vrcp.f32 %v5709_v33  ;;  %v4150_v33 = vadd.f32 %v7925_v61, %v6378_v10 }
0x1def   : > { %v5726_v40 = vpack.c.bf16 %v5713_v19, %v5711_v27  ;;  %v5715_v5 = vmul.f32 %v7899_v15, %v7883_v55 }
0x1df0   : > { %v7901_v50 = vpop.eup %7900 }
0x1df1   : > { %v5717_v35 = vmul.f32 %v7901_v50, %v7885_v62  ;;  %7371 = vmatprep.mubr.msk.bf16.mxu0 %vm1746_vm3, %v5726_v40  ;;  %v7920_v62 = vld [vmem:[#allocation2 + $0x18] sm:$0xff] }
0x1df2   : > { %v7903_v8 = vpop.eup %7902  ;;  %v4148_v43 = vadd.f32 %v7920_v62, %v6378_v10 }
0x1df3   : > { %v5727_v28 = vpack.c.bf16 %v5717_v35, %v5715_v5  ;;  %v5719_v60 = vmul.f32 %v7903_v8, %v7887_v0 }
0x1df4   : > { %v7905_v47 = vpop.eup %7904 }
0x1df5   : > { %7372 = vmatmul.mubr.msk.bf16.vlgmr.msra.gmra.mrb[168].mxu0 %vm1746_vm3, %v5727_v28  ;;  %v5721_v46 = vmul.f32 %v7905_v47, %v7889_v23  ;;  %v7921_v23 = vld [vmem:[#allocation2 + $0x8] sm:$0xff] }
0x1df6   : > { %v7907_v17 = vpop.eup %7906  ;;  %7390 = vmatpush3.bf16.xpose.msra.mxu0 %v5949_v29  ;;  %v4146_v11 = vadd.f32 %v7921_v23, %v6378_v10 }
0x1df7   : > { %v5728_v26 = vpack.c.bf16 %v5721_v46, %v5719_v60  ;;  %v5723_v31 = vmul.f32 %v7907_v17, %v7891_v48  ;;  %7536 = vmatprep.subr.msk.bf16.mxu0 %vm761_vm1, %v7621_v22 }
0x1df8   : > { %v7909_v53 = vpop.eup %7908 }
0x1df9   : > { %7375 = vmatprep.mubr.msk.bf16.mxu0 %vm1746_vm3, %v5728_v26  ;;  %v5725_v32 = vmul.f32 %v7909_v53, %v7893_v2 }
0x1dfb   : > { %v5729_v30 = vpack.c.bf16 %v5725_v32, %v5723_v31 }
0x1dfd   : > { %7376 = vmatmul.mubr.msk.bf16.gmra.mrb[172].mxu0 %vm1746_vm3, %v5729_v30 }
0x1dfe   : > { %7392 = vmatpush3.bf16.xpose.msra.mxu0 %v5952_v6 }
0x1ec8   : > { %v7373_v25 = vpop.f32.mrb[168].mxu0 }
0x1ec9   : > { %v5776_v56 = vpop.f32.mrb[169].mxu0 }
0x1eca   : > { %v7374_v12 = vpop.f32.mrb[170].mxu0 }
0x1ecb   : > { %v5810_v42 = vpack.c.bf16 %v7374_v12, %v7373_v25  ;;  %v5779_v18 = vpop.f32.mrb[171].mxu0 }
0x1ecc   : > { %v5809_v38 = vpack.c.bf16 %v5779_v18, %v5776_v56 }
0x1ece   : > { %7381 = vmatprep.mubr.msk.bf16.mxu1 %vm1656_vm2, %v5809_v38 }
0x1ecf   : > { %7382 = vmatmul.mubr.msk.bf16.vlgmr.msra.gmra.mrb[152].mxu1 %vm1656_vm2, %v5810_v42 }
0x1ed0   : > { %v7377_v57 = vpop.f32.mrb[172].mxu0 }
0x1ed1   : > { %v5792_v13 = vpop.f32.mrb[173].mxu0 }
0x1ed2   : > { %v7378_v34 = vpop.f32.mrb[174].mxu0 }
0x1ed3   : > { %v5812_v7 = vpack.c.bf16 %v7378_v34, %v7377_v57  ;;  %v5795_v16 = vpop.f32.mrb[175].mxu0 }
0x1ed4   : > { %v5811_v39 = vpack.c.bf16 %v5795_v16, %v5792_v13 }
0x1ed6   : > { %7385 = vmatprep.mubr.msk.bf16.mxu1 %vm1656_vm2, %v5811_v39 }
0x1ed7   : > { %7386 = vmatmul.mubr.msk.bf16.gmra.mrb[156].mxu1 %vm1656_vm2, %v5812_v7 }
0x1fa2   : > { %v7383_v20 = vpop.f32.mrb[152].mxu1 }
0x1fa3   : > { %v7409_v55 = vadd.f32 %v7383_v20, %v4147_v52  ;;  %v5862_v59 = vpop.f32.mrb[153].mxu1 }
0x1fa4   : > { %v7410_v0 = vadd.f32 %v5862_v59, %v4145_v1  ;;  %v7384_v36 = vpop.f32.mrb[154].mxu1 }
0x1fa5   : > { %5903 = vst.msk [vmem:[#allocation2 + $0x10] sm:$0xff] %vm761_vm1, %v7409_v55  ;;  %v7411_v48 = vadd.f32 %v7384_v36, %v4148_v43  ;;  %v5865_v45 = vpop.f32.mrb[155].mxu1 }
0x1fa6   : > { %5901 = vst.msk [vmem:[#allocation2] sm:$0xff] %vm761_vm1, %v7410_v0  ;;  %v7412_v2 = vadd.f32 %v5865_v45, %v4146_v11 }
0x1fa7   : > { %5904 = vst.msk [vmem:[#allocation2 + $0x18] sm:$0xff] %vm761_vm1, %v7411_v48 }
0x1fa8   : > { %5902 = vst.msk [vmem:[#allocation2 + $0x8] sm:$0xff] %vm761_vm1, %v7412_v2 }
0x1faa   : > { %v7387_v21 = vpop.f32.mrb[156].mxu1 }
0x1fab   : > { %v7413_v9 = vadd.f32 %v7387_v21, %v4151_v63  ;;  %v5878_v51 = vpop.f32.mrb[157].mxu1 }
0x1fac   : > { %v7414_v41 = vadd.f32 %v5878_v51, %v4149_v58  ;;  %v7388_v37 = vpop.f32.mrb[158].mxu1  ;;  %v5911_v8 = vld [vmem:[#allocation2 + $0x10] sm:$0xff] }
0x1fad   : > { %5907 = vst.msk [vmem:[#allocation2 + $0x30] sm:$0xff] %vm761_vm1, %v7413_v9  ;;  %v7415_v27 = vadd.f32 %v7388_v37, %v4152_v49  ;;  %v5881_v19 = vpop.f32.mrb[159].mxu1  ;;  %v5909_v50 = vld [vmem:[#allocation2] sm:$0xff] }
0x1fae   : > { %5905 = vst.msk [vmem:[#allocation2 + $0x20] sm:$0xff] %vm761_vm1, %v7414_v41  ;;  %v7416_v15 = vadd.f32 %v5881_v19, %v4150_v33  ;;  %v5912_v40 = vld [vmem:[#allocation2 + $0x18] sm:$0xff] }
0x1faf   : > { %5908 = vst.msk [vmem:[#allocation2 + $0x38] sm:$0xff] %vm761_vm1, %v7415_v27  ;;  %v5910_v5 = vld [vmem:[#allocation2 + $0x8] sm:$0xff]  ;;  %v5923_v28 = vpack.c.bf16 %v5912_v40, %v5911_v8 }
0x1fb0   : > { %5906 = vst.msk [vmem:[#allocation2 + $0x28] sm:$0xff] %vm761_vm1, %v7416_v15  ;;  %v5922_v35 = vpack.c.bf16 %v5910_v5, %v5909_v50 }
0x1fb2   : > { %7393 = vmatprep.mubr.msk.bf16.mxu0 %vm761_vm1, %v5922_v35 }
0x1fb3   : > { %7394 = vmatmul.mubr.msk.bf16.vlgmr.msra.gmra.mrb[176].mxu0 %vm761_vm1, %v5923_v28 }
0x1fb4   : > { %v5915_v26 = vld [vmem:[#allocation2 + $0x30] sm:$0xff] }
0x1fb5   : > { %v5913_v60 = vld [vmem:[#allocation2 + $0x20] sm:$0xff] }
0x1fb6   : > { %v5916_v47 = vld [vmem:[#allocation2 + $0x38] sm:$0xff] }
0x1fb7   : > { %v5914_v46 = vld [vmem:[#allocation2 + $0x28] sm:$0xff]  ;;  %v5925_v53 = vpack.c.bf16 %v5916_v47, %v5915_v26 }
0x1fb8   : > { %v5924_v17 = vpack.c.bf16 %v5914_v46, %v5913_v60 }
0x1fba   : > { %7397 = vmatprep.mubr.msk.bf16.mxu0 %vm761_vm1, %v5924_v17 }
0x1fbb   : > { %7398 = vmatmul.mubr.msk.bf16.gmra.mrb[180].mxu0 %vm761_vm1, %v5925_v53 }
0x2086   : > { %v7395_v31 = vpop.f32.mrb[176].mxu0 }
0x2087   : > { %v6021_v32 = vadd.f32 %v7395_v31, %v5911_v8  ;;  %v5988_v30 = vpop.f32.mrb[177].mxu0 }
0x2088   : > { %v6019_v25 = vadd.f32 %v5988_v30, %v5909_v50  ;;  %v7396_v56 = vpop.f32.mrb[178].mxu0 }
0x2089   : > { %6029 = vst.msk [vmem:[#allocation2 + $0x10] sm:$0xff] %vm761_vm1, %v6021_v32  ;;  %v6022_v12 = vadd.f32 %v7396_v56, %v5912_v40  ;;  %v5991_v42 = vpop.f32.mrb[179].mxu0 }
0x208a   : > { %6027 = vst.msk [vmem:[#allocation2] sm:$0xff] %vm761_vm1, %v6019_v25  ;;  %v6020_v18 = vadd.f32 %v5991_v42, %v5910_v5 }
0x208b   : > { %6030 = vst.msk [vmem:[#allocation2 + $0x18] sm:$0xff] %vm761_vm1, %v6022_v12 }
0x208c   : > { %6028 = vst.msk [vmem:[#allocation2 + $0x8] sm:$0xff] %vm761_vm1, %v6020_v18 }
0x208e   : > { %v7399_v38 = vpop.f32.mrb[180].mxu0 }
0x208f   : > { %v6025_v57 = vadd.f32 %v7399_v38, %v5915_v26  ;;  %v6004_v13 = vpop.f32.mrb[181].mxu0 }
0x2090   : > { %v6037_v34 = vld [vmem:[#allocation2 + $0x10] sm:$0xff]  ;;  %v6023_v7 = vadd.f32 %v6004_v13, %v5913_v60  ;;  %v7400_v16 = vpop.f32.mrb[182].mxu0 }
0x2091   : > { %6045 = vst.msk [vmem:[%s553_s21 + $0x10] sm:$0xff] %vm761_vm1, %v6037_v34  ;;  %v6035_v39 = vld [vmem:[#allocation2] sm:$0xff]  ;;  %6033 = vst.msk [vmem:[#allocation2 + $0x30] sm:$0xff] %vm761_vm1, %v6025_v57  ;;  %v6026_v4 = vadd.f32 %v7400_v16, %v5916_v47  ;;  %v6007_v29 = vpop.f32.mrb[183].mxu0 }
0x2092   : > { %6043 = vst.msk [vmem:[%s553_s21] sm:$0xff] %vm761_vm1, %v6035_v39  ;;  %v6038_v22 = vld [vmem:[#allocation2 + $0x18] sm:$0xff]  ;;  %6031 = vst.msk [vmem:[#allocation2 + $0x20] sm:$0xff] %vm761_vm1, %v6023_v7  ;;  %v6024_v6 = vadd.f32 %v6007_v29, %v5914_v46 }
0x2093   : > { %6046 = vst.msk [vmem:[%s553_s21 + $0x18] sm:$0xff] %vm761_vm1, %v6038_v22  ;;  %v6036_v10 = vld [vmem:[#allocation2 + $0x8] sm:$0xff]  ;;  %6034 = vst.msk [vmem:[#allocation2 + $0x38] sm:$0xff] %vm761_vm1, %v6026_v4 }
0x2094   : > { %6044 = vst.msk [vmem:[%s553_s21 + $0x8] sm:$0xff] %vm761_vm1, %v6036_v10  ;;  %6032 = vst.msk [vmem:[#allocation2 + $0x28] sm:$0xff] %vm761_vm1, %v6024_v6 }
0x2098   : > { %v6041_v24 = vld [vmem:[#allocation2 + $0x30] sm:$0xff] }
0x2099   : > { %6049 = vst.msk [vmem:[%s553_s21 + $0x30] sm:$0xff] %vm761_vm1, %v6041_v24  ;;  %v6039_v52 = vld [vmem:[#allocation2 + $0x20] sm:$0xff] }
0x209a   : > { %6047 = vst.msk [vmem:[%s553_s21 + $0x20] sm:$0xff] %vm761_vm1, %v6039_v52  ;;  %v6042_v20 = vld [vmem:[#allocation2 + $0x38] sm:$0xff] }
0x209b   : > { %6050 = vst.msk [vmem:[%s553_s21 + $0x38] sm:$0xff] %vm761_vm1, %v6042_v20  ;;  %v6040_v3 = vld [vmem:[#allocation2 + $0x28] sm:$0xff] }
0x209c   : > { %6048 = vst.msk [vmem:[%s553_s21 + $0x28] sm:$0xff] %vm761_vm1, %v6040_v3 }
0x209d PF: > { %s9577_s16 = sld [smem:[#allocation17_spill]] }
0x20a3   : > { %s28_s29 = sadd.s32 1, %s9577_s16  }
0x20a4   : > { %p25_p13 = scmp.ge.s32.totalorder %s28_s29, 4  }
0x20a6   :  { %27 = sbr.rel (!%p25_p13) target bundleno = 7 (0x7), region = 182 }
0x20ad   :  { %6072 = vsyncpa [#allocation4], 1 }
0x20ae   :  { %6074 = vsyncpa [#allocation4 + $0x1], 1 }
0x20af   :  { %6075 = vsyncpa [#allocation6], 1 }
0x20b0   :  { %6076 = vsyncpa [#allocation9], 1 }
0x20b1   :  { %6077 = vsyncpa [#allocation12], 1 }

</bundles_post_ra>
